<compile_context>
chip_gen: v7x
topology: tpu7x:2x2x1
jax: 0.10.0
libtpu: 0.0.40
codegen_flags: <defaults>
</compile_context>

<pallas_src>
import jax
import jax.numpy as jnp
from jax.experimental import pallas as pl
from jax.experimental.pallas import tpu as pltpu

# ----------------------- static model configuration -----------------------
BATCH = 2
N_CH = 8            # EEG channels  (torch conv "H")
N_TIMES = 64        # time samples  (torch conv "W")
N_CLASSES = 4

F1 = 32             # block1 temporal-conv filters
F2 = 64             # block1 depthwise spatial-conv output channels (2 per group)
F3 = 128            # block2 pointwise-conv output channels
K1 = 64             # block1 temporal kernel width, pad 32
P1 = 32
K3 = 16             # block2 depthwise temporal kernel width, pad 8
P3 = 8
ATT_HID = F2 // 8   # ChannelAttention hidden size (reduction = 8)
BN_EPS = 1e-5

W0 = N_TIMES + 2 * P1 - K1 + 1   # 65  after block1 temporal conv
W1 = W0 // 4                     # 16  after AvgPool2d((1,4))
W2 = W1 + 2 * P3 - K3 + 1        # 17  after block2 depthwise conv
WF = W2 // 8                     # 2   after AvgPool2d((1,8))
FC_IN = F3 * WF                  # 256
N_BIAS_COLS = 8                  # packed bias-slab width

# main path and residual path must have the same final width
assert (N_TIMES // 4) // 8 == WF


# --------------------------------- kernel ----------------------------------
def eegnet_kernel(x_ref,
                  w1toep_ref, w2blk_ref,
                  aw1_ref, aw2_ref,
                  pool4_ref, w3_ref, w4eff_ref, pool8_ref,
                  pool32_ref, wr_ref,
                  wfc_ref, bias_ref,
                  o_ref,
                  tcol_ref):
    f32 = jnp.float32
    x = x_ref[0]                                           # (N_CH, N_TIMES) f32
    bias = bias_ref[...]                                   # (F3, N_BIAS_COLS)

    def elu(v):
        # exact ELU(alpha=1); plain exp keeps the known-good Mosaic lowering
        # (expm1 would only improve accuracy by ~1 ulp near zero).
        return jnp.where(v > 0.0, v, jnp.exp(v) - 1.0)

    def sigmoid(v):
        return 1.0 / (1.0 + jnp.exp(-v))

    # ---- Block 1: Conv2d(1,32,(1,64),pad 32) -> BN(32)
    #               -> Conv2d(32,64,(C,1),groups=32) -> BN(64)   (all folded) --
    # temporal conv as one MXU matmul against a host-built time-Toeplitz weight
    u = jnp.dot(x, w1toep_ref[...], preferred_element_type=f32)     # (N_CH, F1*W0)
    # rearrange (c, f, t) -> (f*N_CH + c, t): 32 static (8, W0) sub-tile copies
    for f in range(F1):
        tcol_ref[f * N_CH:(f + 1) * N_CH, :] = u[:, f * W0:(f + 1) * W0]
    # grouped spatial conv (+ BN1 + BN2) as one block-diagonal MXU matmul
    z = jnp.dot(w2blk_ref[...], tcol_ref[...],
                preferred_element_type=f32) + bias[:F2, 0:1]        # (F2, W0)

    # ---- ChannelAttention(64, reduction=8): one MLP eval on [avg | max] ----
    avg_v = jnp.mean(z, axis=1, keepdims=True)                      # (F2, 1)
    max_v = jnp.max(z, axis=1, keepdims=True)                       # (F2, 1)
    vm = jnp.concatenate([avg_v, max_v], axis=1)                    # (F2, 2)
    h = jnp.maximum(
        jnp.dot(aw1_ref[...], vm, preferred_element_type=f32)
        + bias[:ATT_HID, 1:2], 0.0)                                 # (ATT_HID, 2)
    s = sigmoid(jnp.dot(aw2_ref[...], h, preferred_element_type=f32)
                + bias[:F2, 2:3])                                   # (F2, 2)
    # torch ChannelAttention applies sigmoid inside the MLP *and* on the sum
    att = sigmoid(s[:, 0:1] + s[:, 1:2])                            # (F2, 1)

    # ---- ELU -> AvgPool2d((1,4)) (pool matrix precomputed on host) ----
    z = elu(z * att)
    z = jnp.dot(z, pool4_ref[...], preferred_element_type=f32)      # (F2, W1)

    # ---- Block 2: depthwise Conv2d(64,64,(1,16),g=64,pad 8) ----
    # per-channel filters have no exact single-matmul form; keep a short
    # 16-tap unrolled slice-FMA chain on a 1-vreg-wide operand.
    zp = jnp.concatenate(
        [jnp.zeros((F2, P3), f32), z, jnp.zeros((F2, P3), f32)], axis=1)
    w3 = w3_ref[...]
    acc = jnp.zeros((F2, W2), f32)
    for k in range(K3):
        acc = acc + w3[:, k:k + 1] * zp[:, k:k + W2]                # (F2, W2)

    # 1x1 conv (BN3 scale folded into its rows) + shift, ELU, AvgPool((1,8))
    z = jnp.dot(w4eff_ref[...], acc, preferred_element_type=f32) + bias[:, 3:4]
    z = elu(z)                                                      # (F3, W2)
    main = jnp.dot(z, pool8_ref[...], preferred_element_type=f32)   # (F3, WF)

    # ---- Residual path (fully folded): Wr_eff @ (x @ pool32) + b_eff ----
    xp = jnp.dot(x, pool32_ref[...], preferred_element_type=f32)    # (N_CH, WF)
    res = jnp.dot(wr_ref[...], xp, preferred_element_type=f32) + bias[:, 4:5]

    comb = main + res                                               # (F3, WF)

    # ---- flatten (channel-major, like torch .view) + Linear(256, n_classes) --
    logits = bias[:N_CLASSES, 5:6]                                  # (N_CLASSES, 1)
    for w in range(WF):
        logits = logits + jnp.dot(wfc_ref[w], comb[:, w:w + 1],
                                  preferred_element_type=f32)
    o_ref[...] = logits[None].astype(o_ref.dtype)                   # (1, NC, 1)


# ------------------------------ host wrapper -------------------------------
def _const_index(nd):
    return lambda i, _nd=nd: (0,) * _nd


def enhanced_eegnet_forward(x_nchw, params):
    b = x_nchw.shape[0]
    x = x_nchw[:, 0, :, :].astype(jnp.float32)            # (B, N_CH, N_TIMES)

    weight_specs = [pl.BlockSpec(p.shape, _const_index(p.ndim)) for p in params]

    out = pl.pallas_call(
        eegnet_kernel,
        out_shape=jax.ShapeDtypeStruct((b, N_CLASSES, 1), jnp.float32),
        grid_spec=pltpu.PrefetchScalarGridSpec(
            num_scalar_prefetch=0,
            grid=(b,),
            in_specs=[pl.BlockSpec((1, N_CH, N_TIMES), lambda i: (i, 0, 0))]
                     + weight_specs,
            out_specs=pl.BlockSpec((1, N_CLASSES, 1), lambda i: (i, 0, 0)),
            scratch_shapes=[pltpu.VMEM((F1 * N_CH, W0), jnp.float32)],
        ),
        # samples are independent -> lets v7x shard the batch over both cores
        compiler_params=pltpu.CompilerParams(dimension_semantics=("parallel",)),
    )(x, *params)
    return out[:, :, 0]                                    # (B, N_CLASSES)


# --------------------------- parameter creation -----------------------------
def init_params(key):
    """Random torch-layout parameters, folded into the fused-kernel layout."""
    ks = list(jax.random.split(key, 16))

    def rnd(k, shape, scale=0.1):
        return scale * jax.random.normal(k, shape, dtype=jnp.float32)

    def bn_affine(k, c):
        k1, k2, k3, k4 = jax.random.split(k, 4)
        gamma = 1.0 + 0.1 * jax.random.normal(k1, (c,), jnp.float32)
        beta = 0.1 * jax.random.normal(k2, (c,), jnp.float32)
        mean = 0.1 * jax.random.normal(k3, (c,), jnp.float32)
        var = 1.0 + 0.1 * jnp.abs(jax.random.normal(k4, (c,), jnp.float32))
        scale = gamma / jnp.sqrt(var + BN_EPS)
        shift = beta - mean * scale
        return scale, shift

    # raw (torch-layout) parameters
    w1 = rnd(ks[0], (F1, K1))                # Conv2d(1, 32, (1, 64))
    w2 = rnd(ks[1], (F2, N_CH))              # Conv2d(32, 64, (C, 1), groups=32)
    s1, h1 = bn_affine(ks[2], F1)            # BatchNorm2d(32)
    s2, h2 = bn_affine(ks[3], F2)            # BatchNorm2d(64)
    aw1 = rnd(ks[4], (ATT_HID, F2))          # attention Linear(64, 8)
    ab1 = rnd(ks[5], (ATT_HID,))
    aw2 = rnd(ks[6], (F2, ATT_HID))          # attention Linear(8, 64)
    ab2 = rnd(ks[7], (F2,))
    w3 = rnd(ks[8], (F2, K3))                # Conv2d(64, 64, (1, 16), groups=64)
    w4 = rnd(ks[9], (F3, F2))                # Conv2d(64, 128, 1)
    s3, h3 = bn_affine(ks[10], F3)           # BatchNorm2d(128)
    wr = rnd(ks[11], (F3, N_CH))             # residual Conv2d(1, 128, (C, 1))
    br = rnd(ks[12], (F3,))
    sr, hr = bn_affine(ks[13], F3)           # residual BatchNorm2d(128)
    wfc = rnd(ks[14], (N_CLASSES, FC_IN))    # Linear(256, n_classes)
    bfc = rnd(ks[15], (N_CLASSES,))

    # (1) temporal conv as a time-Toeplitz matmul weight:  U = x @ w1toep
    #     w1toep[tau, f*W0 + t] = w1[f, tau - t + P1]  (zero outside the kernel)
    kk = jnp.arange(N_TIMES)[:, None] - jnp.arange(W0)[None, :] + P1      # (T, W0)
    valid = ((kk >= 0) & (kk < K1)).astype(jnp.float32)
    toep = w1[:, jnp.clip(kk, 0, K1 - 1)] * valid[None, :, :]             # (F1, T, W0)
    w1toep = toep.transpose(1, 0, 2).reshape(N_TIMES, F1 * W0)            # (T, F1*W0)

    # (2) grouped spatial conv with BN1 + BN2 folded, as a block-diag matmul
    s1r, h1r = jnp.repeat(s1, 2), jnp.repeat(h1, 2)                       # per out-chan
    w2s = (s2 * s1r)[:, None] * w2                                        # (F2, N_CH)
    w2blk = jnp.zeros((F2, F1, N_CH), jnp.float32)
    w2blk = w2blk.at[jnp.arange(F2), jnp.arange(F2) // 2, :].set(w2s)
    w2blk = w2blk.reshape(F2, F1 * N_CH)                                  # (F2, F1*N_CH)
    b1eff = s2 * h1r * jnp.sum(w2, axis=1) + h2                           # (F2,)

    # (3) block 2: BN3 scale folded into the 1x1 conv weight (bias h3 kept)
    w4eff = s3[:, None] * w4                                              # (F3, F2)

    # (4) residual path fully folded:  Wr_eff @ (x @ pool32) + br_eff
    wr_eff = sr[:, None] * wr                                             # (F3, N_CH)
    br_eff = sr * br + hr                                                 # (F3,)

    # (5) average-pool matrices (hoisted out of the kernel)
    def pool_mat(in_w, out_w, win):
        r = jnp.arange(in_w)[:, None]
        c = jnp.arange(out_w)[None, :]
        return jnp.where(r // win == c, 1.0 / win, 0.0).astype(jnp.float32)

    pool4 = pool_mat(W0, W1, 4)                 # (65, 16), trailing row zero
    pool8 = pool_mat(W2, WF, 8)                 # (17, 2),  trailing row zero
    pool32 = pool_mat(N_TIMES, WF, 32)          # (64, 2)   AvgPool4 ∘ AvgPool8

    # (6) FC rearranged for per-column dots: wfc_r[w, n, p] = wfc[n, p*WF + w]
    wfc_r = wfc.reshape(N_CLASSES, F3, WF).transpose(2, 0, 1)             # (WF, NC, F3)

    # (7) pack all per-channel bias columns into one (F3, 8) slab
    biases = jnp.zeros((F3, N_BIAS_COLS), jnp.float32)
    biases = biases.at[:F2, 0].set(b1eff)
    biases = biases.at[:ATT_HID, 1].set(ab1)
    biases = biases.at[:F2, 2].set(ab2)
    biases = biases.at[:, 3].set(h3)
    biases = biases.at[:, 4].set(br_eff)
    biases = biases.at[:N_CLASSES, 5].set(bfc)

    return (w1toep, w2blk, aw1, aw2, pool4, w3, w4eff, pool8,
            pool32, wr_eff, wfc_r, biases)


# ----------------------------------- main -----------------------------------
if __name__ == "__main__":
    key = jax.random.PRNGKey(0)
    kx, kp = jax.random.split(key)
    x_nchw = jax.random.normal(kx, (BATCH, 1, N_CH, N_TIMES), dtype=jnp.float32)
    params = init_params(kp)

    logits = jax.jit(enhanced_eegnet_forward)(x_nchw, params)
    logits = jax.block_until_ready(logits)

    assert logits.shape == (BATCH, N_CLASSES)
    assert bool(jnp.all(jnp.isfinite(logits)))
    print("KERNEL_OK")
</pallas_src>

<mosaic_0001>
module attributes {stable_mosaic.version = 11 : i64} {
  func.func @eegnet_kernel(%arg0: i32, %arg1: memref<1x8x64xf32, #tpu.memory_space<vmem>>, %arg2: memref<64x2080xf32, #tpu.memory_space<vmem>>, %arg3: memref<64x256xf32, #tpu.memory_space<vmem>>, %arg4: memref<8x64xf32, #tpu.memory_space<vmem>>, %arg5: memref<64x8xf32, #tpu.memory_space<vmem>>, %arg6: memref<65x16xf32, #tpu.memory_space<vmem>>, %arg7: memref<64x16xf32, #tpu.memory_space<vmem>>, %arg8: memref<128x64xf32, #tpu.memory_space<vmem>>, %arg9: memref<17x2xf32, #tpu.memory_space<vmem>>, %arg10: memref<64x2xf32, #tpu.memory_space<vmem>>, %arg11: memref<128x8xf32, #tpu.memory_space<vmem>>, %arg12: memref<2x4x128xf32, #tpu.memory_space<vmem>>, %arg13: memref<128x8xf32, #tpu.memory_space<vmem>>, %arg14: memref<1x4x1xf32, #tpu.memory_space<vmem>>, %arg15: memref<256x65xf32, #tpu.memory_space<vmem>>) attributes {dimension_semantics = [#tpu.dimension_semantics<parallel>], iteration_bounds = array<i64: 2>, scalar_prefetch = 0 : i64, scratch_operands = 1 : i64, tpu.core_type = #tpu.core_type<tc>, window_params = [{transform_indices = @transform_0, window_bounds = array<i64: 1, 8, 64>}, {pipeline_mode = #tpu.pipeline_mode<synchronous>, transform_indices = @transform_1, window_bounds = array<i64: 64, 2080>}, {pipeline_mode = #tpu.pipeline_mode<synchronous>, transform_indices = @transform_2, window_bounds = array<i64: 64, 256>}, {pipeline_mode = #tpu.pipeline_mode<synchronous>, transform_indices = @transform_3, window_bounds = array<i64: 8, 64>}, {pipeline_mode = #tpu.pipeline_mode<synchronous>, transform_indices = @transform_4, window_bounds = array<i64: 64, 8>}, {pipeline_mode = #tpu.pipeline_mode<synchronous>, transform_indices = @transform_5, window_bounds = array<i64: 65, 16>}, {pipeline_mode = #tpu.pipeline_mode<synchronous>, transform_indices = @transform_6, window_bounds = array<i64: 64, 16>}, {pipeline_mode = #tpu.pipeline_mode<synchronous>, transform_indices = @transform_7, window_bounds = array<i64: 128, 64>}, {pipeline_mode = #tpu.pipeline_mode<synchronous>, transform_indices = @transform_8, window_bounds = array<i64: 17, 2>}, {pipeline_mode = #tpu.pipeline_mode<synchronous>, transform_indices = @transform_9, window_bounds = array<i64: 64, 2>}, {pipeline_mode = #tpu.pipeline_mode<synchronous>, transform_indices = @transform_10, window_bounds = array<i64: 128, 8>}, {pipeline_mode = #tpu.pipeline_mode<synchronous>, transform_indices = @transform_11, window_bounds = array<i64: 2, 4, 128>}, {pipeline_mode = #tpu.pipeline_mode<synchronous>, transform_indices = @transform_12, window_bounds = array<i64: 128, 8>}, {transform_indices = @transform_13, window_bounds = array<i64: 1, 4, 1>}]} {
    %c0 = arith.constant 0 : index
    %c0_0 = arith.constant 0 : index
    %c0_1 = arith.constant 0 : index
    %0 = vector.load %arg1[%c0, %c0_0, %c0_1] : memref<1x8x64xf32, #tpu.memory_space<vmem>>, vector<1x8x64xf32>
    %1 = vector.shape_cast %0 : vector<1x8x64xf32> to vector<8x64xf32>
    %c0_2 = arith.constant 0 : index
    %c0_3 = arith.constant 0 : index
    %2 = vector.load %arg13[%c0_2, %c0_3] : memref<128x8xf32, #tpu.memory_space<vmem>>, vector<128x8xf32>
    %c0_4 = arith.constant 0 : index
    %c0_5 = arith.constant 0 : index
    %3 = vector.load %arg2[%c0_4, %c0_5] : memref<64x2080xf32, #tpu.memory_space<vmem>>, vector<64x2080xf32>
    %cst = arith.constant dense<0.000000e+00> : vector<8x2080xf32>
    %4 = tpu.matmul %1, %3, %cst {dimension_numbers = #tpu.dot_dimension_numbers<[1], [0], [0], [1], [0, 0, 1, 1], [], []>} : vector<8x64xf32>, vector<64x2080xf32>, vector<8x2080xf32> -> vector<8x2080xf32>
    %5 = vector.extract_strided_slice %4 {offsets = [0, 0], sizes = [8, 65], strides = [1, 1]} : vector<8x2080xf32> to vector<8x65xf32>
    %c0_6 = arith.constant 0 : index
    %c0_7 = arith.constant 0 : index
    %6 = vector.load %arg15[%c0_6, %c0_7] : memref<256x65xf32, #tpu.memory_space<vmem>>, vector<8x65xf32>
    tpu.vector_store %arg15[%c0_6, %c0_7], %5 {strides = array<i32>} : memref<256x65xf32, #tpu.memory_space<vmem>>, vector<8x65xf32>,
    %7 = vector.extract_strided_slice %4 {offsets = [0, 65], sizes = [8, 65], strides = [1, 1]} : vector<8x2080xf32> to vector<8x65xf32>
    %c8 = arith.constant 8 : index
    %c0_8 = arith.constant 0 : index
    %8 = vector.load %arg15[%c8, %c0_8] : memref<256x65xf32, #tpu.memory_space<vmem>>, vector<8x65xf32>
    tpu.vector_store %arg15[%c8, %c0_8], %7 {strides = array<i32>} : memref<256x65xf32, #tpu.memory_space<vmem>>, vector<8x65xf32>,
    %9 = vector.extract_strided_slice %4 {offsets = [0, 130], sizes = [8, 65], strides = [1, 1]} : vector<8x2080xf32> to vector<8x65xf32>
    %c16 = arith.constant 16 : index
    %c0_9 = arith.constant 0 : index
    %10 = vector.load %arg15[%c16, %c0_9] : memref<256x65xf32, #tpu.memory_space<vmem>>, vector<8x65xf32>
    tpu.vector_store %arg15[%c16, %c0_9], %9 {strides = array<i32>} : memref<256x65xf32, #tpu.memory_space<vmem>>, vector<8x65xf32>,
    %11 = vector.extract_strided_slice %4 {offsets = [0, 195], sizes = [8, 65], strides = [1, 1]} : vector<8x2080xf32> to vector<8x65xf32>
    %c24 = arith.constant 24 : index
    %c0_10 = arith.constant 0 : index
    %12 = vector.load %arg15[%c24, %c0_10] : memref<256x65xf32, #tpu.memory_space<vmem>>, vector<8x65xf32>
    tpu.vector_store %arg15[%c24, %c0_10], %11 {strides = array<i32>} : memref<256x65xf32, #tpu.memory_space<vmem>>, vector<8x65xf32>,
    %13 = vector.extract_strided_slice %4 {offsets = [0, 260], sizes = [8, 65], strides = [1, 1]} : vector<8x2080xf32> to vector<8x65xf32>
    %c32 = arith.constant 32 : index
    %c0_11 = arith.constant 0 : index
    %14 = vector.load %arg15[%c32, %c0_11] : memref<256x65xf32, #tpu.memory_space<vmem>>, vector<8x65xf32>
    tpu.vector_store %arg15[%c32, %c0_11], %13 {strides = array<i32>} : memref<256x65xf32, #tpu.memory_space<vmem>>, vector<8x65xf32>,
    %15 = vector.extract_strided_slice %4 {offsets = [0, 325], sizes = [8, 65], strides = [1, 1]} : vector<8x2080xf32> to vector<8x65xf32>
    %c40 = arith.constant 40 : index
    %c0_12 = arith.constant 0 : index
    %16 = vector.load %arg15[%c40, %c0_12] : memref<256x65xf32, #tpu.memory_space<vmem>>, vector<8x65xf32>
    tpu.vector_store %arg15[%c40, %c0_12], %15 {strides = array<i32>} : memref<256x65xf32, #tpu.memory_space<vmem>>, vector<8x65xf32>,
    %17 = vector.extract_strided_slice %4 {offsets = [0, 390], sizes = [8, 65], strides = [1, 1]} : vector<8x2080xf32> to vector<8x65xf32>
    %c48 = arith.constant 48 : index
    %c0_13 = arith.constant 0 : index
    %18 = vector.load %arg15[%c48, %c0_13] : memref<256x65xf32, #tpu.memory_space<vmem>>, vector<8x65xf32>
    tpu.vector_store %arg15[%c48, %c0_13], %17 {strides = array<i32>} : memref<256x65xf32, #tpu.memory_space<vmem>>, vector<8x65xf32>,
    %19 = vector.extract_strided_slice %4 {offsets = [0, 455], sizes = [8, 65], strides = [1, 1]} : vector<8x2080xf32> to vector<8x65xf32>
    %c56 = arith.constant 56 : index
    %c0_14 = arith.constant 0 : index
    %20 = vector.load %arg15[%c56, %c0_14] : memref<256x65xf32, #tpu.memory_space<vmem>>, vector<8x65xf32>
    tpu.vector_store %arg15[%c56, %c0_14], %19 {strides = array<i32>} : memref<256x65xf32, #tpu.memory_space<vmem>>, vector<8x65xf32>,
    %21 = vector.extract_strided_slice %4 {offsets = [0, 520], sizes = [8, 65], strides = [1, 1]} : vector<8x2080xf32> to vector<8x65xf32>
    %c64 = arith.constant 64 : index
    %c0_15 = arith.constant 0 : index
    %22 = vector.load %arg15[%c64, %c0_15] : memref<256x65xf32, #tpu.memory_space<vmem>>, vector<8x65xf32>
    tpu.vector_store %arg15[%c64, %c0_15], %21 {strides = array<i32>} : memref<256x65xf32, #tpu.memory_space<vmem>>, vector<8x65xf32>,
    %23 = vector.extract_strided_slice %4 {offsets = [0, 585], sizes = [8, 65], strides = [1, 1]} : vector<8x2080xf32> to vector<8x65xf32>
    %c72 = arith.constant 72 : index
    %c0_16 = arith.constant 0 : index
    %24 = vector.load %arg15[%c72, %c0_16] : memref<256x65xf32, #tpu.memory_space<vmem>>, vector<8x65xf32>
    tpu.vector_store %arg15[%c72, %c0_16], %23 {strides = array<i32>} : memref<256x65xf32, #tpu.memory_space<vmem>>, vector<8x65xf32>,
    %25 = vector.extract_strided_slice %4 {offsets = [0, 650], sizes = [8, 65], strides = [1, 1]} : vector<8x2080xf32> to vector<8x65xf32>
    %c80 = arith.constant 80 : index
    %c0_17 = arith.constant 0 : index
    %26 = vector.load %arg15[%c80, %c0_17] : memref<256x65xf32, #tpu.memory_space<vmem>>, vector<8x65xf32>
    tpu.vector_store %arg15[%c80, %c0_17], %25 {strides = array<i32>} : memref<256x65xf32, #tpu.memory_space<vmem>>, vector<8x65xf32>,
    %27 = vector.extract_strided_slice %4 {offsets = [0, 715], sizes = [8, 65], strides = [1, 1]} : vector<8x2080xf32> to vector<8x65xf32>
    %c88 = arith.constant 88 : index
    %c0_18 = arith.constant 0 : index
    %28 = vector.load %arg15[%c88, %c0_18] : memref<256x65xf32, #tpu.memory_space<vmem>>, vector<8x65xf32>
    tpu.vector_store %arg15[%c88, %c0_18], %27 {strides = array<i32>} : memref<256x65xf32, #tpu.memory_space<vmem>>, vector<8x65xf32>,
    %29 = vector.extract_strided_slice %4 {offsets = [0, 780], sizes = [8, 65], strides = [1, 1]} : vector<8x2080xf32> to vector<8x65xf32>
    %c96 = arith.constant 96 : index
    %c0_19 = arith.constant 0 : index
    %30 = vector.load %arg15[%c96, %c0_19] : memref<256x65xf32, #tpu.memory_space<vmem>>, vector<8x65xf32>
    tpu.vector_store %arg15[%c96, %c0_19], %29 {strides = array<i32>} : memref<256x65xf32, #tpu.memory_space<vmem>>, vector<8x65xf32>,
    %31 = vector.extract_strided_slice %4 {offsets = [0, 845], sizes = [8, 65], strides = [1, 1]} : vector<8x2080xf32> to vector<8x65xf32>
    %c104 = arith.constant 104 : index
    %c0_20 = arith.constant 0 : index
    %32 = vector.load %arg15[%c104, %c0_20] : memref<256x65xf32, #tpu.memory_space<vmem>>, vector<8x65xf32>
    tpu.vector_store %arg15[%c104, %c0_20], %31 {strides = array<i32>} : memref<256x65xf32, #tpu.memory_space<vmem>>, vector<8x65xf32>,
    %33 = vector.extract_strided_slice %4 {offsets = [0, 910], sizes = [8, 65], strides = [1, 1]} : vector<8x2080xf32> to vector<8x65xf32>
    %c112 = arith.constant 112 : index
    %c0_21 = arith.constant 0 : index
    %34 = vector.load %arg15[%c112, %c0_21] : memref<256x65xf32, #tpu.memory_space<vmem>>, vector<8x65xf32>
    tpu.vector_store %arg15[%c112, %c0_21], %33 {strides = array<i32>} : memref<256x65xf32, #tpu.memory_space<vmem>>, vector<8x65xf32>,
    %35 = vector.extract_strided_slice %4 {offsets = [0, 975], sizes = [8, 65], strides = [1, 1]} : vector<8x2080xf32> to vector<8x65xf32>
    %c120 = arith.constant 120 : index
    %c0_22 = arith.constant 0 : index
    %36 = vector.load %arg15[%c120, %c0_22] : memref<256x65xf32, #tpu.memory_space<vmem>>, vector<8x65xf32>
    tpu.vector_store %arg15[%c120, %c0_22], %35 {strides = array<i32>} : memref<256x65xf32, #tpu.memory_space<vmem>>, vector<8x65xf32>,
    %37 = vector.extract_strided_slice %4 {offsets = [0, 1040], sizes = [8, 65], strides = [1, 1]} : vector<8x2080xf32> to vector<8x65xf32>
    %c128 = arith.constant 128 : index
    %c0_23 = arith.constant 0 : index
    %38 = vector.load %arg15[%c128, %c0_23] : memref<256x65xf32, #tpu.memory_space<vmem>>, vector<8x65xf32>
    tpu.vector_store %arg15[%c128, %c0_23], %37 {strides = array<i32>} : memref<256x65xf32, #tpu.memory_space<vmem>>, vector<8x65xf32>,
    %39 = vector.extract_strided_slice %4 {offsets = [0, 1105], sizes = [8, 65], strides = [1, 1]} : vector<8x2080xf32> to vector<8x65xf32>
    %c136 = arith.constant 136 : index
    %c0_24 = arith.constant 0 : index
    %40 = vector.load %arg15[%c136, %c0_24] : memref<256x65xf32, #tpu.memory_space<vmem>>, vector<8x65xf32>
    tpu.vector_store %arg15[%c136, %c0_24], %39 {strides = array<i32>} : memref<256x65xf32, #tpu.memory_space<vmem>>, vector<8x65xf32>,
    %41 = vector.extract_strided_slice %4 {offsets = [0, 1170], sizes = [8, 65], strides = [1, 1]} : vector<8x2080xf32> to vector<8x65xf32>
    %c144 = arith.constant 144 : index
    %c0_25 = arith.constant 0 : index
    %42 = vector.load %arg15[%c144, %c0_25] : memref<256x65xf32, #tpu.memory_space<vmem>>, vector<8x65xf32>
    tpu.vector_store %arg15[%c144, %c0_25], %41 {strides = array<i32>} : memref<256x65xf32, #tpu.memory_space<vmem>>, vector<8x65xf32>,
    %43 = vector.extract_strided_slice %4 {offsets = [0, 1235], sizes = [8, 65], strides = [1, 1]} : vector<8x2080xf32> to vector<8x65xf32>
    %c152 = arith.constant 152 : index
    %c0_26 = arith.constant 0 : index
    %44 = vector.load %arg15[%c152, %c0_26] : memref<256x65xf32, #tpu.memory_space<vmem>>, vector<8x65xf32>
    tpu.vector_store %arg15[%c152, %c0_26], %43 {strides = array<i32>} : memref<256x65xf32, #tpu.memory_space<vmem>>, vector<8x65xf32>,
    %45 = vector.extract_strided_slice %4 {offsets = [0, 1300], sizes = [8, 65], strides = [1, 1]} : vector<8x2080xf32> to vector<8x65xf32>
    %c160 = arith.constant 160 : index
    %c0_27 = arith.constant 0 : index
    %46 = vector.load %arg15[%c160, %c0_27] : memref<256x65xf32, #tpu.memory_space<vmem>>, vector<8x65xf32>
    tpu.vector_store %arg15[%c160, %c0_27], %45 {strides = array<i32>} : memref<256x65xf32, #tpu.memory_space<vmem>>, vector<8x65xf32>,
    %47 = vector.extract_strided_slice %4 {offsets = [0, 1365], sizes = [8, 65], strides = [1, 1]} : vector<8x2080xf32> to vector<8x65xf32>
    %c168 = arith.constant 168 : index
    %c0_28 = arith.constant 0 : index
    %48 = vector.load %arg15[%c168, %c0_28] : memref<256x65xf32, #tpu.memory_space<vmem>>, vector<8x65xf32>
    tpu.vector_store %arg15[%c168, %c0_28], %47 {strides = array<i32>} : memref<256x65xf32, #tpu.memory_space<vmem>>, vector<8x65xf32>,
    %49 = vector.extract_strided_slice %4 {offsets = [0, 1430], sizes = [8, 65], strides = [1, 1]} : vector<8x2080xf32> to vector<8x65xf32>
    %c176 = arith.constant 176 : index
    %c0_29 = arith.constant 0 : index
    %50 = vector.load %arg15[%c176, %c0_29] : memref<256x65xf32, #tpu.memory_space<vmem>>, vector<8x65xf32>
    tpu.vector_store %arg15[%c176, %c0_29], %49 {strides = array<i32>} : memref<256x65xf32, #tpu.memory_space<vmem>>, vector<8x65xf32>,
    %51 = vector.extract_strided_slice %4 {offsets = [0, 1495], sizes = [8, 65], strides = [1, 1]} : vector<8x2080xf32> to vector<8x65xf32>
    %c184 = arith.constant 184 : index
    %c0_30 = arith.constant 0 : index
    %52 = vector.load %arg15[%c184, %c0_30] : memref<256x65xf32, #tpu.memory_space<vmem>>, vector<8x65xf32>
    tpu.vector_store %arg15[%c184, %c0_30], %51 {strides = array<i32>} : memref<256x65xf32, #tpu.memory_space<vmem>>, vector<8x65xf32>,
    %53 = vector.extract_strided_slice %4 {offsets = [0, 1560], sizes = [8, 65], strides = [1, 1]} : vector<8x2080xf32> to vector<8x65xf32>
    %c192 = arith.constant 192 : index
    %c0_31 = arith.constant 0 : index
    %54 = vector.load %arg15[%c192, %c0_31] : memref<256x65xf32, #tpu.memory_space<vmem>>, vector<8x65xf32>
    tpu.vector_store %arg15[%c192, %c0_31], %53 {strides = array<i32>} : memref<256x65xf32, #tpu.memory_space<vmem>>, vector<8x65xf32>,
    %55 = vector.extract_strided_slice %4 {offsets = [0, 1625], sizes = [8, 65], strides = [1, 1]} : vector<8x2080xf32> to vector<8x65xf32>
    %c200 = arith.constant 200 : index
    %c0_32 = arith.constant 0 : index
    %56 = vector.load %arg15[%c200, %c0_32] : memref<256x65xf32, #tpu.memory_space<vmem>>, vector<8x65xf32>
    tpu.vector_store %arg15[%c200, %c0_32], %55 {strides = array<i32>} : memref<256x65xf32, #tpu.memory_space<vmem>>, vector<8x65xf32>,
    %57 = vector.extract_strided_slice %4 {offsets = [0, 1690], sizes = [8, 65], strides = [1, 1]} : vector<8x2080xf32> to vector<8x65xf32>
    %c208 = arith.constant 208 : index
    %c0_33 = arith.constant 0 : index
    %58 = vector.load %arg15[%c208, %c0_33] : memref<256x65xf32, #tpu.memory_space<vmem>>, vector<8x65xf32>
    tpu.vector_store %arg15[%c208, %c0_33], %57 {strides = array<i32>} : memref<256x65xf32, #tpu.memory_space<vmem>>, vector<8x65xf32>,
    %59 = vector.extract_strided_slice %4 {offsets = [0, 1755], sizes = [8, 65], strides = [1, 1]} : vector<8x2080xf32> to vector<8x65xf32>
    %c216 = arith.constant 216 : index
    %c0_34 = arith.constant 0 : index
    %60 = vector.load %arg15[%c216, %c0_34] : memref<256x65xf32, #tpu.memory_space<vmem>>, vector<8x65xf32>
    tpu.vector_store %arg15[%c216, %c0_34], %59 {strides = array<i32>} : memref<256x65xf32, #tpu.memory_space<vmem>>, vector<8x65xf32>,
    %61 = vector.extract_strided_slice %4 {offsets = [0, 1820], sizes = [8, 65], strides = [1, 1]} : vector<8x2080xf32> to vector<8x65xf32>
    %c224 = arith.constant 224 : index
    %c0_35 = arith.constant 0 : index
    %62 = vector.load %arg15[%c224, %c0_35] : memref<256x65xf32, #tpu.memory_space<vmem>>, vector<8x65xf32>
    tpu.vector_store %arg15[%c224, %c0_35], %61 {strides = array<i32>} : memref<256x65xf32, #tpu.memory_space<vmem>>, vector<8x65xf32>,
    %63 = vector.extract_strided_slice %4 {offsets = [0, 1885], sizes = [8, 65], strides = [1, 1]} : vector<8x2080xf32> to vector<8x65xf32>
    %c232 = arith.constant 232 : index
    %c0_36 = arith.constant 0 : index
    %64 = vector.load %arg15[%c232, %c0_36] : memref<256x65xf32, #tpu.memory_space<vmem>>, vector<8x65xf32>
    tpu.vector_store %arg15[%c232, %c0_36], %63 {strides = array<i32>} : memref<256x65xf32, #tpu.memory_space<vmem>>, vector<8x65xf32>,
    %65 = vector.extract_strided_slice %4 {offsets = [0, 1950], sizes = [8, 65], strides = [1, 1]} : vector<8x2080xf32> to vector<8x65xf32>
    %c240 = arith.constant 240 : index
    %c0_37 = arith.constant 0 : index
    %66 = vector.load %arg15[%c240, %c0_37] : memref<256x65xf32, #tpu.memory_space<vmem>>, vector<8x65xf32>
    tpu.vector_store %arg15[%c240, %c0_37], %65 {strides = array<i32>} : memref<256x65xf32, #tpu.memory_space<vmem>>, vector<8x65xf32>,
    %67 = vector.extract_strided_slice %4 {offsets = [0, 2015], sizes = [8, 65], strides = [1, 1]} : vector<8x2080xf32> to vector<8x65xf32>
    %c248 = arith.constant 248 : index
    %c0_38 = arith.constant 0 : index
    %68 = vector.load %arg15[%c248, %c0_38] : memref<256x65xf32, #tpu.memory_space<vmem>>, vector<8x65xf32>
    tpu.vector_store %arg15[%c248, %c0_38], %67 {strides = array<i32>} : memref<256x65xf32, #tpu.memory_space<vmem>>, vector<8x65xf32>,
    %c0_39 = arith.constant 0 : index
    %c0_40 = arith.constant 0 : index
    %69 = vector.load %arg3[%c0_39, %c0_40] : memref<64x256xf32, #tpu.memory_space<vmem>>, vector<64x256xf32>
    %c0_41 = arith.constant 0 : index
    %c0_42 = arith.constant 0 : index
    %70 = vector.load %arg15[%c0_41, %c0_42] : memref<256x65xf32, #tpu.memory_space<vmem>>, vector<256x65xf32>
    %cst_43 = arith.constant dense<0.000000e+00> : vector<64x65xf32>
    %71 = tpu.matmul %69, %70, %cst_43 {dimension_numbers = #tpu.dot_dimension_numbers<[1], [0], [0], [1], [0, 0, 1, 1], [], []>} : vector<64x256xf32>, vector<256x65xf32>, vector<64x65xf32> -> vector<64x65xf32>
    %72 = vector.extract_strided_slice %2 {offsets = [0, 0], sizes = [64, 1], strides = [1, 1]} : vector<128x8xf32> to vector<64x1xf32>
    %73 = vector.broadcast %72 : vector<64x1xf32> to vector<64x65xf32>
    %74 = arith.addf %71, %73 : vector<64x65xf32>
    %cst_44 = arith.constant dense<0.000000e+00> : vector<64xf32>
    %75 = vector.multi_reduction <add>, %74, %cst_44 [1] : vector<64x65xf32> to vector<64xf32>
    %76 = vector.shape_cast %75 : vector<64xf32> to vector<64x1xf32>
    %cst_45 = arith.constant 6.500000e+01 : f32
    %77 = vector.broadcast %cst_45 : f32 to vector<64x1xf32>
    %78 = arith.divf %76, %77 : vector<64x1xf32>
    %cst_46 = arith.constant dense<0xFF800000> : vector<64xf32>
    %79 = vector.multi_reduction <maximumf>, %74, %cst_46 [1] : vector<64x65xf32> to vector<64xf32>
    %80 = vector.shape_cast %79 : vector<64xf32> to vector<64x1xf32>
    %81 = tpu.concatenate %78, %80 in 1 : vector<64x1xf32>, vector<64x1xf32> -> vector<64x2xf32>
    %c0_47 = arith.constant 0 : index
    %c0_48 = arith.constant 0 : index
    %82 = vector.load %arg4[%c0_47, %c0_48] : memref<8x64xf32, #tpu.memory_space<vmem>>, vector<8x64xf32>
    %cst_49 = arith.constant dense<0.000000e+00> : vector<8x2xf32>
    %83 = tpu.matmul %82, %81, %cst_49 {dimension_numbers = #tpu.dot_dimension_numbers<[1], [0], [0], [1], [0, 0, 1, 1], [], []>} : vector<8x64xf32>, vector<64x2xf32>, vector<8x2xf32> -> vector<8x2xf32>
    %84 = vector.extract_strided_slice %2 {offsets = [0, 1], sizes = [8, 1], strides = [1, 1]} : vector<128x8xf32> to vector<8x1xf32>
    %85 = vector.broadcast %84 : vector<8x1xf32> to vector<8x2xf32>
    %86 = arith.addf %83, %85 : vector<8x2xf32>
    %cst_50 = arith.constant 0.000000e+00 : f32
    %87 = vector.broadcast %cst_50 : f32 to vector<8x2xf32>
    %88 = arith.maximumf %86, %87 : vector<8x2xf32>
    %c0_51 = arith.constant 0 : index
    %c0_52 = arith.constant 0 : index
    %89 = vector.load %arg5[%c0_51, %c0_52] : memref<64x8xf32, #tpu.memory_space<vmem>>, vector<64x8xf32>
    %cst_53 = arith.constant dense<0.000000e+00> : vector<64x2xf32>
    %90 = tpu.matmul %89, %88, %cst_53 {dimension_numbers = #tpu.dot_dimension_numbers<[1], [0], [0], [1], [0, 0, 1, 1], [], []>} : vector<64x8xf32>, vector<8x2xf32>, vector<64x2xf32> -> vector<64x2xf32>
    %91 = vector.extract_strided_slice %2 {offsets = [0, 2], sizes = [64, 1], strides = [1, 1]} : vector<128x8xf32> to vector<64x1xf32>
    %92 = vector.broadcast %91 : vector<64x1xf32> to vector<64x2xf32>
    %93 = arith.addf %90, %92 : vector<64x2xf32>
    %cst_54 = arith.constant 0.000000e+00 : f32
    %94 = vector.broadcast %cst_54 : f32 to vector<64x2xf32>
    %95 = arith.subf %94, %93 : vector<64x2xf32>
    %96 = math.exp %95 : vector<64x2xf32>
    %cst_55 = arith.constant 1.000000e+00 : f32
    %97 = vector.broadcast %cst_55 : f32 to vector<64x2xf32>
    %98 = arith.addf %97, %96 : vector<64x2xf32>
    %cst_56 = arith.constant 1.000000e+00 : f32
    %99 = vector.broadcast %cst_56 : f32 to vector<64x2xf32>
    %100 = arith.divf %99, %98 : vector<64x2xf32>
    %101 = vector.extract_strided_slice %100 {offsets = [0, 0], sizes = [64, 1], strides = [1, 1]} : vector<64x2xf32> to vector<64x1xf32>
    %102 = vector.extract_strided_slice %100 {offsets = [0, 1], sizes = [64, 1], strides = [1, 1]} : vector<64x2xf32> to vector<64x1xf32>
    %103 = arith.addf %101, %102 : vector<64x1xf32>
    %cst_57 = arith.constant 0.000000e+00 : f32
    %104 = vector.broadcast %cst_57 : f32 to vector<64x1xf32>
    %105 = arith.subf %104, %103 : vector<64x1xf32>
    %106 = math.exp %105 : vector<64x1xf32>
    %cst_58 = arith.constant 1.000000e+00 : f32
    %107 = vector.broadcast %cst_58 : f32 to vector<64x1xf32>
    %108 = arith.addf %107, %106 : vector<64x1xf32>
    %cst_59 = arith.constant 1.000000e+00 : f32
    %109 = vector.broadcast %cst_59 : f32 to vector<64x1xf32>
    %110 = arith.divf %109, %108 : vector<64x1xf32>
    %111 = vector.broadcast %110 : vector<64x1xf32> to vector<64x65xf32>
    %112 = arith.mulf %74, %111 : vector<64x65xf32>
    %cst_60 = arith.constant 0.000000e+00 : f32
    %113 = vector.broadcast %cst_60 : f32 to vector<64x65xf32>
    %114 = arith.cmpf ogt, %112, %113 : vector<64x65xf32>
    %115 = math.exp %112 : vector<64x65xf32>
    %cst_61 = arith.constant 1.000000e+00 : f32
    %116 = vector.broadcast %cst_61 : f32 to vector<64x65xf32>
    %117 = arith.subf %115, %116 : vector<64x65xf32>
    %118 = arith.select %114, %112, %117 : vector<64x65xi1>, vector<64x65xf32>
    %c0_62 = arith.constant 0 : index
    %c0_63 = arith.constant 0 : index
    %119 = vector.load %arg6[%c0_62, %c0_63] : memref<65x16xf32, #tpu.memory_space<vmem>>, vector<65x16xf32>
    %cst_64 = arith.constant dense<0.000000e+00> : vector<64x16xf32>
    %120 = tpu.matmul %118, %119, %cst_64 {dimension_numbers = #tpu.dot_dimension_numbers<[1], [0], [0], [1], [0, 0, 1, 1], [], []>} : vector<64x65xf32>, vector<65x16xf32>, vector<64x16xf32> -> vector<64x16xf32>
    %cst_65 = arith.constant 0.000000e+00 : f32
    %121 = vector.broadcast %cst_65 : f32 to vector<64x8xf32>
    %cst_66 = arith.constant 0.000000e+00 : f32
    %122 = vector.broadcast %cst_66 : f32 to vector<64x8xf32>
    %123 = tpu.concatenate %121, %120, %122 in 1 : vector<64x8xf32>, vector<64x16xf32>, vector<64x8xf32> -> vector<64x32xf32>
    %c0_67 = arith.constant 0 : index
    %c0_68 = arith.constant 0 : index
    %124 = vector.load %arg7[%c0_67, %c0_68] : memref<64x16xf32, #tpu.memory_space<vmem>>, vector<64x16xf32>
    %cst_69 = arith.constant 0.000000e+00 : f32
    %125 = vector.broadcast %cst_69 : f32 to vector<64x17xf32>
    %126 = vector.extract_strided_slice %124 {offsets = [0, 0], sizes = [64, 1], strides = [1, 1]} : vector<64x16xf32> to vector<64x1xf32>
    %127 = vector.extract_strided_slice %123 {offsets = [0, 0], sizes = [64, 17], strides = [1, 1]} : vector<64x32xf32> to vector<64x17xf32>
    %128 = vector.broadcast %126 : vector<64x1xf32> to vector<64x17xf32>
    %129 = arith.mulf %128, %127 : vector<64x17xf32>
    %130 = arith.addf %125, %129 : vector<64x17xf32>
    %131 = vector.extract_strided_slice %124 {offsets = [0, 1], sizes = [64, 1], strides = [1, 1]} : vector<64x16xf32> to vector<64x1xf32>
    %132 = vector.extract_strided_slice %123 {offsets = [0, 1], sizes = [64, 17], strides = [1, 1]} : vector<64x32xf32> to vector<64x17xf32>
    %133 = vector.broadcast %131 : vector<64x1xf32> to vector<64x17xf32>
    %134 = arith.mulf %133, %132 : vector<64x17xf32>
    %135 = arith.addf %130, %134 : vector<64x17xf32>
    %136 = vector.extract_strided_slice %124 {offsets = [0, 2], sizes = [64, 1], strides = [1, 1]} : vector<64x16xf32> to vector<64x1xf32>
    %137 = vector.extract_strided_slice %123 {offsets = [0, 2], sizes = [64, 17], strides = [1, 1]} : vector<64x32xf32> to vector<64x17xf32>
    %138 = vector.broadcast %136 : vector<64x1xf32> to vector<64x17xf32>
    %139 = arith.mulf %138, %137 : vector<64x17xf32>
    %140 = arith.addf %135, %139 : vector<64x17xf32>
    %141 = vector.extract_strided_slice %124 {offsets = [0, 3], sizes = [64, 1], strides = [1, 1]} : vector<64x16xf32> to vector<64x1xf32>
    %142 = vector.extract_strided_slice %123 {offsets = [0, 3], sizes = [64, 17], strides = [1, 1]} : vector<64x32xf32> to vector<64x17xf32>
    %143 = vector.broadcast %141 : vector<64x1xf32> to vector<64x17xf32>
    %144 = arith.mulf %143, %142 : vector<64x17xf32>
    %145 = arith.addf %140, %144 : vector<64x17xf32>
    %146 = vector.extract_strided_slice %124 {offsets = [0, 4], sizes = [64, 1], strides = [1, 1]} : vector<64x16xf32> to vector<64x1xf32>
    %147 = vector.extract_strided_slice %123 {offsets = [0, 4], sizes = [64, 17], strides = [1, 1]} : vector<64x32xf32> to vector<64x17xf32>
    %148 = vector.broadcast %146 : vector<64x1xf32> to vector<64x17xf32>
    %149 = arith.mulf %148, %147 : vector<64x17xf32>
    %150 = arith.addf %145, %149 : vector<64x17xf32>
    %151 = vector.extract_strided_slice %124 {offsets = [0, 5], sizes = [64, 1], strides = [1, 1]} : vector<64x16xf32> to vector<64x1xf32>
    %152 = vector.extract_strided_slice %123 {offsets = [0, 5], sizes = [64, 17], strides = [1, 1]} : vector<64x32xf32> to vector<64x17xf32>
    %153 = vector.broadcast %151 : vector<64x1xf32> to vector<64x17xf32>
    %154 = arith.mulf %153, %152 : vector<64x17xf32>
    %155 = arith.addf %150, %154 : vector<64x17xf32>
    %156 = vector.extract_strided_slice %124 {offsets = [0, 6], sizes = [64, 1], strides = [1, 1]} : vector<64x16xf32> to vector<64x1xf32>
    %157 = vector.extract_strided_slice %123 {offsets = [0, 6], sizes = [64, 17], strides = [1, 1]} : vector<64x32xf32> to vector<64x17xf32>
    %158 = vector.broadcast %156 : vector<64x1xf32> to vector<64x17xf32>
    %159 = arith.mulf %158, %157 : vector<64x17xf32>
    %160 = arith.addf %155, %159 : vector<64x17xf32>
    %161 = vector.extract_strided_slice %124 {offsets = [0, 7], sizes = [64, 1], strides = [1, 1]} : vector<64x16xf32> to vector<64x1xf32>
    %162 = vector.extract_strided_slice %123 {offsets = [0, 7], sizes = [64, 17], strides = [1, 1]} : vector<64x32xf32> to vector<64x17xf32>
    %163 = vector.broadcast %161 : vector<64x1xf32> to vector<64x17xf32>
    %164 = arith.mulf %163, %162 : vector<64x17xf32>
    %165 = arith.addf %160, %164 : vector<64x17xf32>
    %166 = vector.extract_strided_slice %124 {offsets = [0, 8], sizes = [64, 1], strides = [1, 1]} : vector<64x16xf32> to vector<64x1xf32>
    %167 = vector.extract_strided_slice %123 {offsets = [0, 8], sizes = [64, 17], strides = [1, 1]} : vector<64x32xf32> to vector<64x17xf32>
    %168 = vector.broadcast %166 : vector<64x1xf32> to vector<64x17xf32>
    %169 = arith.mulf %168, %167 : vector<64x17xf32>
    %170 = arith.addf %165, %169 : vector<64x17xf32>
    %171 = vector.extract_strided_slice %124 {offsets = [0, 9], sizes = [64, 1], strides = [1, 1]} : vector<64x16xf32> to vector<64x1xf32>
    %172 = vector.extract_strided_slice %123 {offsets = [0, 9], sizes = [64, 17], strides = [1, 1]} : vector<64x32xf32> to vector<64x17xf32>
    %173 = vector.broadcast %171 : vector<64x1xf32> to vector<64x17xf32>
    %174 = arith.mulf %173, %172 : vector<64x17xf32>
    %175 = arith.addf %170, %174 : vector<64x17xf32>
    %176 = vector.extract_strided_slice %124 {offsets = [0, 10], sizes = [64, 1], strides = [1, 1]} : vector<64x16xf32> to vector<64x1xf32>
    %177 = vector.extract_strided_slice %123 {offsets = [0, 10], sizes = [64, 17], strides = [1, 1]} : vector<64x32xf32> to vector<64x17xf32>
    %178 = vector.broadcast %176 : vector<64x1xf32> to vector<64x17xf32>
    %179 = arith.mulf %178, %177 : vector<64x17xf32>
    %180 = arith.addf %175, %179 : vector<64x17xf32>
    %181 = vector.extract_strided_slice %124 {offsets = [0, 11], sizes = [64, 1], strides = [1, 1]} : vector<64x16xf32> to vector<64x1xf32>
    %182 = vector.extract_strided_slice %123 {offsets = [0, 11], sizes = [64, 17], strides = [1, 1]} : vector<64x32xf32> to vector<64x17xf32>
    %183 = vector.broadcast %181 : vector<64x1xf32> to vector<64x17xf32>
    %184 = arith.mulf %183, %182 : vector<64x17xf32>
    %185 = arith.addf %180, %184 : vector<64x17xf32>
    %186 = vector.extract_strided_slice %124 {offsets = [0, 12], sizes = [64, 1], strides = [1, 1]} : vector<64x16xf32> to vector<64x1xf32>
    %187 = vector.extract_strided_slice %123 {offsets = [0, 12], sizes = [64, 17], strides = [1, 1]} : vector<64x32xf32> to vector<64x17xf32>
    %188 = vector.broadcast %186 : vector<64x1xf32> to vector<64x17xf32>
    %189 = arith.mulf %188, %187 : vector<64x17xf32>
    %190 = arith.addf %185, %189 : vector<64x17xf32>
    %191 = vector.extract_strided_slice %124 {offsets = [0, 13], sizes = [64, 1], strides = [1, 1]} : vector<64x16xf32> to vector<64x1xf32>
    %192 = vector.extract_strided_slice %123 {offsets = [0, 13], sizes = [64, 17], strides = [1, 1]} : vector<64x32xf32> to vector<64x17xf32>
    %193 = vector.broadcast %191 : vector<64x1xf32> to vector<64x17xf32>
    %194 = arith.mulf %193, %192 : vector<64x17xf32>
    %195 = arith.addf %190, %194 : vector<64x17xf32>
    %196 = vector.extract_strided_slice %124 {offsets = [0, 14], sizes = [64, 1], strides = [1, 1]} : vector<64x16xf32> to vector<64x1xf32>
    %197 = vector.extract_strided_slice %123 {offsets = [0, 14], sizes = [64, 17], strides = [1, 1]} : vector<64x32xf32> to vector<64x17xf32>
    %198 = vector.broadcast %196 : vector<64x1xf32> to vector<64x17xf32>
    %199 = arith.mulf %198, %197 : vector<64x17xf32>
    %200 = arith.addf %195, %199 : vector<64x17xf32>
    %201 = vector.extract_strided_slice %124 {offsets = [0, 15], sizes = [64, 1], strides = [1, 1]} : vector<64x16xf32> to vector<64x1xf32>
    %202 = vector.extract_strided_slice %123 {offsets = [0, 15], sizes = [64, 17], strides = [1, 1]} : vector<64x32xf32> to vector<64x17xf32>
    %203 = vector.broadcast %201 : vector<64x1xf32> to vector<64x17xf32>
    %204 = arith.mulf %203, %202 : vector<64x17xf32>
    %205 = arith.addf %200, %204 : vector<64x17xf32>
    %c0_70 = arith.constant 0 : index
    %c0_71 = arith.constant 0 : index
    %206 = vector.load %arg8[%c0_70, %c0_71] : memref<128x64xf32, #tpu.memory_space<vmem>>, vector<128x64xf32>
    %cst_72 = arith.constant dense<0.000000e+00> : vector<128x17xf32>
    %207 = tpu.matmul %206, %205, %cst_72 {dimension_numbers = #tpu.dot_dimension_numbers<[1], [0], [0], [1], [0, 0, 1, 1], [], []>} : vector<128x64xf32>, vector<64x17xf32>, vector<128x17xf32> -> vector<128x17xf32>
    %208 = vector.extract_strided_slice %2 {offsets = [0, 3], sizes = [128, 1], strides = [1, 1]} : vector<128x8xf32> to vector<128x1xf32>
    %209 = vector.broadcast %208 : vector<128x1xf32> to vector<128x17xf32>
    %210 = arith.addf %207, %209 : vector<128x17xf32>
    %cst_73 = arith.constant 0.000000e+00 : f32
    %211 = vector.broadcast %cst_73 : f32 to vector<128x17xf32>
    %212 = arith.cmpf ogt, %210, %211 : vector<128x17xf32>
    %213 = math.exp %210 : vector<128x17xf32>
    %cst_74 = arith.constant 1.000000e+00 : f32
    %214 = vector.broadcast %cst_74 : f32 to vector<128x17xf32>
    %215 = arith.subf %213, %214 : vector<128x17xf32>
    %216 = arith.select %212, %210, %215 : vector<128x17xi1>, vector<128x17xf32>
    %c0_75 = arith.constant 0 : index
    %c0_76 = arith.constant 0 : index
    %217 = vector.load %arg9[%c0_75, %c0_76] : memref<17x2xf32, #tpu.memory_space<vmem>>, vector<17x2xf32>
    %cst_77 = arith.constant dense<0.000000e+00> : vector<128x2xf32>
    %218 = tpu.matmul %216, %217, %cst_77 {dimension_numbers = #tpu.dot_dimension_numbers<[1], [0], [0], [1], [0, 0, 1, 1], [], []>} : vector<128x17xf32>, vector<17x2xf32>, vector<128x2xf32> -> vector<128x2xf32>
    %c0_78 = arith.constant 0 : index
    %c0_79 = arith.constant 0 : index
    %219 = vector.load %arg10[%c0_78, %c0_79] : memref<64x2xf32, #tpu.memory_space<vmem>>, vector<64x2xf32>
    %cst_80 = arith.constant dense<0.000000e+00> : vector<8x2xf32>
    %220 = tpu.matmul %1, %219, %cst_80 {dimension_numbers = #tpu.dot_dimension_numbers<[1], [0], [0], [1], [0, 0, 1, 1], [], []>} : vector<8x64xf32>, vector<64x2xf32>, vector<8x2xf32> -> vector<8x2xf32>
    %c0_81 = arith.constant 0 : index
    %c0_82 = arith.constant 0 : index
    %221 = vector.load %arg11[%c0_81, %c0_82] : memref<128x8xf32, #tpu.memory_space<vmem>>, vector<128x8xf32>
    %cst_83 = arith.constant dense<0.000000e+00> : vector<128x2xf32>
    %222 = tpu.matmul %221, %220, %cst_83 {dimension_numbers = #tpu.dot_dimension_numbers<[1], [0], [0], [1], [0, 0, 1, 1], [], []>} : vector<128x8xf32>, vector<8x2xf32>, vector<128x2xf32> -> vector<128x2xf32>
    %223 = vector.extract_strided_slice %2 {offsets = [0, 4], sizes = [128, 1], strides = [1, 1]} : vector<128x8xf32> to vector<128x1xf32>
    %224 = vector.broadcast %223 : vector<128x1xf32> to vector<128x2xf32>
    %225 = arith.addf %222, %224 : vector<128x2xf32>
    %226 = arith.addf %218, %225 : vector<128x2xf32>
    %227 = vector.extract_strided_slice %2 {offsets = [0, 5], sizes = [4, 1], strides = [1, 1]} : vector<128x8xf32> to vector<4x1xf32>
    %c0_84 = arith.constant 0 : index
    %c0_85 = arith.constant 0 : index
    %c0_86 = arith.constant 0 : index
    %228 = vector.load %arg12[%c0_84, %c0_85, %c0_86] : memref<2x4x128xf32, #tpu.memory_space<vmem>>, vector<1x4x128xf32>
    %229 = vector.shape_cast %228 : vector<1x4x128xf32> to vector<4x128xf32>
    %230 = vector.extract_strided_slice %226 {offsets = [0, 0], sizes = [128, 1], strides = [1, 1]} : vector<128x2xf32> to vector<128x1xf32>
    %cst_87 = arith.constant dense<0.000000e+00> : vector<4x1xf32>
    %231 = tpu.matmul %229, %230, %cst_87 {dimension_numbers = #tpu.dot_dimension_numbers<[1], [0], [0], [1], [0, 0, 1, 1], [], []>} : vector<4x128xf32>, vector<128x1xf32>, vector<4x1xf32> -> vector<4x1xf32>
    %232 = arith.addf %227, %231 : vector<4x1xf32>
    %c1 = arith.constant 1 : index
    %c0_88 = arith.constant 0 : index
    %c0_89 = arith.constant 0 : index
    %233 = vector.load %arg12[%c1, %c0_88, %c0_89] : memref<2x4x128xf32, #tpu.memory_space<vmem>>, vector<1x4x128xf32>
    %234 = vector.shape_cast %233 : vector<1x4x128xf32> to vector<4x128xf32>
    %235 = vector.extract_strided_slice %226 {offsets = [0, 1], sizes = [128, 1], strides = [1, 1]} : vector<128x2xf32> to vector<128x1xf32>
    %cst_90 = arith.constant dense<0.000000e+00> : vector<4x1xf32>
    %236 = tpu.matmul %234, %235, %cst_90 {dimension_numbers = #tpu.dot_dimension_numbers<[1], [0], [0], [1], [0, 0, 1, 1], [], []>} : vector<4x128xf32>, vector<128x1xf32>, vector<4x1xf32> -> vector<4x1xf32>
    %237 = arith.addf %232, %236 : vector<4x1xf32>
    %238 = vector.shape_cast %237 : vector<4x1xf32> to vector<1x4x1xf32>
    %c0_91 = arith.constant 0 : index
    %c0_92 = arith.constant 0 : index
    %c0_93 = arith.constant 0 : index
    %239 = vector.load %arg14[%c0_91, %c0_92, %c0_93] : memref<1x4x1xf32, #tpu.memory_space<vmem>>, vector<1x4x1xf32>
    tpu.vector_store %arg14[%c0_91, %c0_92, %c0_93], %238 {strides = array<i32>} : memref<1x4x1xf32, #tpu.memory_space<vmem>>, vector<1x4x1xf32>,
    return
  }
  func.func @transform_0(%arg0: i32) -> (i32, i32, i32) {
    %c0_i32 = arith.constant 0 : i32
    %c0_i32_0 = arith.constant 0 : i32
    %c0_i32_1 = arith.constant 0 : i32
    return %arg0, %c0_i32, %c0_i32_0 : i32, i32, i32
  }
  func.func @transform_1(%arg0: i32) -> (i32, i32) {
    %c0_i32 = arith.constant 0 : i32
    %c0_i32_0 = arith.constant 0 : i32
    %c0_i32_1 = arith.constant 0 : i32
    return %c0_i32, %c0_i32_0 : i32, i32
  }
  func.func @transform_2(%arg0: i32) -> (i32, i32) {
    %c0_i32 = arith.constant 0 : i32
    %c0_i32_0 = arith.constant 0 : i32
    %c0_i32_1 = arith.constant 0 : i32
    return %c0_i32, %c0_i32_0 : i32, i32
  }
  func.func @transform_3(%arg0: i32) -> (i32, i32) {
    %c0_i32 = arith.constant 0 : i32
    %c0_i32_0 = arith.constant 0 : i32
    %c0_i32_1 = arith.constant 0 : i32
    return %c0_i32, %c0_i32_0 : i32, i32
  }
  func.func @transform_4(%arg0: i32) -> (i32, i32) {
    %c0_i32 = arith.constant 0 : i32
    %c0_i32_0 = arith.constant 0 : i32
    %c0_i32_1 = arith.constant 0 : i32
    return %c0_i32, %c0_i32_0 : i32, i32
  }
  func.func @transform_5(%arg0: i32) -> (i32, i32) {
    %c0_i32 = arith.constant 0 : i32
    %c0_i32_0 = arith.constant 0 : i32
    %c0_i32_1 = arith.constant 0 : i32
    return %c0_i32, %c0_i32_0 : i32, i32
  }
  func.func @transform_6(%arg0: i32) -> (i32, i32) {
    %c0_i32 = arith.constant 0 : i32
    %c0_i32_0 = arith.constant 0 : i32
    %c0_i32_1 = arith.constant 0 : i32
    return %c0_i32, %c0_i32_0 : i32, i32
  }
  func.func @transform_7(%arg0: i32) -> (i32, i32) {
    %c0_i32 = arith.constant 0 : i32
    %c0_i32_0 = arith.constant 0 : i32
    %c0_i32_1 = arith.constant 0 : i32
    return %c0_i32, %c0_i32_0 : i32, i32
  }
  func.func @transform_8(%arg0: i32) -> (i32, i32) {
    %c0_i32 = arith.constant 0 : i32
    %c0_i32_0 = arith.constant 0 : i32
    %c0_i32_1 = arith.constant 0 : i32
    return %c0_i32, %c0_i32_0 : i32, i32
  }
  func.func @transform_9(%arg0: i32) -> (i32, i32) {
    %c0_i32 = arith.constant 0 : i32
    %c0_i32_0 = arith.constant 0 : i32
    %c0_i32_1 = arith.constant 0 : i32
    return %c0_i32, %c0_i32_0 : i32, i32
  }
  func.func @transform_10(%arg0: i32) -> (i32, i32) {
    %c0_i32 = arith.constant 0 : i32
    %c0_i32_0 = arith.constant 0 : i32
    %c0_i32_1 = arith.constant 0 : i32
    return %c0_i32, %c0_i32_0 : i32, i32
  }
  func.func @transform_11(%arg0: i32) -> (i32, i32, i32) {
    %c0_i32 = arith.constant 0 : i32
    %c0_i32_0 = arith.constant 0 : i32
    %c0_i32_1 = arith.constant 0 : i32
    %c0_i32_2 = arith.constant 0 : i32
    return %c0_i32, %c0_i32_0, %c0_i32_1 : i32, i32, i32
  }
  func.func @transform_12(%arg0: i32) -> (i32, i32) {
    %c0_i32 = arith.constant 0 : i32
    %c0_i32_0 = arith.constant 0 : i32
    %c0_i32_1 = arith.constant 0 : i32
    return %c0_i32, %c0_i32_0 : i32, i32
  }
  func.func @transform_13(%arg0: i32) -> (i32, i32, i32) {
    %c0_i32 = arith.constant 0 : i32
    %c0_i32_0 = arith.constant 0 : i32
    %c0_i32_1 = arith.constant 0 : i32
    return %arg0, %c0_i32, %c0_i32_0 : i32, i32, i32
  }
}

</mosaic_0001>

<bundles_post_ra>
// kernel: enhanced_eegnet_forward.1
= control target key start
LH: loop header
LB: loop body
LE: loop exit
PB: predicated region body
PF: predicated region fallthrough
CT: control target
= control target key end

     0   :  { %18 = vsyncpa [#allocation4], 0  ;;  %s6249_s25 = smov 0   ;;  %s7976_s0 = inlined_call_operand.vmem [shape: f32[2,8,64], index: 0, kind: input, shape index: {}]   ;;  %s7977_s1 = inlined_call_operand.hbm [shape: f32[64,2080], index: 1, kind: input, shape index: {}]   ;;  %s7978_s2 = inlined_call_operand.vmem [shape: f32[64,256], index: 2, kind: input, shape index: {}]   ;;  %s7979_s3 = inlined_call_operand.vmem [shape: f32[8,64], index: 3, kind: input, shape index: {}]   ;;  %s7980_s4 = inlined_call_operand.vmem [shape: f32[64,8], index: 4, kind: input, shape index: {}]   ;;  %s7981_s5 = inlined_call_operand.vmem [shape: f32[65,16], index: 5, kind: input, shape index: {}]   ;;  %s7982_s6 = inlined_call_operand.vmem [shape: f32[64,16], index: 6, kind: input, shape index: {}]   ;;  %s7983_s7 = inlined_call_operand.vmem [shape: f32[128,64], index: 7, kind: input, shape index: {}]   ;;  %s7984_s8 = inlined_call_operand.vmem [shape: f32[17,2], index: 8, kind: input, shape index: {}]   ;;  %s7985_s9 = inlined_call_operand.vmem [shape: f32[64,2], index: 9, kind: input, shape index: {}]   ;;  %s7986_s10 = inlined_call_operand.vmem [shape: f32[128,8], index: 10, kind: input, shape index: {}]   ;;  %s7987_s11 = inlined_call_operand.vmem [shape: f32[2,4,128], index: 11, kind: input, shape index: {}]   ;;  %s7988_s12 = inlined_call_operand.vmem [shape: f32[128,8], index: 12, kind: input, shape index: {}]   ;;  %s7989_s13 = inlined_call_operand.vmem [shape: f32[2,4,1], index: 13, kind: output, shape index: {}]  }
   0x1 LB: > { %s6255_s26 = sadd.s32 4294967295, %s6114_s25   ;;  %p4842_p0 = scmp.ge.s32.totalorder %s6114_s25, 1  ;;  %s6114_s25 = sphi %s6249_s25, %s24_s25  }
   0x2   : > { %p333_p1 = scmp.lt.s32.totalorder %s6114_s25, 3  ;;  %s6116_s27 = smov [#allocation3]  }
   0x3   : > { %s345_s28 = sshll.u32 %s6116_s27, 4  ;;  %p7990_p3 = scmp.eq.s32.totalorder %s6255_s26, 0  ;;  %s346_s28 = int_to_ptr.vmem [resolvable:$true] %s345_s28 }
   0x4   : > { %p6259_p2 = pnand %p4842_p0, %p333_p1  ;;  %s6076_s16 = scalar_lea.hbm %s7977_s1, 17408 }
   0x5   : > { %p6077_p6 = scmp.ne.s32.totalorder %s7977_s1, %s6076_s16  ;;  %p6083_p10 = scmp.lt.u32.totalorder %s6076_s16, %s7977_s1 }
   0x6   : > { %s8033_s29 = scalar_select %p6259_p2, 1, 0 }
   0x7   : > { %p5739_p4 = pneg %p6259_p2 }
   0x9   : > { %p6268_p5 = pnand %p7990_p3, %p5739_p4 }
   0xb   : > { %p6078_p7 = pneg %p6268_p5 }
   0xd   : > { %p6079_p8 = pnand %p6078_p7, %p6077_p6 }
   0xf   : > { %p6080_p9 = pneg %p6079_p8 }
  0x11   : > { %p6085_p11 = pnand %p6083_p10, %p6080_p9 }
  0x13   : > { %6088 = shalt.err (!%p6085_p11)
}
  0x14   : > { %s6089_s21 = scalar_lea.vmem %s346_s28, 17408  ;;  %p6097_p1 = scmp.lt.s32.totalorder %s346_s28, %s346_s28 }
  0x15   : > { %p6090_p12 = scmp.ne.s32.totalorder %s346_s28, %s6089_s21  ;;  %p6098_p4 = scmp.lt.s32.totalorder %s6089_s21, %s6089_s21 }
  0x17   : > { %p6092_p13 = pnand %p6090_p12, %p6078_p7  ;;  %p6099_p3 = por %p6098_p4, %p6097_p1 }
  0x19   : > { %p6093_p0 = pneg %p6092_p13 }
  0x1b   : > { %p6100_p2 = pnand %p6099_p3, %p6093_p0 }
  0x1d   : > { %6103 = shalt.err (!%p6100_p2)
}
  0x1e   : > { %s6117_s22 = smov 2176   ;;  %s6118_s23 = smov 136  }
  0x1f   : > { %5742 = dma.hbm_to_vmem [thread:$0]  (!%p6268_p5), %s7977_s1, 17408, %s346_s28, [#allocation4], %s6117_s22, %s6117_s22, %s6118_s23  }
  0x20   : > { %p8035_p6 = scmp.ne.s32.totalorder %s8033_s29, 0 }
  0x22   : > { %401 = sbr.rel (%p8035_p6) target bundleno = 3382 (0xd36), region = 72 }
  0x29   : > { %p8036_p8 = scmp.eq.s32.totalorder %s6255_s26, 0 }
  0x2b   : > { %6109 = dma.done.wait (%p8036_p8), [#allocation4], 17408   ;;  %p8037_p7 = pmov %p8036_p8 }
  0x2c   : > { %v8002_v0 = vmov 0.0   ;;  %v469_v1 = vld [vmem:[#allocation3 + $0x8] sm:$0xff]  ;;  %v486_v2 = vld [vmem:[#allocation3 + $0x90] sm:$0xff]  ;;  %v471_v3 = vld [vmem:[#allocation3 + $0x18] sm:$0xff]  ;;  %p443_p2 = scmp.lt.s32.totalorder %s6255_s26, 1  ;;  %vm604_vm0 = vcmask 523264  }
  0x2d   : > { %6111 = vsyncadd (%p8037_p7), [#allocation4], 4294949888  ;;  %672 = vmatprep.mubr.f32.mxu0 %v8002_v0  ;;  %743 = vmatprep.mubr.f32.mxu1 %v8002_v0  ;;  %v5423_v4 = vpack.c.bf16 %v486_v2, %v469_v1  ;;  %v488_v5 = vld [vmem:[#allocation3 + $0xa0] sm:$0xff]  ;;  %v485_v7 = vld [vmem:[#allocation3 + $0x88] sm:$0xff]  ;;  %vm6121_vm1 = vmmov 0   ;;  %vm1246_vm2 = vcmask 531456  }
  0x2e   : > { %v468_v6 = vld [vmem:[#allocation3] sm:$0xff]  ;;  %v5439_v8 = vpack.c.bf16 %v488_v5, %v471_v3  ;;  %v470_v10 = vld [vmem:[#allocation3 + $0x10] sm:$0xff]  ;;  %v487_v11 = vld [vmem:[#allocation3 + $0x98] sm:$0xff]  ;;  %s8206_s26 = smov (!%p443_p2, %s6255_s26), 1  ;;  %s6122_s15 = smov 63   ;;  %vm1254_vm3 = vcmask 515072  }
  0x2f   : > { %v5425_v9 = vpack.c.bf16 %v485_v7, %v468_v6  ;;  %v503_v12 = vld [vmem:[#allocation3 + $0x118] sm:$0xff]  ;;  %5424 = vmatprep.subr.bf16.mxu0 %v5423_v4  ;;  %v5441_v13 = vpack.c.bf16 %v487_v11, %v470_v10  ;;  %v520_v14 = vld [vmem:[#allocation3 + $0x1a0] sm:$0xff]  ;;  %v505_v15 = vld [vmem:[#allocation3 + $0x128] sm:$0xff]  ;;  %s4847_s28 = sshll.u32 %s8206_s26, 3  ;;  %s6123_s16 = smov 61   ;;  %vm1267_vm4 = vcmask 498688  }
  0x30   : > { %v522_v16 = vld [vmem:[#allocation3 + $0x1b0] sm:$0xff]  ;;  %5440 = vmatprep.subr.bf16.mxu1 %v5439_v8  ;;  %v5427_v17 = vpack.c.bf16 %v520_v14, %v503_v12  ;;  %v519_v20 = vld [vmem:[#allocation3 + $0x198] sm:$0xff]  ;;  %v504_v21 = vld [vmem:[#allocation3 + $0x120] sm:$0xff]  ;;  %s6306_s14 = scalar_lea.vmem %s7976_s0, %s4847_s28  ;;  %s6124_s17 = smov 59   ;;  %vm1280_vm5 = vcmask 482304   ;;  %vm1293_vm6 = vcmask 465920  }
  0x31   : > { %5426 = vmatpush1.bf16.msra.mxu0 %v5425_v9  ;;  %v5443_v18 = vpack.c.bf16 %v522_v16, %v505_v15  ;;  %v502_v19 = vld [vmem:[#allocation3 + $0x110] sm:$0xff]  ;;  %5442 = vmatpush1.bf16.msra.mxu1 %v5441_v13  ;;  %v521_v23 = vld [vmem:[#allocation3 + $0x1a8] sm:$0xff]  ;;  %v539_v28 = vld [vmem:[#allocation3 + $0x238] sm:$0xff]  ;;  %s6125_s18 = smov 124   ;;  %s6126_s19 = smov 126   ;;  %vm1319_vm7 = vcmask 433152  }
  0x32   : > { %v5429_v22 = vpack.c.bf16 %v519_v20, %v502_v19  ;;  %v537_v24 = vld [vmem:[#allocation3 + $0x228] sm:$0xff]  ;;  %v554_v25 = vld [vmem:[#allocation3 + $0x2b0] sm:$0xff]  ;;  %5428 = vmatprep.subr.bf16.mxu0 %v5427_v17  ;;  %v5445_v26 = vpack.c.bf16 %v521_v23, %v504_v21  ;;  %v556_v29 = vld [vmem:[#allocation3 + $0x2c0] sm:$0xff]  ;;  %s6127_s20 = smov 57   ;;  %s7998_s21 = smov 122   ;;  %vm1306_vm8 = vcmask 449536  }
  0x33   : > { %5444 = vmatprep.subr.bf16.mxu1 %v5443_v18  ;;  %v5431_v27 = vpack.c.bf16 %v554_v25, %v537_v24  ;;  %v536_v30 = vld [vmem:[#allocation3 + $0x220] sm:$0xff]  ;;  %v5447_v31 = vpack.c.bf16 %v556_v29, %v539_v28  ;;  %v553_v32 = vld [vmem:[#allocation3 + $0x2a8] sm:$0xff]  ;;  %v538_v33 = vld [vmem:[#allocation3 + $0x230] sm:$0xff]  ;;  %s6129_s22 = smov 55   ;;  %s6130_s23 = smov 51   ;;  %vm1332_vm9 = vcmask 416768  }
  0x34   : > { %v555_v34 = vld [vmem:[#allocation3 + $0x2b8] sm:$0xff]  ;;  %v5433_v35 = vpack.c.bf16 %v553_v32, %v536_v30  ;;  %v588_v37 = vld [vmem:[#allocation3 + $0x3c0] sm:$0xff]  ;;  %v573_v38 = vld [vmem:[#allocation3 + $0x348] sm:$0xff]  ;;  %s7996_s24 = smov 120   ;;  %s6132_s27 = smov 53   ;;  %vm1371_vm10 = vcmask 367616  }
  0x35   : > { %5430 = vmatpush1.bf16.msra.mxu0 %v5429_v22  ;;  %v571_v36 = vld [vmem:[#allocation3 + $0x338] sm:$0xff]  ;;  %5446 = vmatpush1.bf16.msra.mxu1 %v5445_v26  ;;  %v5449_v39 = vpack.c.bf16 %v555_v34, %v538_v33  ;;  %v590_v41 = vld [vmem:[#allocation3 + $0x3d0] sm:$0xff]  ;;  %v572_v45 = vld [vmem:[#allocation3 + $0x340] sm:$0xff]  ;;  %s6133_s28 = smov 49   ;;  %s7992_s29 = smov 116   ;;  %vm1358_vm11 = vcmask 384000  }
  0x36   : > { %5432 = vmatprep.subr.bf16.mxu0 %v5431_v27  ;;  %v5435_v40 = vpack.c.bf16 %v588_v37, %v571_v36  ;;  %v570_v42 = vld [vmem:[#allocation3 + $0x330] sm:$0xff]  ;;  %v587_v43 = vld [vmem:[#allocation3 + $0x3b8] sm:$0xff]  ;;  %5448 = vmatprep.subr.bf16.mxu1 %v5447_v31  ;;  %v5451_v44 = vpack.c.bf16 %v590_v41, %v573_v38  ;;  %v589_v46 = vld [vmem:[#allocation3 + $0x3c8] sm:$0xff]  ;;  %s6135_s30 = smov 43   ;;  %vm1384_vm12 = vcmask 351232   ;;  %vm1397_vm13 = vcmask 334848  }
  0x37   : > { %v473_v47 = vld [vmem:[#allocation3 + $0x28] sm:$0xff]  ;;  %v490_v48 = vld [vmem:[#allocation3 + $0xb0] sm:$0xff]  ;;  %v5437_v49 = vpack.c.bf16 %v587_v43, %v570_v42  ;;  %v475_v50 = vld [vmem:[#allocation3 + $0x38] sm:$0xff]  ;;  %v5453_v52 = vpack.c.bf16 %v589_v46, %v572_v45  ;;  %vm1423_vm14 = vcmask 302080   ;;  %vm1410_vm15 = vcmask 318464  }
  0x38   : > { %v492_v51 = vld [vmem:[#allocation3 + $0xc0] sm:$0xff]  ;;  %v5455_v53 = vpack.c.bf16 %v490_v48, %v473_v47  ;;  %v489_v55 = vld [vmem:[#allocation3 + $0xa8] sm:$0xff]  ;;  %v474_v56 = vld [vmem:[#allocation3 + $0x30] sm:$0xff] }
  0x39   : > { %5434 = vmatpush1.bf16.msra.mxu0 %v5433_v35  ;;  %5450 = vmatpush1.bf16.msra.mxu1 %v5449_v39  ;;  %v472_v54 = vld [vmem:[#allocation3 + $0x20] sm:$0xff]  ;;  %v5471_v57 = vpack.c.bf16 %v492_v51, %v475_v50  ;;  %v491_v58 = vld [vmem:[#allocation3 + $0xb8] sm:$0xff]  ;;  %v509_v61 = vld [vmem:[#allocation3 + $0x148] sm:$0xff] }
  0x3a   : > { %5436 = vmatprep.subr.bf16.mxu0 %v5435_v40  ;;  %5452 = vmatprep.subr.bf16.mxu1 %v5451_v44  ;;  %v507_v59 = vld [vmem:[#allocation3 + $0x138] sm:$0xff]  ;;  %v524_v60 = vld [vmem:[#allocation3 + $0x1c0] sm:$0xff]  ;;  %v526_v62 = vld [vmem:[#allocation3 + $0x1d0] sm:$0xff]  ;;  %v5457_v1 = vpack.c.bf16 %v489_v55, %v472_v54  ;;  %v5473_v2 = vpack.c.bf16 %v491_v58, %v474_v56 }
  0x3b   : > { %v6309_v63 = vld [vmem:[%s6306_s14] sm:$0xff]  ;;  %v5459_v3 = vpack.c.bf16 %v524_v60, %v507_v59  ;;  %v506_v4 = vld [vmem:[#allocation3 + $0x130] sm:$0xff]  ;;  %v523_v5 = vld [vmem:[#allocation3 + $0x1b8] sm:$0xff]  ;;  %v5475_v7 = vpack.c.bf16 %v526_v62, %v509_v61 }
  0x3c   : > { %v508_v6 = vld [vmem:[#allocation3 + $0x140] sm:$0xff]  ;;  %v525_v8 = vld [vmem:[#allocation3 + $0x1c8] sm:$0xff]  ;;  %v558_v10 = vld [vmem:[#allocation3 + $0x2d0] sm:$0xff]  ;;  %v5461_v13 = vpack.c.bf16 %v523_v5, %v506_v4 }
  0x3d   : > { %5438 = vmatpush1.bf16.msra.mxu0 %v5437_v49  ;;  %5454 = vmatpush1.bf16.msra.mxu1 %v5453_v52  ;;  %v541_v9 = vld [vmem:[#allocation3 + $0x248] sm:$0xff]  ;;  %v543_v11 = vld [vmem:[#allocation3 + $0x258] sm:$0xff]  ;;  %v560_v12 = vld [vmem:[#allocation3 + $0x2e0] sm:$0xff]  ;;  %v5477_v14 = vpack.c.bf16 %v525_v8, %v508_v6 }
  0x3e   : > { %5456 = vmatprep.subr.bf16.mxu0 %v5455_v53  ;;  %5472 = vmatprep.subr.bf16.mxu1 %v5471_v57  ;;  %v5463_v15 = vpack.c.bf16 %v558_v10, %v541_v9  ;;  %v540_v16 = vld [vmem:[#allocation3 + $0x240] sm:$0xff]  ;;  %v557_v17 = vld [vmem:[#allocation3 + $0x2c8] sm:$0xff]  ;;  %v542_v18 = vld [vmem:[#allocation3 + $0x250] sm:$0xff]  ;;  %v5479_v19 = vpack.c.bf16 %v560_v12, %v543_v11 }
  0x3f   : > { %v559_v20 = vld [vmem:[#allocation3 + $0x2d8] sm:$0xff]  ;;  %v592_v22 = vld [vmem:[#allocation3 + $0x3e0] sm:$0xff]  ;;  %v577_v23 = vld [vmem:[#allocation3 + $0x368] sm:$0xff]  ;;  %v5465_v25 = vpack.c.bf16 %v557_v17, %v540_v16 }
  0x40   : > { %4849 = vmatmul.mubr.msk.f32.vlgmr.msra.gmra.mrb[0].mxu0 %vm604_vm0, %v6309_v63  ;;  %4850 = vmatmul.mubr.msk.f32.vlgmr.msra.gmra.mrb[0].mxu1 %vm604_vm0, %v6309_v63  ;;  %v575_v21 = vld [vmem:[#allocation3 + $0x358] sm:$0xff]  ;;  %v594_v24 = vld [vmem:[#allocation3 + $0x3f0] sm:$0xff]  ;;  %v5481_v26 = vpack.c.bf16 %v559_v20, %v542_v18  ;;  %v576_v30 = vld [vmem:[#allocation3 + $0x360] sm:$0xff] }
  0x41   : > { %5458 = vmatpush1.bf16.msra.mxu0 %v5457_v1  ;;  %5474 = vmatpush1.bf16.msra.mxu1 %v5473_v2  ;;  %v5467_v27 = vpack.c.bf16 %v592_v22, %v575_v21  ;;  %v574_v28 = vld [vmem:[#allocation3 + $0x350] sm:$0xff]  ;;  %v591_v29 = vld [vmem:[#allocation3 + $0x3d8] sm:$0xff]  ;;  %v5483_v31 = vpack.c.bf16 %v594_v24, %v577_v23  ;;  %v593_v32 = vld [vmem:[#allocation3 + $0x3e8] sm:$0xff] }
  0x42   : > { %5460 = vmatprep.subr.bf16.mxu0 %v5459_v3  ;;  %5476 = vmatprep.subr.bf16.mxu1 %v5475_v7  ;;  %v477_v33 = vld [vmem:[#allocation3 + $0x48] sm:$0xff]  ;;  %v494_v34 = vld [vmem:[#allocation3 + $0xd0] sm:$0xff]  ;;  %v479_v35 = vld [vmem:[#allocation3 + $0x58] sm:$0xff]  ;;  %v5469_v37 = vpack.c.bf16 %v591_v29, %v574_v28  ;;  %v5485_v38 = vpack.c.bf16 %v593_v32, %v576_v30 }
  0x43   : > { %814 = vmatprep.mubr.f32.mxu0 %v8002_v0  ;;  %885 = vmatprep.mubr.f32.mxu1 %v8002_v0  ;;  %v496_v36 = vld [vmem:[#allocation3 + $0xe0] sm:$0xff]  ;;  %v478_v39 = vld [vmem:[#allocation3 + $0x50] sm:$0xff]  ;;  %v5487_v40 = vpack.c.bf16 %v494_v34, %v477_v33  ;;  %v493_v42 = vld [vmem:[#allocation3 + $0xc8] sm:$0xff] }
  0x44   : > { %v476_v41 = vld [vmem:[#allocation3 + $0x40] sm:$0xff]  ;;  %v5503_v43 = vpack.c.bf16 %v496_v36, %v479_v35  ;;  %v495_v44 = vld [vmem:[#allocation3 + $0xd8] sm:$0xff]  ;;  %v513_v47 = vld [vmem:[#allocation3 + $0x168] sm:$0xff] }
  0x45   : > { %5462 = vmatpush1.bf16.msra.mxu0 %v5461_v13  ;;  %5478 = vmatpush1.bf16.msra.mxu1 %v5477_v14  ;;  %v511_v45 = vld [vmem:[#allocation3 + $0x158] sm:$0xff]  ;;  %v528_v46 = vld [vmem:[#allocation3 + $0x1e0] sm:$0xff]  ;;  %v530_v48 = vld [vmem:[#allocation3 + $0x1f0] sm:$0xff]  ;;  %v5489_v49 = vpack.c.bf16 %v493_v42, %v476_v41  ;;  %v5505_v50 = vpack.c.bf16 %v495_v44, %v478_v39 }
  0x46   : > { %5464 = vmatprep.subr.bf16.mxu0 %v5463_v15  ;;  %5480 = vmatprep.subr.bf16.mxu1 %v5479_v19  ;;  %v512_v51 = vld [vmem:[#allocation3 + $0x160] sm:$0xff]  ;;  %v5491_v52 = vpack.c.bf16 %v528_v46, %v511_v45  ;;  %v510_v53 = vld [vmem:[#allocation3 + $0x150] sm:$0xff]  ;;  %v527_v54 = vld [vmem:[#allocation3 + $0x1d8] sm:$0xff]  ;;  %v5507_v55 = vpack.c.bf16 %v530_v48, %v513_v47 }
  0x47   : > { %v529_v56 = vld [vmem:[#allocation3 + $0x1e8] sm:$0xff]  ;;  %v562_v58 = vld [vmem:[#allocation3 + $0x2f0] sm:$0xff]  ;;  %v547_v59 = vld [vmem:[#allocation3 + $0x278] sm:$0xff]  ;;  %v5493_v61 = vpack.c.bf16 %v527_v54, %v510_v53 }
  0x48   : > { %v545_v57 = vld [vmem:[#allocation3 + $0x268] sm:$0xff]  ;;  %v564_v60 = vld [vmem:[#allocation3 + $0x300] sm:$0xff]  ;;  %v5509_v62 = vpack.c.bf16 %v529_v56, %v512_v51  ;;  %v546_v1 = vld [vmem:[#allocation3 + $0x270] sm:$0xff] }
  0x49   : > { %5466 = vmatpush1.bf16.msra.mxu0 %v5465_v25  ;;  %5482 = vmatpush1.bf16.msra.mxu1 %v5481_v26  ;;  %v5495_v2 = vpack.c.bf16 %v562_v58, %v545_v57  ;;  %v544_v3 = vld [vmem:[#allocation3 + $0x260] sm:$0xff]  ;;  %v561_v4 = vld [vmem:[#allocation3 + $0x2e8] sm:$0xff]  ;;  %v5511_v5 = vpack.c.bf16 %v564_v60, %v547_v59  ;;  %v563_v6 = vld [vmem:[#allocation3 + $0x2f8] sm:$0xff] }
  0x4a   : > { %5468 = vmatprep.subr.bf16.mxu0 %v5467_v27  ;;  %5484 = vmatprep.subr.bf16.mxu1 %v5483_v31  ;;  %v579_v7 = vld [vmem:[#allocation3 + $0x378] sm:$0xff]  ;;  %v596_v8 = vld [vmem:[#allocation3 + $0x400] sm:$0xff]  ;;  %v581_v9 = vld [vmem:[#allocation3 + $0x388] sm:$0xff]  ;;  %v5497_v11 = vpack.c.bf16 %v561_v4, %v544_v3  ;;  %v5513_v12 = vpack.c.bf16 %v563_v6, %v546_v1 }
  0x4b   : > { %v598_v10 = vld [vmem:[#allocation3 + $0x410] sm:$0xff]  ;;  %v580_v13 = vld [vmem:[#allocation3 + $0x380] sm:$0xff]  ;;  %v5499_v14 = vpack.c.bf16 %v596_v8, %v579_v7  ;;  %v595_v16 = vld [vmem:[#allocation3 + $0x3f8] sm:$0xff] }
  0x4c   : > { %v578_v15 = vld [vmem:[#allocation3 + $0x370] sm:$0xff]  ;;  %v5515_v17 = vpack.c.bf16 %v598_v10, %v581_v9  ;;  %v597_v18 = vld [vmem:[#allocation3 + $0x408] sm:$0xff]  ;;  %v483_v21 = vld [vmem:[#allocation3 + $0x78] sm:$0xff]  ;;  %v8012_v10 = vmov 0.0|0.0  }
  0x4d   : > { %5470 = vmatpush1.bf16.msra.mxu0 %v5469_v37  ;;  %5486 = vmatpush1.bf16.msra.mxu1 %v5485_v38  ;;  %v481_v19 = vld [vmem:[#allocation3 + $0x68] sm:$0xff]  ;;  %v498_v20 = vld [vmem:[#allocation3 + $0xf0] sm:$0xff]  ;;  %v500_v22 = vld [vmem:[#allocation3 + $0x100] sm:$0xff]  ;;  %v5501_v23 = vpack.c.bf16 %v595_v16, %v578_v15  ;;  %v5517_v24 = vpack.c.bf16 %v597_v18, %v580_v13 }
  0x4e   : > { %5488 = vmatprep.subr.bf16.mxu0 %v5487_v40  ;;  %5504 = vmatprep.subr.bf16.mxu1 %v5503_v43  ;;  %v5519_v25 = vpack.c.bf16 %v498_v20, %v481_v19  ;;  %v480_v26 = vld [vmem:[#allocation3 + $0x60] sm:$0xff]  ;;  %v497_v27 = vld [vmem:[#allocation3 + $0xe8] sm:$0xff]  ;;  %v515_v28 = vld [vmem:[#allocation3 + $0x178] sm:$0xff]  ;;  %v5535_v30 = vpack.c.bf16 %v500_v22, %v483_v21 }
  0x4f   : > { %v532_v29 = vld [vmem:[#allocation3 + $0x200] sm:$0xff]  ;;  %v482_v31 = vld [vmem:[#allocation3 + $0x70] sm:$0xff]  ;;  %v499_v32 = vld [vmem:[#allocation3 + $0xf8] sm:$0xff]  ;;  %v5521_v35 = vpack.c.bf16 %v497_v27, %v480_v26 }
  0x50   : > { %4851 = vmatmul.mubr.msk.f32.vlgmr.msra.gmra.mrb[2].mxu0 %vm604_vm0, %v6309_v63  ;;  %4852 = vmatmul.mubr.msk.f32.vlgmr.msra.gmra.mrb[2].mxu1 %vm604_vm0, %v6309_v63  ;;  %v517_v33 = vld [vmem:[#allocation3 + $0x188] sm:$0xff]  ;;  %v534_v34 = vld [vmem:[#allocation3 + $0x210] sm:$0xff]  ;;  %v5523_v36 = vpack.c.bf16 %v532_v29, %v515_v28  ;;  %v531_v38 = vld [vmem:[#allocation3 + $0x1f8] sm:$0xff]  ;;  %v5537_v40 = vpack.c.bf16 %v499_v32, %v482_v31 }
  0x51   : > { %5490 = vmatpush1.bf16.msra.mxu0 %v5489_v49  ;;  %5506 = vmatpush1.bf16.msra.mxu1 %v5505_v50  ;;  %v514_v37 = vld [vmem:[#allocation3 + $0x170] sm:$0xff]  ;;  %v549_v39 = vld [vmem:[#allocation3 + $0x288] sm:$0xff]  ;;  %v5539_v42 = vpack.c.bf16 %v534_v34, %v517_v33  ;;  %v516_v43 = vld [vmem:[#allocation3 + $0x180] sm:$0xff] }
  0x52   : > { %5492 = vmatprep.subr.bf16.mxu0 %v5491_v52  ;;  %5508 = vmatprep.subr.bf16.mxu1 %v5507_v55  ;;  %v566_v41 = vld [vmem:[#allocation3 + $0x310] sm:$0xff]  ;;  %v533_v44 = vld [vmem:[#allocation3 + $0x208] sm:$0xff]  ;;  %v551_v45 = vld [vmem:[#allocation3 + $0x298] sm:$0xff]  ;;  %v5525_v47 = vpack.c.bf16 %v531_v38, %v514_v37 }
  0x53   : > { %1027 = vmatprep.mubr.f32.mxu1 %v8002_v0  ;;  %956 = vmatprep.mubr.f32.mxu0 %v8002_v0  ;;  %v568_v46 = vld [vmem:[#allocation3 + $0x320] sm:$0xff]  ;;  %v5527_v48 = vpack.c.bf16 %v566_v41, %v549_v39  ;;  %v565_v50 = vld [vmem:[#allocation3 + $0x308] sm:$0xff]  ;;  %v583_v51 = vld [vmem:[#allocation3 + $0x398] sm:$0xff]  ;;  %v5541_v52 = vpack.c.bf16 %v533_v44, %v516_v43  ;;  %v8014_v44 = vmov 0  }
  0x54   : > { %v548_v49 = vld [vmem:[#allocation3 + $0x280] sm:$0xff]  ;;  %v5543_v54 = vpack.c.bf16 %v568_v46, %v551_v45  ;;  %v550_v55 = vld [vmem:[#allocation3 + $0x290] sm:$0xff]  ;;  %v567_v56 = vld [vmem:[#allocation3 + $0x318] sm:$0xff]  ;;  %5816 = vset.pattern.permute.xlu1 %v8014_v44  ;;  %5817 = vset.pattern.permute.xlu0 %v8014_v44 }
  0x55   : > { %5494 = vmatpush1.bf16.msra.mxu0 %v5493_v61  ;;  %5510 = vmatpush1.bf16.msra.mxu1 %v5509_v62  ;;  %v600_v53 = vld [vmem:[#allocation3 + $0x420] sm:$0xff]  ;;  %v585_v57 = vld [vmem:[#allocation3 + $0x3a8] sm:$0xff]  ;;  %v602_v58 = vld [vmem:[#allocation3 + $0x430] sm:$0xff]  ;;  %v5529_v59 = vpack.c.bf16 %v565_v50, %v548_v49  ;;  %v5545_v1 = vpack.c.bf16 %v567_v56, %v550_v55 }
  0x56   : > { %5496 = vmatprep.subr.bf16.mxu0 %v5495_v2  ;;  %5512 = vmatprep.subr.bf16.mxu1 %v5511_v5  ;;  %v5531_v60 = vpack.c.bf16 %v600_v53, %v583_v51  ;;  %v582_v61 = vld [vmem:[#allocation3 + $0x390] sm:$0xff]  ;;  %v599_v62 = vld [vmem:[#allocation3 + $0x418] sm:$0xff]  ;;  %v5547_v2 = vpack.c.bf16 %v602_v58, %v585_v57  ;;  %v584_v3 = vld [vmem:[#allocation3 + $0x3a0] sm:$0xff] }
  0x57   : > { %v601_v4 = vld [vmem:[#allocation3 + $0x428] sm:$0xff]  ;;  %v5533_v5 = vpack.c.bf16 %v599_v62, %v582_v61  ;;  %v484_v7 = vld [vmem:[#allocation3 + $0x80] sm:$0xff]  ;;  %v603_v18 = vld [vmem:[#allocation3 + $0x438] sm:$0xff] }
  0x58   : > { %v5549_v6 = vpack.c.bf16 %v601_v4, %v584_v3  ;;  %v501_v8 = vld [vmem:[#allocation3 + $0x108] sm:$0xff]  ;;  %v6389_v49 = vld [vmem:[%s7988_s12 + $0x20] sm:$0xff]  ;;  %v6402_v55 = vld [vmem:[%s7988_s12 + $0x30] sm:$0xff] }
  0x59   : > { %5498 = vmatpush1.bf16.msra.mxu0 %v5497_v11  ;;  %5514 = vmatpush1.bf16.msra.mxu1 %v5513_v12  ;;  %v5552_v9 = vpack.c.bf16 %v501_v8, %v484_v7  ;;  %v518_v11 = vld [vmem:[#allocation3 + $0x190] sm:$0xff]  ;;  %v535_v12 = vld [vmem:[#allocation3 + $0x218] sm:$0xff]  ;;  %v569_v15 = vld [vmem:[#allocation3 + $0x328] sm:$0xff] }
  0x5a   : > { %5500 = vmatprep.subr.bf16.mxu0 %v5499_v14  ;;  %5516 = vmatprep.subr.bf16.mxu1 %v5515_v17  ;;  %v5555_v13 = vpack.c.bf16 %v535_v12, %v518_v11  ;;  %v552_v14 = vld [vmem:[#allocation3 + $0x2a0] sm:$0xff]  ;;  %v586_v17 = vld [vmem:[#allocation3 + $0x3b0] sm:$0xff]  ;;  %v1454_v37 = vld [vmem:[%s7978_s2 + $0x8] sm:$0xff] }
  0x5b   : > { %v5558_v16 = vpack.c.bf16 %v569_v15, %v552_v14  ;;  %v5561_v19 = vpack.c.bf16 %v603_v18, %v586_v17  ;;  %v6375_v45 = vld [vmem:[%s7988_s12 + $0x8] sm:$0xff]  ;;  %v6417_v62 = vld [vmem:[%s7988_s12 + $0x38] sm:$0xff] }
  0x5c   : > { %v6411_v58 = vld [vmem:[%s7988_s12 + $0x28] sm:$0xff] }
  0x5d   : > { %5502 = vmatpush1.bf16.msra.mxu0 %v5501_v23  ;;  %5518 = vmatpush1.bf16.msra.mxu1 %v5517_v24 }
  0x5e   : > { %5520 = vmatprep.subr.bf16.mxu0 %v5519_v25  ;;  %5536 = vmatprep.subr.bf16.mxu1 %v5535_v30 }
  0x60   : > { %4853 = vmatmul.mubr.msk.f32.vlgmr.msra.gmra.mrb[4].mxu0 %vm604_vm0, %v6309_v63  ;;  %4854 = vmatmul.mubr.msk.f32.vlgmr.msra.gmra.mrb[4].mxu1 %vm604_vm0, %v6309_v63 }
  0x61   : > { %5522 = vmatpush1.bf16.msra.mxu0 %v5521_v35  ;;  %5538 = vmatpush1.bf16.msra.mxu1 %v5537_v40 }
  0x62   : > { %5524 = vmatprep.subr.bf16.mxu0 %v5523_v36  ;;  %5540 = vmatprep.subr.bf16.mxu1 %v5539_v42  ;;  %v6368_v42 = vld [vmem:[%s7988_s12] sm:$0xff] }
  0x63   : > { %1098 = vmatprep.mubr.f32.mxu0 %v8002_v0  ;;  %1169 = vmatprep.mubr.f32.mxu1 %v8002_v0 }
  0x65   : > { %5526 = vmatpush1.bf16.msra.mxu0 %v5525_v47  ;;  %5542 = vmatpush1.bf16.msra.mxu1 %v5541_v52 }
  0x66   : > { %5528 = vmatprep.subr.bf16.mxu0 %v5527_v48  ;;  %5544 = vmatprep.subr.bf16.mxu1 %v5543_v54  ;;  %v6384_v48 = vld [vmem:[%s7988_s12 + $0x10] sm:$0xff]  ;;  %v6397_v54 = vld [vmem:[%s7988_s12 + $0x18] sm:$0xff] }
  0x69   : > { %5530 = vmatpush1.bf16.msra.mxu0 %v5529_v59  ;;  %5546 = vmatpush1.bf16.msra.mxu1 %v5545_v1 }
  0x6a   : > { %5532 = vmatprep.subr.bf16.mxu0 %v5531_v60  ;;  %5548 = vmatprep.subr.bf16.mxu1 %v5547_v2 }
  0x6d   : > { %5534 = vmatpush1.bf16.msra.mxu0 %v5533_v5  ;;  %5550 = vmatpush1.bf16.msra.mxu1 %v5549_v6 }
  0x6e   : > { %5551 = vmatprep.subr.bf16.mxu0 %v8012_v10 }
  0x70   : > { %4855 = vmatmul.mubr.msk.f32.vlgmr.msra.gmra.mrb[6].mxu0 %vm604_vm0, %v6309_v63  ;;  %4856 = vmatmul.mubr.msk.f32.vlgmr.msra.gmra.mrb[6].mxu1 %vm604_vm0, %v6309_v63 }
  0x71   : > { %5553 = vmatpush3.bf16.msra.mxu0 %v5552_v9  ;;  %5172 = vmatprep.mubr.msk.f32.mxu0 %vm6121_vm1, %v8002_v0 }
  0x72   : > { %5554 = vmatprep.subr.bf16.mxu0 %v8012_v10  ;;  %1605 = vmatprep.mubr.f32.mxu1 %v1454_v37 }
  0x75   : > { %5556 = vmatpush3.bf16.msra.mxu0 %v5555_v13 }
  0x76   : > { %5557 = vmatprep.subr.bf16.mxu0 %v8012_v10 }
  0x79   : > { %5559 = vmatpush3.bf16.msra.mxu0 %v5558_v16 }
  0x7a   : > { %5560 = vmatprep.subr.bf16.mxu0 %v8012_v10 }
  0x7d   : > { %5562 = vmatpush3.bf16.msra.mxu0 %v5561_v19 }
  0x7e   : > { %5595 = vmatprep.subr.bf16.mxu0 %v8012_v10 }
  0x80   : > { %5173 = vmatmul.mubr.msk.f32.vlgmr.msra.gmra.mrb[8].mxu0 %vm604_vm0, %v6309_v63 }
  0x81   : > { %5191 = vmatprep.mubr.msk.f32.mxu0 %vm6121_vm1, %v8002_v0 }
 0x113   : > { %v674_v20 = vpop.f32.mrb[0].mxu0  ;;  %v745_v21 = vpop.f32.mrb[0].mxu1 }
 0x114   : > { %1247 = vst.msk [vmem:[#allocation2] sm:$0xff] %vm1246_vm2, %v674_v20  ;;  %1250 = vrot.lane.b32.xlu1 %v674_v20, %s6122_s15  ;;  %v676_v22 = vpop.f32.mrb[1].mxu0  ;;  %1265 = vrot.lane.b32.xlu0 %v745_v21, %s6123_s16  ;;  %v747_v23 = vpop.f32.mrb[1].mxu1 }
 0x118   : > { %1276 = vrot.lane.b32.xlu1 %v745_v21, %s6124_s17  ;;  %1271 = vrot.lane.b32.xlu0 %v745_v21, %s6125_s18 }
 0x11b   : > { %v1469_v37 = vld [vmem:[#allocation2] sm:$0xff] }
 0x11c   : > { %1252 = vrot.lane.b32.xlu1 %v676_v22, %s6122_s15  ;;  %1258 = vrot.lane.b32.xlu0 %v676_v22, %s6126_s19  ;;  %s6136_s15 = smov 108  }
 0x120   : > { %1263 = vrot.lane.b32.xlu1 %v676_v22, %s6123_s16  ;;  %1278 = vrot.lane.b32.xlu0 %v747_v23, %s6124_s17  ;;  %s7994_s16 = smov 118   ;;  %s6138_s17 = smov 45  }
 0x123   : > { %v816_v63 = vpop.f32.mrb[2].mxu0  ;;  %v887_v25 = vpop.f32.mrb[2].mxu1 }
 0x124   : > { %1289 = vrot.lane.b32.xlu1 %v747_v23, %s6127_s20  ;;  %v818_v24 = vpop.f32.mrb[3].mxu0  ;;  %1284 = vrot.lane.b32.xlu0 %v747_v23, %s7998_s21  ;;  %v6348_v26 = vpop.f32.mrb[3].mxu1  ;;  %s6148_s21 = smov 37  }
 0x128   : > { %1302 = vrot.lane.b32.xlu1 %v816_v63, %s6129_s22  ;;  %1291 = vrot.lane.b32.xlu0 %v816_v63, %s6127_s20  ;;  %s6139_s20 = smov 110  }
 0x12c   : > { %1328 = vrot.lane.b32.xlu1 %v887_v25, %s6130_s23  ;;  %1297 = vrot.lane.b32.xlu0 %v816_v63, %s7996_s24  ;;  %s6147_s24 = smov 100  }
 0x130   : > { %1315 = vrot.lane.b32.xlu1 %v818_v24, %s6132_s27  ;;  %1317 = vrot.lane.b32.xlu0 %v887_v25, %s6132_s27  ;;  %s6140_s27 = smov 47  }
 0x133   : > { %v958_v27 = vpop.f32.mrb[4].mxu0  ;;  %v1029_v28 = vpop.f32.mrb[4].mxu1 }
 0x134   : > { %1341 = vrot.lane.b32.xlu1 %v6348_v26, %s6133_s28  ;;  %v960_v29 = vpop.f32.mrb[5].mxu0  ;;  %1323 = vrot.lane.b32.xlu0 %v887_v25, %s7992_s29  ;;  %v1031_v30 = vpop.f32.mrb[5].mxu1  ;;  %s6141_s29 = smov 41  }
 0x138   : > { %1380 = vrot.lane.b32.xlu1 %v1029_v28, %s6135_s30  ;;  %1304 = vrot.lane.b32.xlu0 %v818_v24, %s6129_s22  ;;  %s6142_s22 = smov 112  }
 0x13c   : > { %1375 = vrot.lane.b32.xlu1 %v1029_v28, %s6136_s15  ;;  %1310 = vrot.lane.b32.xlu0 %v818_v24, %s7994_s16  ;;  %s6143_s15 = smov 106   ;;  %s6144_s16 = smov 39  }
 0x140   : > { %1367 = vrot.lane.b32.xlu1 %v960_v29, %s6138_s17  ;;  %1330 = vrot.lane.b32.xlu0 %v6348_v26, %s6130_s23  ;;  %s6145_s23 = smov 104  }
 0x143   : > { %v1100_v31 = vpop.f32.mrb[6].mxu0  ;;  %v1171_v33 = vpop.f32.mrb[6].mxu1 }
 0x144   : > { %1362 = vrot.lane.b32.xlu1 %v960_v29, %s6139_s20  ;;  %v1102_v32 = vpop.f32.mrb[7].mxu0  ;;  %1354 = vrot.lane.b32.xlu0 %v958_v27, %s6140_s27  ;;  %v1173_v34 = vpop.f32.mrb[7].mxu1  ;;  %s6146_s20 = smov 35  }
 0x148   : > { %1393 = vrot.lane.b32.xlu1 %v1031_v30, %s6141_s29  ;;  %1349 = vrot.lane.b32.xlu0 %v958_v27, %s6142_s22  ;;  %s6149_s22 = smov 102  }
 0x14c   : > { %1388 = vrot.lane.b32.xlu1 %v1031_v30, %s6143_s15  ;;  %1369 = vrot.lane.b32.xlu0 %v1029_v28, %s6138_s17  ;;  %s6150_s17 = smov 33   ;;  %s8030_s15 = smov 121  }
 0x150   : > { %1406 = vrot.lane.b32.xlu1 %v1100_v31, %s6144_s16  ;;  %1356 = vrot.lane.b32.xlu0 %v960_v29, %s6140_s27  ;;  %s6151_s27 = smov 98  }
 0x153   : > { %v1242_v35 = vpop.f32.mrb[8].mxu0 }
 0x154   : > { %1401 = vrot.lane.b32.xlu1 %v1100_v31, %s6145_s23  ;;  %v5174_v36 = vpop.f32.mrb[9].mxu0  ;;  %1382 = vrot.lane.b32.xlu0 %v1031_v30, %s6135_s30  ;;  %s8122_s30 = smov 122   ;;  %s6175_s23 = smov 117  }
 0x158   : > { %1432 = vrot.lane.b32.xlu1 %v1171_v33, %s6146_s20  ;;  %1395 = vrot.lane.b32.xlu0 %v1100_v31, %s6141_s29  ;;  %s8124_s29 = smov 118  }
 0x15c   : > { %1427 = vrot.lane.b32.xlu1 %v1171_v33, %s6147_s24  ;;  %1421 = vrot.lane.b32.xlu0 %v1171_v33, %s6148_s21  ;;  %s6152_s24 = smov 114  }
 0x160   : > { %1419 = vrot.lane.b32.xlu1 %v1102_v32, %s6148_s21  ;;  %1408 = vrot.lane.b32.xlu0 %v1102_v32, %s6144_s16  ;;  %s6163_s16 = smov 127   ;;  %s8123_s21 = smov 120  }
 0x164   : > { %1414 = vrot.lane.b32.xlu1 %v1102_v32, %s6149_s22  ;;  %1343 = vrot.lane.b32.xlu0 %v958_v27, %s6133_s28  ;;  %s6170_s22 = smov 8   ;;  %s8028_s28 = smov 119  }
 0x168   : > { %1445 = vrot.lane.b32.xlu1 %v1173_v34, %s6150_s17  ;;  %1434 = vrot.lane.b32.xlu0 %v1173_v34, %s6146_s20  ;;  %s8125_s20 = smov 116  }
 0x16c   : > { %1440 = vrot.lane.b32.xlu1 %v1173_v34, %s6151_s27  ;;  %1447 = vrot.lane.b32.xlu0 %v1242_v35, %s6150_s17  ;;  %s6171_s17 = smov 125   ;;  %s8032_s27 = smov 123  }
 0x170   : > { %1336 = vrot.lane.b32.xlu0 %v6348_v26, %s6152_s24  ;;  %1503 = vperm.xlu1 %5816, %v6368_v42  }
 0x174   : > { %1508 = vperm.xlu0 %5817, %v6375_v45   ;;  %1513 = vperm.xlu1 %5816, %v6384_v48  }
 0x178   : > { %1523 = vperm.xlu0 %5817, %v6389_v49   ;;  %1518 = vperm.xlu1 %5816, %v6397_v54  }
 0x17c   : > { %1533 = vperm.xlu0 %5817, %v6402_v55   ;;  %1528 = vperm.xlu1 %5816, %v6411_v58  }
 0x180   : > { %1538 = vperm.xlu1 %5816, %v6417_v62  }
 0x186   : > { %v1251_v38 = vpop.permute.xlu1 %1250  ;;  %v1266_v39 = vpop.permute.xlu0 %1265 }
 0x18a   : > { %v1277_v40 = vpop.permute.xlu1 %1276  ;;  %v1272_v41 = vpop.permute.xlu0 %1271 }
 0x18b   : > { %1274 = vst.msk [vmem:[#allocation2 + $0x20] sm:$0xff] %vm1246_vm2, %v1272_v41 }
 0x18e   : > { %v1253_v43 = vpop.permute.xlu1 %1252  ;;  %v1259_v46 = vpop.permute.xlu0 %1258 }
 0x18f   : > { %v1255_v47 = vsel %vm1254_vm3, %v1251_v38, %v1253_v43  ;;  %1261 = vst.msk [vmem:[#allocation2 + $0x10] sm:$0xff] %vm1246_vm2, %v1259_v46  ;;  %vm1345_vm3 = vcmask 400384  }
 0x190   : > { %1257 = vst.msk [vmem:[#allocation2 + $0x8] sm:$0xff] %vm1246_vm2, %v1255_v47 }
 0x192   : > { %v1264_v50 = vpop.permute.xlu1 %1263  ;;  %v1279_v51 = vpop.permute.xlu0 %1278 }
 0x193   : > { %v1268_v52 = vsel %vm1267_vm4, %v1264_v50, %v1266_v39  ;;  %v1281_v53 = vsel %vm1280_vm5, %v1277_v40, %v1279_v51  ;;  %vm1436_vm4 = vcmask 285696   ;;  %vm1449_vm5 = vcmask 269312  }
 0x194   : > { %1270 = vst.msk [vmem:[#allocation2 + $0x18] sm:$0xff] %vm1246_vm2, %v1268_v52  ;;  %1283 = vst.msk [vmem:[#allocation2 + $0x28] sm:$0xff] %vm1246_vm2, %v1281_v53 }
 0x196   : > { %v1290_v56 = vpop.permute.xlu1 %1289  ;;  %v1285_v57 = vpop.permute.xlu0 %1284  ;;  %v1471_v50 = vld [vmem:[#allocation2 + $0x10] sm:$0xff] }
 0x197   : > { %1287 = vst.msk [vmem:[#allocation2 + $0x30] sm:$0xff] %vm1246_vm2, %v1285_v57  ;;  %v1470_v31 = vld [vmem:[#allocation2 + $0x8] sm:$0xff] }
 0x198   : > { %v5565_v39 = vpack.c.bf16 %v1470_v31, %v1469_v37 }
 0x19a   : > { %v1303_v59 = vpop.permute.xlu1 %1302  ;;  %v1292_v60 = vpop.permute.xlu0 %1291 }
 0x19b   : > { %v1294_v61 = vsel %vm1293_vm6, %v1290_v56, %v1292_v60  ;;  %v1472_v46 = vld [vmem:[#allocation2 + $0x18] sm:$0xff]  ;;  %v1474_v60 = vld [vmem:[#allocation2 + $0x28] sm:$0xff]  ;;  %vm1703_vm6 = vcmask 7168  }
 0x19c   : > { %1296 = vst.msk [vmem:[#allocation2 + $0x38] sm:$0xff] %vm1246_vm2, %v1294_v61  ;;  %v5569_v52 = vpack.c.bf16 %v1472_v46, %v1471_v50  ;;  %v1453_v46 = vld [vmem:[%s7978_s2] sm:$0xff]  ;;  %v1455_v50 = vld [vmem:[%s7978_s2 + $0x10] sm:$0xff] }
 0x19e   : > { %v1329_v1 = vpop.permute.xlu1 %1328  ;;  %v1298_v2 = vpop.permute.xlu0 %1297 }
 0x19f   : > { %1300 = vst.msk [vmem:[#allocation2 + $0x40] sm:$0xff] %vm1246_vm2, %v1298_v2  ;;  %v1473_v2 = vld [vmem:[#allocation2 + $0x20] sm:$0xff] }
 0x1a2   : > { %v1316_v3 = vpop.permute.xlu1 %1315  ;;  %v1318_v4 = vpop.permute.xlu0 %1317 }
 0x1a3   : > { %v1320_v5 = vsel %vm1319_vm7, %v1316_v3, %v1318_v4  ;;  %v5573_v4 = vpack.c.bf16 %v1474_v60, %v1473_v2  ;;  %v1464_v60 = vld [vmem:[%s7978_s2 + $0x58] sm:$0xff]  ;;  %v1465_v2 = vld [vmem:[%s7978_s2 + $0x60] sm:$0xff]  ;;  %vm1831_vm7 = vcmask 64512  }
 0x1a4   : > { %1322 = vst.msk [vmem:[#allocation2 + $0x58] sm:$0xff] %vm1246_vm2, %v1320_v5 }
 0x1a6   : > { %v6423_v6 = vpop.permute.xlu1 %1341  ;;  %v1324_v7 = vpop.permute.xlu0 %1323 }
 0x1a7   : > { %1326 = vst.msk [vmem:[#allocation2 + $0x60] sm:$0xff] %vm1246_vm2, %v1324_v7 }
 0x1aa   : > { %v1381_v8 = vpop.permute.xlu1 %1380  ;;  %v1305_v9 = vpop.permute.xlu0 %1304 }
 0x1ab   : > { %v1307_v11 = vsel %vm1306_vm8, %v1303_v59, %v1305_v9  ;;  %v1476_v9 = vld [vmem:[#allocation2 + $0x38] sm:$0xff]  ;;  %vm2218_vm8 = vcmask 1040384  }
 0x1ac   : > { %1309 = vst.msk [vmem:[#allocation2 + $0x48] sm:$0xff] %vm1246_vm2, %v1307_v11 }
 0x1ae   : > { %v1376_v12 = vpop.permute.xlu1 %1375  ;;  %v1311_v13 = vpop.permute.xlu0 %1310 }
 0x1af   : > { %1378 = vst.msk [vmem:[#allocation2 + $0xa0] sm:$0xff] %vm1246_vm2, %v1376_v12  ;;  %1313 = vst.msk [vmem:[#allocation2 + $0x50] sm:$0xff] %vm1246_vm2, %v1311_v13  ;;  %v1475_v12 = vld [vmem:[#allocation2 + $0x30] sm:$0xff] }
 0x1b2   : > { %v1368_v14 = vpop.permute.xlu1 %1367  ;;  %v1331_v15 = vpop.permute.xlu0 %1330 }
 0x1b3   : > { %v1333_v16 = vsel %vm1332_vm9, %v1329_v1, %v1331_v15 }
 0x1b4   : > { %1335 = vst.msk [vmem:[#allocation2 + $0x68] sm:$0xff] %vm1246_vm2, %v1333_v16  ;;  %v1478_v16 = vld [vmem:[#allocation2 + $0x48] sm:$0xff] }
 0x1b6   : > { %v1363_v17 = vpop.permute.xlu1 %1362  ;;  %v1355_v18 = vpop.permute.xlu0 %1354  ;;  %v1489_v53 = vld [vmem:[#allocation2 + $0xa0] sm:$0xff] }
 0x1b7   : > { %1365 = vst.msk [vmem:[#allocation2 + $0x90] sm:$0xff] %vm1246_vm2, %v1363_v17 }
 0x1ba   : > { %v1394_v19 = vpop.permute.xlu1 %1393  ;;  %v1350_v20 = vpop.permute.xlu0 %1349 }
 0x1bb   : > { %1352 = vst.msk [vmem:[#allocation2 + $0x80] sm:$0xff] %vm1246_vm2, %v1350_v20  ;;  %v1482_v31 = vld [vmem:[#allocation2 + $0x68] sm:$0xff] }
 0x1be   : > { %v1389_v21 = vpop.permute.xlu1 %1388  ;;  %v1370_v22 = vpop.permute.xlu0 %1369  ;;  %v1487_v40 = vld [vmem:[#allocation2 + $0x90] sm:$0xff] }
 0x1bf   : > { %1391 = vst.msk [vmem:[#allocation2 + $0xb0] sm:$0xff] %vm1246_vm2, %v1389_v21  ;;  %v1372_v23 = vsel %vm1371_vm10, %v1368_v14, %v1370_v22  ;;  %v5577_v14 = vpack.c.bf16 %v1476_v9, %v1475_v12  ;;  %v1477_v21 = vld [vmem:[#allocation2 + $0x40] sm:$0xff] }
 0x1c0   : > { %1374 = vst.msk [vmem:[#allocation2 + $0x98] sm:$0xff] %vm1246_vm2, %v1372_v23  ;;  %v5581_v22 = vpack.c.bf16 %v1478_v16, %v1477_v21 }
 0x1c2   : > { %v1407_v63 = vpop.permute.xlu1 %1406  ;;  %v1357_v24 = vpop.permute.xlu0 %1356  ;;  %v1485_v33 = vld [vmem:[#allocation2 + $0x80] sm:$0xff] }
 0x1c3   : > { %v1359_v25 = vsel %vm1358_vm11, %v1355_v18, %v1357_v24 }
 0x1c4   : > { %1361 = vst.msk [vmem:[#allocation2 + $0x88] sm:$0xff] %vm1246_vm2, %v1359_v25 }
 0x1c6   : > { %v1402_v26 = vpop.permute.xlu1 %1401  ;;  %v1383_v27 = vpop.permute.xlu0 %1382  ;;  %v1491_v5 = vld [vmem:[#allocation2 + $0xb0] sm:$0xff] }
 0x1c7   : > { %1404 = vst.msk [vmem:[#allocation2 + $0xc0] sm:$0xff] %vm1246_vm2, %v1402_v26  ;;  %v1385_v28 = vsel %vm1384_vm12, %v1381_v8, %v1383_v27  ;;  %v1488_v35 = vld [vmem:[#allocation2 + $0x98] sm:$0xff]  ;;  %v1479_v26 = vld [vmem:[#allocation2 + $0x50] sm:$0xff] }
 0x1c8   : > { %1387 = vst.msk [vmem:[#allocation2 + $0xa8] sm:$0xff] %vm1246_vm2, %v1385_v28  ;;  %v5567_v43 = vpack.c.bf16 %v1488_v35, %v1487_v40  ;;  %v1480_v28 = vld [vmem:[#allocation2 + $0x58] sm:$0xff]  ;;  %v1481_v35 = vld [vmem:[#allocation2 + $0x60] sm:$0xff] }
 0x1ca   : > { %v1433_v29 = vpop.permute.xlu1 %1432  ;;  %v1396_v30 = vpop.permute.xlu0 %1395 }
 0x1cb   : > { %v1398_v32 = vsel %vm1397_vm13, %v1394_v19, %v1396_v30  ;;  %v1486_v34 = vld [vmem:[#allocation2 + $0x88] sm:$0xff] }
 0x1cc   : > { %1400 = vst.msk [vmem:[#allocation2 + $0xb8] sm:$0xff] %vm1246_vm2, %v1398_v32  ;;  %v5563_v36 = vpack.c.bf16 %v1486_v34, %v1485_v33 }
 0x1ce   : > { %v1428_v38 = vpop.permute.xlu1 %1427  ;;  %5564 = vmatprep.subr.bf16.mxu1 %v5563_v36  ;;  %v1422_v41 = vpop.permute.xlu0 %1421  ;;  %v1493_v18 = vld [vmem:[#allocation2 + $0xc0] sm:$0xff]  ;;  %v5589_v36 = vpack.c.bf16 %v1482_v31, %v1481_v35 }
 0x1cf   : > { %1430 = vst.msk [vmem:[#allocation2 + $0xe0] sm:$0xff] %vm1246_vm2, %v1428_v38  ;;  %5566 = vmatpush3.bf16.msra.mxu1 %v5565_v39  ;;  %v1490_v47 = vld [vmem:[#allocation2 + $0xa8] sm:$0xff] }
 0x1d0   : > { %5568 = vmatprep.subr.bf16.mxu1 %v5567_v43  ;;  %v5571_v59 = vpack.c.bf16 %v1490_v47, %v1489_v53  ;;  %v1456_v47 = vld [vmem:[%s7978_s2 + $0x18] sm:$0xff] }
 0x1d1   : > { %v1460_v53 = vld [vmem:[%s7978_s2 + $0x38] sm:$0xff] }
 0x1d2   : > { %v1420_v51 = vpop.permute.xlu1 %1419  ;;  %v1409_v57 = vpop.permute.xlu0 %1408 }
 0x1d3   : > { %v1424_v56 = vsel %vm1423_vm14, %v1420_v51, %v1422_v41  ;;  %v1411_v61 = vsel %vm1410_vm15, %v1407_v63, %v1409_v57  ;;  %5570 = vmatpush3.bf16.msra.mxu1 %v5569_v52  ;;  %v1492_v1 = vld [vmem:[#allocation2 + $0xb8] sm:$0xff]  ;;  %v1458_v51 = vld [vmem:[%s7978_s2 + $0x28] sm:$0xff]  ;;  %v1457_v52 = vld [vmem:[%s7978_s2 + $0x20] sm:$0xff] }
 0x1d4   : > { %1426 = vst.msk [vmem:[#allocation2 + $0xd8] sm:$0xff] %vm1246_vm2, %v1424_v56  ;;  %1413 = vst.msk [vmem:[#allocation2 + $0xc8] sm:$0xff] %vm1246_vm2, %v1411_v61  ;;  %5572 = vmatprep.subr.bf16.mxu1 %v5571_v59  ;;  %v5575_v8 = vpack.c.bf16 %v1492_v1, %v1491_v5  ;;  %v1459_v56 = vld [vmem:[%s7978_s2 + $0x30] sm:$0xff]  ;;  %v1462_v57 = vld [vmem:[%s7978_s2 + $0x48] sm:$0xff] }
 0x1d5   : > { %v1461_v59 = vld [vmem:[%s7978_s2 + $0x40] sm:$0xff]  ;;  %v1463_v61 = vld [vmem:[%s7978_s2 + $0x50] sm:$0xff]  ;;  %v1466_v1 = vld [vmem:[%s7978_s2 + $0x68] sm:$0xff] }
 0x1d6   : > { %v1415_v3 = vpop.permute.xlu1 %1414  ;;  %v1344_v7 = vpop.permute.xlu0 %1343  ;;  %v1497_v32 = vld [vmem:[#allocation2 + $0xe0] sm:$0xff] }
 0x1d7   : > { %1417 = vst.msk [vmem:[#allocation2 + $0xd0] sm:$0xff] %vm1246_vm2, %v1415_v3  ;;  %v1346_v11 = vsel %vm1345_vm3, %v6423_v6, %v1344_v7  ;;  %5574 = vmatpush3.bf16.msra.mxu1 %v5573_v4  ;;  %v1468_v3 = vld [vmem:[%s7978_s2 + $0x78] sm:$0xff]  ;;  %v1467_v4 = vld [vmem:[%s7978_s2 + $0x70] sm:$0xff] }
 0x1d8   : > { %1348 = vst.msk [vmem:[#allocation2 + $0x78] sm:$0xff] %vm1246_vm2, %v1346_v11  ;;  %5576 = vmatprep.subr.bf16.mxu1 %v5575_v8 }
 0x1da   : > { %v1446_v13 = vpop.permute.xlu1 %1445  ;;  %v1435_v15 = vpop.permute.xlu0 %1434 }
 0x1db   : > { %v1437_v17 = vsel %vm1436_vm4, %v1433_v29, %v1435_v15  ;;  %5578 = vmatpush3.bf16.msra.mxu1 %v5577_v14  ;;  %v1494_v19 = vld [vmem:[#allocation2 + $0xc8] sm:$0xff]  ;;  %v1496_v63 = vld [vmem:[#allocation2 + $0xd8] sm:$0xff]  ;;  %v5585_v29 = vpack.c.bf16 %v1480_v28, %v1479_v26 }
 0x1dc   : > { %1439 = vst.msk [vmem:[#allocation2 + $0xe8] sm:$0xff] %vm1246_vm2, %v1437_v17  ;;  %v5579_v20 = vpack.c.bf16 %v1494_v19, %v1493_v18 }
 0x1de   : > { %v1441_v6 = vpop.permute.xlu1 %1440  ;;  %v1495_v23 = vld [vmem:[#allocation2 + $0xd0] sm:$0xff]  ;;  %5580 = vmatprep.subr.bf16.mxu1 %v5579_v20  ;;  %v1448_v24 = vpop.permute.xlu0 %1447 }
 0x1df   : > { %1443 = vst.msk [vmem:[#allocation2 + $0xf0] sm:$0xff] %vm1246_vm2, %v1441_v6  ;;  %v5583_v25 = vpack.c.bf16 %v1496_v63, %v1495_v23  ;;  %v1450_v27 = vsel %vm1449_vm5, %v1446_v13, %v1448_v24  ;;  %5582 = vmatpush3.bf16.msra.mxu1 %v5581_v22  ;;  %v1484_v41 = vld [vmem:[#allocation2 + $0x78] sm:$0xff] }
 0x1e0   : > { %1452 = vst.msk [vmem:[#allocation2 + $0xf8] sm:$0xff] %vm1246_vm2, %v1450_v27 }
 0x1e1   : > { %5584 = vmatprep.subr.bf16.mxu1 %v5583_v25 }
 0x1e2   : > { %v1337_v30 = vpop.permute.xlu0 %1336 }
 0x1e3   : > { %1339 = vst.msk [vmem:[#allocation2 + $0x70] sm:$0xff] %vm1246_vm2, %v1337_v30  ;;  %5586 = vmatpush3.bf16.msra.mxu1 %v5585_v29  ;;  %v1498_v33 = vld [vmem:[#allocation2 + $0xe8] sm:$0xff] }
 0x1e4   : > { %v5587_v34 = vpack.c.bf16 %v1498_v33, %v1497_v32 }
 0x1e6   : > { %v1499_v37 = vld [vmem:[#allocation2 + $0xf0] sm:$0xff]  ;;  %5588 = vmatprep.subr.bf16.mxu1 %v5587_v34 }
 0x1e7   : > { %5590 = vmatpush3.bf16.msra.mxu1 %v5589_v36  ;;  %v1500_v38 = vld [vmem:[#allocation2 + $0xf8] sm:$0xff] }
 0x1e8   : > { %v5591_v39 = vpack.c.bf16 %v1500_v38, %v1499_v37 }
 0x1ea   : > { %5592 = vmatprep.subr.bf16.mxu1 %v5591_v39  ;;  %v1483_v40 = vld [vmem:[#allocation2 + $0x70] sm:$0xff] }
 0x1eb   : > { %v5593_v43 = vpack.c.bf16 %v1484_v41, %v1483_v40 }
 0x1ed   : > { %5594 = vmatpush3.bf16.msra.mxu1 %v5593_v43 }
 0x1ef   : > { %v1504_v9 = vpop.permute.xlu1 %1503 }
 0x1f0   : > { %1606 = vmatmul.mubr.f32.vlgmr.msra.gmra.mrb[8].mxu1 %v1453_v46 }
 0x1f1   : > { %1610 = vmatprep.mubr.f32.mxu1 %v1456_v47 }
 0x1f3   : > { %v1509_v16 = vpop.permute.xlu0 %1508  ;;  %v1514_v19 = vpop.permute.xlu1 %1513 }
 0x1f4   : > { %1611 = vmatmul.mubr.f32.gmra.mrb[10].mxu1 %v1455_v50 }
 0x1f5   : > { %1615 = vmatprep.mubr.f32.mxu1 %v1458_v51 }
 0x1f7   : > { %v1519_v28 = vpop.permute.xlu1 %1518  ;;  %v1524_v35 = vpop.permute.xlu0 %1523 }
 0x1f8   : > { %1616 = vmatmul.mubr.f32.gmra.mrb[12].mxu1 %v1457_v52 }
 0x1f9   : > { %1620 = vmatprep.mubr.f32.mxu1 %v1460_v53 }
 0x1fb   : > { %v1529_v43 = vpop.permute.xlu1 %1528 }
 0x1fc   : > { %1621 = vmatmul.mubr.f32.gmra.mrb[14].mxu1 %v1459_v56  ;;  %v1534_v56 = vpop.permute.xlu0 %1533 }
 0x1fd   : > { %1625 = vmatprep.mubr.f32.mxu1 %v1462_v57 }
 0x200   : > { %1626 = vmatmul.mubr.f32.gmra.mrb[16].mxu1 %v1461_v59 }
 0x201   : > { %1630 = vmatprep.mubr.f32.mxu1 %v1464_v60 }
 0x204   : > { %1631 = vmatmul.mubr.f32.gmra.mrb[18].mxu1 %v1463_v61 }
 0x205   : > { %1635 = vmatprep.mubr.f32.mxu1 %v1466_v1 }
 0x208   : > { %1636 = vmatmul.mubr.f32.gmra.mrb[20].mxu1 %v1465_v2 }
 0x209   : > { %1640 = vmatprep.mubr.f32.mxu1 %v1468_v3  ;;  %v1539_v3 = vpop.permute.xlu1 %1538 }
 0x20c   : > { %1641 = vmatmul.mubr.f32.gmra.mrb[22].mxu1 %v1467_v4 }
 0x2c3   : > { %v4994_v5 = vpop.f32.mrb[8].mxu1 }
 0x2c4   : > { %v4995_v7 = vpop.f32.mrb[9].mxu1 }
 0x2c5   : > { %v4996_v8 = vadd.f32 %v4995_v7, %v4994_v5 }
 0x2c7   : > { %v6493_v11 = vadd.f32 %v4996_v8, %v1504_v9  ;;  %v4997_v12 = vpop.f32.mrb[10].mxu1  ;;  %v6154_v9 = vmov 1  }
 0x2c8   : > { %v4998_v13 = vpop.f32.mrb[11].mxu1  ;;  %5818 = vset.pattern.permute.xlu1 %v6154_v9 }
 0x2c9   : > { %v4999_v14 = vadd.f32 %v4998_v13, %v4997_v12  ;;  %v1646_v15 = vsel %vm1246_vm2, %v6493_v11, 0.0  ;;  %v1679_v6 = vsel %vm1246_vm2, %v6493_v11, -inf }
 0x2ca   : > { %1647 = vadd.xlane.f32.xlu0 %v1646_v15 }
 0x2cb   : > { %v6497_v17 = vadd.f32 %v4999_v14, %v1509_v16  ;;  %v5000_v18 = vpop.f32.mrb[12].mxu1 }
 0x2cc   : > { %v5001_v20 = vpop.f32.mrb[13].mxu1 }
 0x2cd   : > { %v5002_v21 = vadd.f32 %v5001_v20, %v5000_v18  ;;  %v1649_v22 = vsel %vm1246_vm2, %v6497_v17, 0.0  ;;  %v1682_v26 = vsel %vm1246_vm2, %v6497_v17, -inf }
 0x2ce   : > { %1680 = vmax.xlane.f32.xlu0 %v1679_v6  ;;  %1650 = vadd.xlane.f32.xlu1 %v1649_v22 }
 0x2cf   : > { %v6503_v23 = vadd.f32 %v5002_v21, %v1514_v19  ;;  %v5003_v63 = vpop.f32.mrb[14].mxu1 }
 0x2d0   : > { %v5004_v24 = vpop.f32.mrb[15].mxu1 }
 0x2d1   : > { %v5005_v25 = vadd.f32 %v5004_v24, %v5003_v63  ;;  %v1652_v27 = vsel %vm1246_vm2, %v6503_v23, 0.0  ;;  %v1685_v34 = vsel %vm1246_vm2, %v6503_v23, -inf }
 0x2d2   : > { %1683 = vmax.xlane.f32.xlu0 %v1682_v26  ;;  %1653 = vadd.xlane.f32.xlu1 %v1652_v27 }
 0x2d3   : > { %v6509_v29 = vadd.f32 %v5005_v25, %v1519_v28  ;;  %v5006_v30 = vpop.f32.mrb[16].mxu1 }
 0x2d4   : > { %v5007_v31 = vpop.f32.mrb[17].mxu1 }
 0x2d5   : > { %v5008_v32 = vadd.f32 %v5007_v31, %v5006_v30  ;;  %v1655_v33 = vsel %vm1246_vm2, %v6509_v29, 0.0  ;;  %v1688_v40 = vsel %vm1246_vm2, %v6509_v29, -inf }
 0x2d6   : > { %1656 = vadd.xlane.f32.xlu0 %v1655_v33  ;;  %1686 = vmax.xlane.f32.xlu1 %v1685_v34 }
 0x2d7   : > { %v6515_v36 = vadd.f32 %v5008_v32, %v1524_v35  ;;  %v5009_v37 = vpop.f32.mrb[18].mxu1 }
 0x2d8   : > { %v5010_v38 = vpop.f32.mrb[19].mxu1 }
 0x2d9   : > { %v5011_v39 = vadd.f32 %v5010_v38, %v5009_v37  ;;  %v1658_v41 = vsel %vm1246_vm2, %v6515_v36, 0.0  ;;  %v1691_v53 = vsel %vm1246_vm2, %v6515_v36, -inf }
 0x2da   : > { %1689 = vmax.xlane.f32.xlu0 %v1688_v40  ;;  %1659 = vadd.xlane.f32.xlu1 %v1658_v41 }
 0x2db   : > { %v6521_v46 = vadd.f32 %v5011_v39, %v1529_v43  ;;  %v5012_v47 = vpop.f32.mrb[20].mxu1 }
 0x2dc   : > { %v5013_v50 = vpop.f32.mrb[21].mxu1 }
 0x2dd   : > { %v5014_v51 = vadd.f32 %v5013_v50, %v5012_v47  ;;  %v1661_v52 = vsel %vm1246_vm2, %v6521_v46, 0.0  ;;  %v1694_v1 = vsel %vm1246_vm2, %v6521_v46, -inf }
 0x2de   : > { %1662 = vadd.xlane.f32.xlu0 %v1661_v52  ;;  %1692 = vmax.xlane.f32.xlu1 %v1691_v53 }
 0x2df   : > { %v6527_v57 = vadd.f32 %v5014_v51, %v1534_v56  ;;  %v5015_v59 = vpop.f32.mrb[22].mxu1 }
 0x2e0   : > { %v5016_v60 = vpop.f32.mrb[23].mxu1 }
 0x2e1   : > { %v5017_v61 = vadd.f32 %v5016_v60, %v5015_v59  ;;  %v1664_v2 = vsel %vm1246_vm2, %v6527_v57, 0.0  ;;  %v1697_v7 = vsel %vm1246_vm2, %v6527_v57, -inf  ;;  %v1712_v60 = vld [vmem:[%s7979_s3] sm:$0xff] }
 0x2e2   : > { %1695 = vmax.xlane.f32.xlu0 %v1694_v1  ;;  %1665 = vadd.xlane.f32.xlu1 %v1664_v2  ;;  %v6155_v1 = vmov 2   ;;  %v6570_v2 = vld [vmem:[%s7982_s6] sm:$0xff] }
 0x2e3   : > { %v6533_v4 = vadd.f32 %v5017_v61, %v1539_v3  ;;  %v1791_v61 = vld [vmem:[%s7980_s4] sm:$0xff]  ;;  %5819 = vset.pattern.permute.xlu0 %v6155_v1 }
 0x2e4   : > { %v6578_v3 = vld [vmem:[%s7982_s6 + $0x20] sm:$0xff] }
 0x2e5   : > { %v1667_v5 = vsel %vm1246_vm2, %v6533_v4, 0.0  ;;  %v1700_v8 = vsel %vm1246_vm2, %v6533_v4, -inf }
 0x2e6   : > { %1668 = vadd.xlane.f32.xlu0 %v1667_v5  ;;  %1698 = vmax.xlane.f32.xlu1 %v1697_v7  ;;  %v6158_v5 = vmov 5   ;;  %v6159_v7 = vmov 6  }
 0x2ea   : > { %1701 = vmax.xlane.f32.xlu0 %v1700_v8 }
 0x2f7   : > { %1714 = vperm.xlu1 %5818, %v6368_v42  }
 0x2fb   : > { %5820 = vset.pattern.permute.xlu1 %v6155_v1 }
 0x2fc   : > { %1804 = vperm.xlu1 %5820, %v6375_v45   ;;  %v6594_v45 = vld [vmem:[%s7982_s6 + $0x8] sm:$0xff] }
 0x300   : > { %1800 = vperm.xlu0 %5819, %v6368_v42   ;;  %1808 = vperm.xlu1 %5820, %v6384_v48   ;;  %v6586_v42 = vld [vmem:[%s7982_s6 + $0x30] sm:$0xff]  ;;  %v6602_v48 = vld [vmem:[%s7982_s6 + $0x18] sm:$0xff] }
 0x304   : > { %5821 = vset.pattern.permute.xlu0 %v6154_v9  ;;  %1812 = vperm.xlu1 %5820, %v6397_v54   ;;  %v6617_v54 = vld [vmem:[%s7982_s6 + $0x38] sm:$0xff] }
 0x305   : > { %2441 = vperm.xlu0 %5821, %v6570_v2  }
 0x308   : > { %1816 = vperm.xlu1 %5820, %v6389_v49   ;;  %v6612_v49 = vld [vmem:[%s7982_s6 + $0x10] sm:$0xff] }
 0x309   : > { %2457 = vperm.xlu0 %5821, %v6578_v3  }
 0x30c   : > { %1820 = vperm.xlu1 %5820, %v6411_v58   ;;  %v8004_v58 = vmov 3  }
 0x30d   : > { %2465 = vperm.xlu0 %5821, %v6586_v42  }
 0x310   : > { %1824 = vperm.xlu1 %5820, %v6402_v55   ;;  %v8000_v55 = vmov 4  }
 0x311   : > { %5834 = vset.pattern.permute.xlu0 %v6155_v1 }
 0x312   : > { %2525 = vperm.xlu0 %5834, %v6594_v45  }
 0x314   : > { %1828 = vperm.xlu1 %5820, %v6417_v62   ;;  %v6635_v62 = vld [vmem:[%s7982_s6 + $0x28] sm:$0xff] }
 0x316   : > { %2533 = vperm.xlu0 %5834, %v6602_v48  }
 0x318   : > { %5822 = vset.pattern.permute.xlu1 %v6154_v9 }
 0x319   : > { %2445 = vperm.xlu1 %5822, %v6594_v45  }
 0x31a   : > { %2537 = vperm.xlu0 %5834, %v6578_v3  }
 0x31d   : > { %5823 = vset.pattern.permute.xlu1 %v6155_v1 }
 0x31e   : > { %2521 = vperm.xlu1 %5823, %v6570_v2   ;;  %2549 = vperm.xlu0 %5834, %v6617_v54  }
 0x322   : > { %5824 = vset.pattern.permute.xlu1 %v6154_v9  ;;  %5840 = vset.pattern.permute.xlu0 %v8000_v55 }
 0x323   : > { %2449 = vperm.xlu1 %5824, %v6612_v49   ;;  %2693 = vperm.xlu0 %5840, %v6602_v48  }
 0x327   : > { %2453 = vperm.xlu1 %5824, %v6602_v48  }
 0x32b   : > { %5825 = vset.pattern.permute.xlu1 %v8004_v58 }
 0x32c   : > { %2605 = vperm.xlu1 %5825, %v6594_v45  }
 0x330   : > { %5826 = vset.pattern.permute.xlu1 %v6155_v1 }
 0x331   : > { %2529 = vperm.xlu1 %5826, %v6612_v49  }
 0x335   : > { %5827 = vset.pattern.permute.xlu1 %v8000_v55 }
 0x336   : > { %2681 = vperm.xlu1 %5827, %v6570_v2  }
 0x33a   : > { %2685 = vperm.xlu1 %5827, %v6594_v45  }
 0x33e   : > { %5828 = vset.pattern.permute.xlu1 %v6154_v9 }
 0x33f   : > { %2461 = vperm.xlu1 %5828, %v6635_v62  }
 0x343   : > { %5829 = vset.pattern.permute.xlu1 %v8004_v58 }
 0x344   : > { %2609 = vperm.xlu1 %5829, %v6612_v49  }
 0x348   : > { %5830 = vset.pattern.permute.xlu1 %v6158_v5 }
 0x349   : > { %2761 = vperm.xlu1 %5830, %v6570_v2  }
 0x34d   : > { %2765 = vperm.xlu1 %5830, %v6594_v45  }
 0x351   : > { %5831 = vset.pattern.permute.xlu1 %v6155_v1 }
 0x352   : > { %2541 = vperm.xlu1 %5831, %v6635_v62  }
 0x356   : > { %5832 = vset.pattern.permute.xlu1 %v8000_v55 }
 0x357   : > { %v1648_v12 = vpop.xlane.xlu0 %1647  ;;  %2689 = vperm.xlu1 %5832, %v6612_v49  }
 0x358   : > { %v1671_v15 = vmul.f32 0.015384615, %v1648_v12 }
 0x35b   : > { %v1651_v13 = vpop.xlane.xlu1 %1650  ;;  %v1681_v14 = vpop.xlane.xlu0 %1680  ;;  %5833 = vset.pattern.permute.xlu1 %v6159_v7 }
 0x35c   : > { %v1672_v16 = vmul.f32 0.015384615, %v1651_v13  ;;  %v1704_v20 = vsel %vm1703_vm6, %v1671_v15, %v1681_v14  ;;  %2841 = vperm.xlu1 %5833, %v6570_v2  }
 0x35f   : > { %v1654_v18 = vpop.xlane.xlu1 %1653  ;;  %v1684_v19 = vpop.xlane.xlu0 %1683 }
 0x360   : > { %v1705_v21 = vsel %vm1703_vm6, %v1672_v16, %v1684_v19  ;;  %v1673_v24 = vmul.f32 0.015384615, %v1654_v18  ;;  %2845 = vperm.xlu1 %5833, %v6594_v45   ;;  %v1792_v16 = vld [vmem:[%s7980_s4 + $0x8] sm:$0xff]  ;;  %v1794_v18 = vld [vmem:[%s7980_s4 + $0x18] sm:$0xff]  ;;  %v1795_v19 = vld [vmem:[%s7980_s4 + $0x20] sm:$0xff] }
 0x361   : > { %v5596_v6 = vpack.c.bf16 %v1705_v21, %v1704_v20  ;;  %v1796_v20 = vld [vmem:[%s7980_s4 + $0x28] sm:$0xff]  ;;  %v1797_v21 = vld [vmem:[%s7980_s4 + $0x30] sm:$0xff] }
 0x363   : > { %v1687_v22 = vpop.xlane.xlu1 %1686  ;;  %5597 = vmatpush3.bf16.msra.mxu0 %v5596_v6  ;;  %v1657_v63 = vpop.xlane.xlu0 %1656  ;;  %v1798_v6 = vld [vmem:[%s7980_s4 + $0x38] sm:$0xff] }
 0x364   : > { %5598 = vmatprep.subr.bf16.mxu0 %v8012_v10  ;;  %v1674_v25 = vmul.f32 0.015384615, %v1657_v63  ;;  %v1706_v28 = vsel %vm1703_vm6, %v1673_v24, %v1687_v22  ;;  %5835 = vset.pattern.permute.xlu1 %v6154_v9  ;;  %v1793_v9 = vld [vmem:[%s7980_s4 + $0x10] sm:$0xff]  ;;  %v6160_v22 = vmov 7   ;;  %v8008_v63 = vmov 8  }
 0x365   : > { %2469 = vperm.xlu1 %5835, %v6617_v54   ;;  %v8016_v24 = vmov 9  }
 0x367   : > { %v1660_v26 = vpop.xlane.xlu1 %1659  ;;  %v1690_v27 = vpop.xlane.xlu0 %1689 }
 0x368   : > { %v1707_v30 = vsel %vm1703_vm6, %v1674_v25, %v1690_v27  ;;  %v1675_v34 = vmul.f32 0.015384615, %v1660_v26 }
 0x369   : > { %v5599_v31 = vpack.c.bf16 %v1707_v30, %v1706_v28  ;;  %5836 = vset.pattern.permute.xlu1 %v8004_v58 }
 0x36a   : > { %2617 = vperm.xlu1 %5836, %v6578_v3  }
 0x36b   : > { %v1693_v32 = vpop.xlane.xlu1 %1692  ;;  %5600 = vmatpush3.bf16.msra.mxu0 %v5599_v31  ;;  %v1663_v33 = vpop.xlane.xlu0 %1662 }
 0x36c   : > { %5601 = vmatprep.subr.bf16.mxu0 %v8012_v10  ;;  %v1676_v35 = vmul.f32 0.015384615, %v1663_v33  ;;  %v1708_v39 = vsel %vm1703_vm6, %v1675_v34, %v1693_v32 }
 0x36e   : > { %5837 = vset.pattern.permute.xlu1 %v6158_v5 }
 0x36f   : > { %v1666_v37 = vpop.xlane.xlu1 %1665  ;;  %v1696_v38 = vpop.xlane.xlu0 %1695  ;;  %2769 = vperm.xlu1 %5837, %v6612_v49  }
 0x370   : > { %v1709_v40 = vsel %vm1703_vm6, %v1676_v35, %v1696_v38  ;;  %v1677_v50 = vmul.f32 0.015384615, %v1666_v37 }
 0x371   : > { %v5602_v41 = vpack.c.bf16 %v1709_v40, %v1708_v39 }
 0x373   : > { %5603 = vmatpush3.bf16.msra.mxu0 %v5602_v41  ;;  %v1669_v43 = vpop.xlane.xlu0 %1668  ;;  %v1699_v47 = vpop.xlane.xlu1 %1698  ;;  %2773 = vperm.xlu1 %5837, %v6602_v48  }
 0x374   : > { %5604 = vmatprep.subr.bf16.mxu0 %v8012_v10  ;;  %v1678_v51 = vmul.f32 0.015384615, %v1669_v43  ;;  %v1710_v53 = vsel %vm1703_vm6, %v1677_v50, %v1699_v47 }
 0x377   : > { %v1702_v52 = vpop.xlane.xlu0 %1701  ;;  %v1715_v8 = vpop.permute.xlu1 %1714  ;;  %5838 = vset.pattern.permute.xlu1 %v6160_v22 }
 0x378   : > { %v1711_v56 = vsel %vm1703_vm6, %v1678_v51, %v1702_v52  ;;  %2925 = vperm.xlu1 %5838, %v6594_v45  }
 0x379   : > { %v5605_v59 = vpack.c.bf16 %v1711_v56, %v1710_v53 }
 0x37b   : > { %5606 = vmatpush3.bf16.msra.mxu0 %v5605_v59  ;;  %v1805_v25 = vpop.permute.xlu1 %1804 }
 0x37c   : > { %5839 = vset.pattern.permute.xlu1 %v6155_v1 }
 0x37d   : > { %2545 = vperm.xlu1 %5839, %v6586_v42  }
 0x37e   : > { %5192 = vmatmul.mubr.msk.f32.vlgmr.msra.gmra.mrb[10].mxu0 %vm604_vm0, %v1712_v60 }
 0x37f   : > { %5196 = vmatprep.mubr.msk.f32.mxu0 %vm1831_vm7, %v1791_v61  ;;  %v1809_v26 = vpop.permute.xlu1 %1808  ;;  %v1801_v40 = vpop.permute.xlu0 %1800 }
 0x381   : > { %5841 = vset.pattern.permute.xlu1 %v8000_v55 }
 0x382   : > { %2697 = vperm.xlu1 %5841, %v6578_v3  }
 0x383   : > { %v1813_v27 = vpop.permute.xlu1 %1812 }
 0x386   : > { %2701 = vperm.xlu1 %5841, %v6635_v62  }
 0x387   : > { %v1817_v28 = vpop.permute.xlu1 %1816 }
 0x38a   : > { %5842 = vset.pattern.permute.xlu1 %v6159_v7 }
 0x38b   : > { %2853 = vperm.xlu1 %5842, %v6602_v48   ;;  %v1821_v30 = vpop.permute.xlu1 %1820 }
 0x38f   : > { %5843 = vset.pattern.permute.xlu1 %v8008_v63  ;;  %v1825_v31 = vpop.permute.xlu1 %1824 }
 0x390   : > { %3001 = vperm.xlu1 %5843, %v6570_v2  }
 0x393   : > { %v1829_v32 = vpop.permute.xlu1 %1828 }
 0x394   : > { %5844 = vset.pattern.permute.xlu1 %v8004_v58 }
 0x395   : > { %2625 = vperm.xlu1 %5844, %v6586_v42  }
 0x398   : > { %v6708_v33 = vpop.permute.xlu1 %2445 }
 0x399   : > { %2629 = vperm.xlu1 %5844, %v6617_v54  }
 0x39d   : > { %5845 = vset.pattern.permute.xlu1 %v6158_v5  ;;  %v6710_v34 = vpop.permute.xlu1 %2521 }
 0x39e   : > { %2781 = vperm.xlu1 %5845, %v6635_v62  }
 0x3a2   : > { %5846 = vset.pattern.permute.xlu1 %v6160_v22  ;;  %v6712_v35 = vpop.permute.xlu1 %2449 }
 0x3a3   : > { %2929 = vperm.xlu1 %5846, %v6612_v49  }
 0x3a6   : > { %v6714_v37 = vpop.permute.xlu1 %2453 }
 0x3a7   : > { %5847 = vset.pattern.permute.xlu1 %v8016_v24 }
 0x3a8   : > { %3081 = vperm.xlu1 %5847, %v6570_v2  }
 0x3ab   : > { %v6716_v38 = vpop.permute.xlu1 %2605 }
 0x3ac   : > { %3085 = vperm.xlu1 %5847, %v6594_v45  }
 0x3b0   : > { %5849 = vset.pattern.permute.xlu1 %v8000_v55  ;;  %v6718_v39 = vpop.permute.xlu1 %2529 }
 0x3b5   : > { %v6720_v56 = vpop.permute.xlu1 %2681 }
 0x451   : > { %v1786_v12 = vpop.f32.mrb[10].mxu0 }
 0x452   : > { %v1787_v13 = vadd.f32 %v1786_v12, %v1715_v8  ;;  %v5193_v14 = vpop.f32.mrb[11].mxu0 }
 0x454   : > { %v1790_v15 = vmax.f32 %v1787_v13, 0.0 }
 0x456   : > { %5194 = vmatprep.subr.mxu0 %v1790_v15 }
 0x457   : > { %5195 = vmatpush3.msra.mxu0 %v1790_v15 }
 0x458   : > { %5197 = vmatmul.mubr.msk.f32.vlgmr.msra.gmra.mrb[12].mxu0 %vm1831_vm7, %v1792_v16 }
 0x459   : > { %5199 = vmatprep.mubr.msk.f32.mxu0 %vm1831_vm7, %v1793_v9 }
 0x45c   : > { %5200 = vmatmul.mubr.msk.f32.gmra.mrb[14].mxu0 %vm1831_vm7, %v1794_v18 }
 0x45d   : > { %5202 = vmatprep.mubr.msk.f32.mxu0 %vm1831_vm7, %v1795_v19 }
 0x460   : > { %5203 = vmatmul.mubr.msk.f32.gmra.mrb[16].mxu0 %vm1831_vm7, %v1796_v20  ;;  %v6722_v20 = vpop.permute.xlu1 %2685 }
 0x461   : > { %5205 = vmatprep.mubr.msk.f32.mxu0 %vm1831_vm7, %v1797_v21 }
 0x464   : > { %5206 = vmatmul.mubr.msk.f32.gmra.mrb[18].mxu0 %vm1831_vm7, %v1798_v6 }
 0x52b   : > { %v5198_v41 = vpop.f32.mrb[12].mxu0 }
 0x52c   : > { %v1928_v43 = vadd.f32 %v5198_v41, %v1805_v25  ;;  %v1922_v47 = vpop.f32.mrb[13].mxu0 }
 0x52d   : > { %v1923_v50 = vadd.f32 %v1922_v47, %v1801_v40  ;;  %v6724_v47 = vpop.permute.xlu1 %2461 }
 0x52e   : > { %v1962_v51 = vsub.f32 0.0, %v1928_v43  ;;  %8038 = vst [vmem:[#allocation6_spill] sm:$0xff] %v6724_v47 }
 0x52f   : > { %v1961_v52 = vsub.f32 0.0, %v1923_v50  ;;  %v5201_v53 = vpop.f32.mrb[14].mxu0 }
 0x530   : > { %v1971_v59 = vmul.f32 1.442695, %v1962_v51  ;;  %v1938_v60 = vadd.f32 %v5201_v53, %v1813_v27  ;;  %v1932_v61 = vpop.f32.mrb[15].mxu0 }
 0x531   : > { %v1969_v1 = vmul.f32 1.442695, %v1961_v52  ;;  %v1933_v8 = vadd.f32 %v1932_v61, %v1809_v26  ;;  %v6726_v61 = vpop.permute.xlu1 %2609 }
 0x532   : > { %5947 = vpow2.f32 %v1971_v59  ;;  %v1964_v12 = vsub.f32 0.0, %v1938_v60 }
 0x533   : > { %5949 = vpow2.f32 %v1969_v1  ;;  %v1963_v13 = vsub.f32 0.0, %v1933_v8  ;;  %v5204_v14 = vpop.f32.mrb[16].mxu0 }
 0x534   : > { %v1975_v15 = vmul.f32 1.442695, %v1964_v12  ;;  %v1948_v16 = vadd.f32 %v5204_v14, %v1821_v30  ;;  %v1942_v9 = vpop.f32.mrb[17].mxu0 }
 0x535   : > { %v1973_v18 = vmul.f32 1.442695, %v1963_v13  ;;  %v1943_v19 = vadd.f32 %v1942_v9, %v1817_v28 }
 0x536   : > { %5951 = vpow2.f32 %v1975_v15  ;;  %v1966_v21 = vsub.f32 0.0, %v1948_v16  ;;  %v6728_v15 = vpop.permute.xlu1 %2761 }
 0x537   : > { %5953 = vpow2.f32 %v1973_v18  ;;  %v1965_v6 = vsub.f32 0.0, %v1943_v19  ;;  %v5207_v25 = vpop.f32.mrb[18].mxu0 }
 0x538   : > { %v1979_v27 = vmul.f32 1.442695, %v1966_v21  ;;  %v1958_v40 = vadd.f32 %v5207_v25, %v1829_v32  ;;  %v1952_v26 = vpop.f32.mrb[19].mxu0 }
 0x539   : > { %v1977_v41 = vmul.f32 1.442695, %v1965_v6  ;;  %v1953_v43 = vadd.f32 %v1952_v26, %v1825_v31 }
 0x53a   : > { %5955 = vpow2.f32 %v1979_v27  ;;  %v1968_v50 = vsub.f32 0.0, %v1958_v40  ;;  %v6738_v6 = vpop.permute.xlu1 %2765 }
 0x53b   : > { %5957 = vpow2.f32 %v1977_v41  ;;  %v1967_v30 = vsub.f32 0.0, %v1953_v43 }
 0x53c   : > { %v5948_v51 = vpop.eup %5947  ;;  %v1983_v28 = vmul.f32 1.442695, %v1968_v50 }
 0x53d   : > { %v5950_v52 = vpop.eup %5949  ;;  %v1986_v53 = vadd.f32 1.0, %v5948_v51  ;;  %v1981_v60 = vmul.f32 1.442695, %v1967_v30 }
 0x53e   : > { %v1985_v59 = vadd.f32 1.0, %v5950_v52  ;;  %5959 = vpow2.f32 %v1983_v28  ;;  %v6748_v26 = vpop.permute.xlu1 %2541 }
 0x53f   : > { %5961 = vrcp.f32 %v1986_v53  ;;  %8039 = vst [vmem:[#allocation7_spill] sm:$0xff] %v6748_v26 }
 0x540   : > { %v5952_v32 = vpop.eup %5951  ;;  %5963 = vrcp.f32 %v1985_v59 }
 0x541   : > { %v5954_v1 = vpop.eup %5953  ;;  %v1988_v31 = vadd.f32 1.0, %v5952_v32  ;;  %5965 = vpow2.f32 %v1981_v60  ;;  %v8006_v32 = vmov 10  }
 0x542   : > { %v1987_v8 = vadd.f32 1.0, %v5954_v1  ;;  %v6760_v51 = vpop.permute.xlu1 %2689 }
 0x543   : > { %5967 = vrcp.f32 %v1988_v31 }
 0x544   : > { %v5956_v12 = vpop.eup %5955  ;;  %5969 = vrcp.f32 %v1987_v8 }
 0x545   : > { %v5958_v13 = vpop.eup %5957  ;;  %v1990_v14 = vadd.f32 1.0, %v5956_v12  ;;  %v8018_v12 = vmov 11  }
 0x546   : > { %v1989_v16 = vadd.f32 1.0, %v5958_v13  ;;  %v6767_v28 = vpop.permute.xlu1 %2841 }
 0x547   : > { %5971 = vrcp.f32 %v1990_v14 }
 0x548   : > { %v5960_v9 = vpop.eup %5959  ;;  %5973 = vrcp.f32 %v1989_v16  ;;  %v6824_v16 = vpop.permute.xlu0 %2441 }
 0x549   : > { %v6730_v18 = vpop.eup %5961  ;;  %v1992_v19 = vadd.f32 1.0, %v5960_v9 }
 0x54a   : > { %v6732_v21 = vpop.eup %5963  ;;  %2019 = vrot.lane.b32.xlu0 %v6730_v18, %s6163_s16  ;;  %v6776_v53 = vpop.permute.xlu1 %2845 }
 0x54b   : > { %5975 = vrcp.f32 %v1992_v19  ;;  %2017 = vrot.lane.b32.xlu1 %v6732_v21, %s6163_s16  ;;  %v5966_v25 = vpop.eup %5965 }
 0x54c   : > { %v1991_v43 = vadd.f32 1.0, %v5966_v25  ;;  %v6831_v19 = vpop.permute.xlu0 %2457 }
 0x54d   : > { %v6740_v27 = vpop.eup %5967  ;;  %8047 = vst [vmem:[#allocation15_spill] sm:$0xff] %v6831_v19 }
 0x54e   : > { %v6742_v40 = vpop.eup %5969  ;;  %2023 = vrot.lane.b32.xlu0 %v6740_v27, %s6163_s16  ;;  %5977 = vrcp.f32 %v1991_v43  ;;  %v6781_v59 = vpop.permute.xlu1 %2469  ;;  %v8010_v43 = vmov 12  }
 0x54f   : > { %2021 = vrot.lane.b32.xlu1 %v6742_v40, %s6163_s16  ;;  %8040 = vst [vmem:[#allocation8_spill] sm:$0xff] %v6781_v59 }
 0x551   : > { %v6750_v41 = vpop.eup %5971 }
 0x552   : > { %v6752_v50 = vpop.eup %5973  ;;  %2027 = vrot.lane.b32.xlu0 %v6750_v41, %s6163_s16  ;;  %v6786_v60 = vpop.permute.xlu1 %2617 }
 0x553   : > { %2025 = vrot.lane.b32.xlu1 %v6752_v50, %s6163_s16  ;;  %8041 = vst [vmem:[#allocation9_spill] sm:$0xff] %v6786_v60 }
 0x555   : > { %v6758_v30 = vpop.eup %5975 }
 0x556   : > { %2031 = vrot.lane.b32.xlu0 %v6758_v30, %s6163_s16  ;;  %v6792_v1 = vpop.permute.xlu1 %2769 }
 0x557   : > { %2709 = vperm.xlu1 %5849, %v6617_v54   ;;  %8042 = vst [vmem:[#allocation10_spill] sm:$0xff] %v6792_v1 }
 0x558   : > { %v6771_v52 = vpop.eup %5977 }
 0x55a   : > { %2705 = vperm.xlu0 %5840, %v6586_v42   ;;  %v6800_v31 = vpop.permute.xlu1 %2773 }
 0x55b   : > { %5850 = vset.pattern.permute.xlu1 %v6159_v7 }
 0x55c   : > { %2857 = vperm.xlu1 %5850, %v6578_v3  }
 0x55e   : > { %5848 = vset.pattern.permute.xlu0 %v6159_v7  ;;  %v6804_v8 = vpop.permute.xlu1 %2925 }
 0x55f   : > { %2849 = vperm.xlu0 %5848, %v6612_v49  }
 0x560   : > { %2029 = vrot.lane.b32.xlu1 %v6771_v52, %s6163_s16 }
 0x561   : > { %5852 = vset.pattern.permute.xlu1 %v8008_v63 }
 0x563   : > { %2861 = vperm.xlu0 %5848, %v6635_v62  }
 0x564   : > { %3009 = vperm.xlu1 %5852, %v6612_v49  }
 0x567   : > { %5851 = vset.pattern.permute.xlu0 %v6158_v5 }
 0x568   : > { %3013 = vperm.xlu1 %5852, %v6602_v48   ;;  %2777 = vperm.xlu0 %5851, %v6578_v3  }
 0x56c   : > { %5853 = vset.pattern.permute.xlu1 %v8006_v32  ;;  %2789 = vperm.xlu0 %5851, %v6617_v54  }
 0x56d   : > { %3165 = vperm.xlu1 %5853, %v6594_v45  }
 0x570   : > { %5856 = vset.pattern.permute.xlu0 %v8016_v24 }
 0x571   : > { %5854 = vset.pattern.permute.xlu1 %v6158_v5  ;;  %3089 = vperm.xlu0 %5856, %v6612_v49   ;;  %v6811_v5 = vpop.permute.xlu1 %2545 }
 0x572   : > { %2785 = vperm.xlu1 %5854, %v6586_v42   ;;  %8043 = vst [vmem:[#allocation11_spill] sm:$0xff] %v6811_v5 }
 0x575   : > { %5857 = vset.pattern.permute.xlu0 %v8008_v63  ;;  %v6816_v13 = vpop.permute.xlu1 %2697 }
 0x576   : > { %5855 = vset.pattern.permute.xlu1 %v6160_v22  ;;  %3005 = vperm.xlu0 %5857, %v6594_v45   ;;  %8044 = vst [vmem:[#allocation12_spill] sm:$0xff] %v6816_v13 }
 0x577   : > { %2937 = vperm.xlu1 %5855, %v6578_v3  }
 0x579   : > { %v6822_v14 = vpop.permute.xlu1 %2701 }
 0x57a   : > { %3017 = vperm.xlu0 %5857, %v6578_v3   ;;  %8045 = vst [vmem:[#allocation13_spill] sm:$0xff] %v6822_v14 }
 0x57b   : > { %2941 = vperm.xlu1 %5855, %v6635_v62  }
 0x57d   : > { %v6827_v9 = vpop.permute.xlu1 %2853 }
 0x57e   : > { %5861 = vset.pattern.permute.xlu0 %v6160_v22  ;;  %8046 = vst [vmem:[#allocation14_spill] sm:$0xff] %v6827_v9 }
 0x57f   : > { %5858 = vset.pattern.permute.xlu1 %v8016_v24  ;;  %2921 = vperm.xlu0 %5861, %v6570_v2  }
 0x580   : > { %3093 = vperm.xlu1 %5858, %v6602_v48  }
 0x581   : > { %v6833_v25 = vpop.permute.xlu1 %3001 }
 0x583   : > { %2933 = vperm.xlu0 %5861, %v6602_v48  }
 0x584   : > { %5859 = vset.pattern.permute.xlu1 %v8018_v12 }
 0x585   : > { %3241 = vperm.xlu1 %5859, %v6570_v2   ;;  %v6840_v55 = vpop.permute.xlu1 %2625 }
 0x586   : > { %8049 = vst [vmem:[#allocation17_spill] sm:$0xff] %v6840_v55  ;;  %v8055_v55 = vmov 0  }
 0x587   : > { %2945 = vperm.xlu0 %5861, %v6586_v42  }
 0x589   : > { %5860 = vset.pattern.permute.xlu1 %v6159_v7  ;;  %v6837_v7 = vpop.permute.xlu0 %2465  ;;  %v6846_v58 = vpop.permute.xlu1 %2629 }
 0x58a   : > { %2865 = vperm.xlu1 %5860, %v6586_v42   ;;  %8048 = vst [vmem:[#allocation16_spill] sm:$0xff] %v6837_v7  ;;  %8050 = vst [vmem:[#allocation18_spill] sm:$0xff] %v6846_v58 }
 0x58b   : > { %5867 = vset.pattern.permute.xlu0 %v8014_v44 }
 0x58d   : > { %v6843_v0 = vpop.permute.xlu0 %2525 }
 0x58e   : > { %2869 = vperm.xlu1 %5860, %v6617_v54  }
 0x592   : > { %5862 = vset.pattern.permute.xlu1 %v8008_v63  ;;  %v6852_v63 = vpop.permute.xlu1 %2781 }
 0x593   : > { %3021 = vperm.xlu1 %5862, %v6635_v62   ;;  %8051 = vst [vmem:[#allocation19_spill] sm:$0xff] %v6852_v63 }
 0x596   : > { %v6858_v10 = vpop.permute.xlu1 %2929 }
 0x597   : > { %5863 = vset.pattern.permute.xlu1 %v8006_v32  ;;  %v6849_v32 = vpop.permute.xlu0 %2533  ;;  %8053 = vst [vmem:[#allocation21_spill] sm:$0xff] %v6858_v10 }
 0x598   : > { %3169 = vperm.xlu1 %5863, %v6612_v49  }
 0x59c   : > { %5864 = vset.pattern.permute.xlu1 %v8010_v43  ;;  %v6856_v43 = vpop.permute.xlu0 %2537 }
 0x59d   : > { %3321 = vperm.xlu1 %5864, %v6570_v2   ;;  %8052 = vst [vmem:[#allocation20_spill] sm:$0xff] %v6856_v43 }
 0x5a0   : > { %v6862_v44 = vpop.permute.xlu0 %2549 }
 0x5a1   : > { %3325 = vperm.xlu1 %5864, %v6594_v45   ;;  %8054 = vst [vmem:[#allocation22_spill] sm:$0xff] %v6862_v44 }
 0x5a4   : > { %v6867_v58 = vpop.permute.xlu0 %2693 }
 0x5a5   : > { %5865 = vset.pattern.permute.xlu1 %v6160_v22  ;;  %v6864_v22 = vpop.permute.xlu1 %3081 }
 0x5a6   : > { %2949 = vperm.xlu1 %5865, %v6617_v54  }
 0x5a9   : > { %v6869_v5 = vpop.permute.xlu1 %3085 }
 0x5aa   : > { %5866 = vset.pattern.permute.xlu1 %v8016_v24 }
 0x5ab   : > { %3097 = vperm.xlu1 %5866, %v6578_v3  }
 0x5af   : > { %5869 = vset.pattern.permute.xlu1 %v8018_v12 }
 0x5b0   : > { %3249 = vperm.xlu1 %5869, %v6612_v49  }
 0x5b4   : > { %5870 = vset.pattern.permute.xlu1 %v8055_v55 }
 0x5bc   : > { %v2020_v24 = vpop.permute.xlu0 %2019 }
 0x5bd   : > { %v2042_v7 = vadd.f32 %v6730_v18, %v2020_v24  ;;  %v2018_v59 = vpop.permute.xlu1 %2017 }
 0x5be   : > { %v2041_v63 = vadd.f32 %v6732_v21, %v2018_v59 }
 0x5bf   : > { %v2050_v13 = vsub.f32 0.0, %v2042_v7 }
 0x5c0   : > { %v2049_v12 = vsub.f32 0.0, %v2041_v63  ;;  %v2024_v14 = vpop.permute.xlu0 %2023 }
 0x5c1   : > { %v2059_v60 = vmul.f32 1.442695, %v2050_v13  ;;  %v2044_v44 = vadd.f32 %v6740_v27, %v2024_v14  ;;  %v2022_v43 = vpop.permute.xlu1 %2021 }
 0x5c2   : > { %v2057_v26 = vmul.f32 1.442695, %v2049_v12  ;;  %v2043_v19 = vadd.f32 %v6742_v40, %v2022_v43 }
 0x5c3   : > { %5979 = vpow2.f32 %v2059_v60  ;;  %v2052_v47 = vsub.f32 0.0, %v2044_v44 }
 0x5c4   : > { %5981 = vpow2.f32 %v2057_v26  ;;  %v2051_v10 = vsub.f32 0.0, %v2043_v19  ;;  %v2028_v9 = vpop.permute.xlu0 %2027 }
 0x5c5   : > { %v2063_v1 = vmul.f32 1.442695, %v2052_v47  ;;  %v2046_v24 = vadd.f32 %v6750_v41, %v2028_v9  ;;  %v2026_v18 = vpop.permute.xlu1 %2025 }
 0x5c6   : > { %v2061_v21 = vmul.f32 1.442695, %v2051_v10  ;;  %v2045_v63 = vadd.f32 %v6752_v50, %v2026_v18 }
 0x5c7   : > { %5983 = vpow2.f32 %v2063_v1  ;;  %v2054_v59 = vsub.f32 0.0, %v2046_v24 }
 0x5c8   : > { %5985 = vpow2.f32 %v2061_v21  ;;  %v2053_v27 = vsub.f32 0.0, %v2045_v63  ;;  %v2032_v13 = vpop.permute.xlu0 %2031 }
 0x5c9   : > { %v2067_v12 = vmul.f32 1.442695, %v2054_v59  ;;  %v2048_v40 = vadd.f32 %v6758_v30, %v2032_v13  ;;  %v2185_v13 = vld [vmem:[%s7981_s5] sm:$0xff] }
 0x5ca   : > { %v2065_v60 = vmul.f32 1.442695, %v2053_v27 }
 0x5cb   : > { %5987 = vpow2.f32 %v2067_v12  ;;  %v2056_v44 = vsub.f32 0.0, %v2048_v40  ;;  %v2186_v12 = vld [vmem:[%s7981_s5 + $0x8] sm:$0xff] }
 0x5cc   : > { %5989 = vpow2.f32 %v2065_v60  ;;  %v5607_v60 = vpack.c.bf16 %v2186_v12, %v2185_v13  ;;  %v2193_v12 = vld [vmem:[%s7981_s5 + $0x40] sm:$0x1] }
 0x5cd   : > { %v5980_v26 = vpop.eup %5979  ;;  %v2071_v47 = vmul.f32 1.442695, %v2056_v44 }
 0x5ce   : > { %v5982_v14 = vpop.eup %5981  ;;  %v2074_v41 = vadd.f32 1.0, %v5980_v26  ;;  %v8058_v26 = vmov 9   ;;  %5608 = vmatprep.subr.bf16.mxu0 %v5607_v60 }
 0x5cf   : > { %v2073_v9 = vadd.f32 1.0, %v5982_v14  ;;  %5991 = vpow2.f32 %v2071_v47  ;;  %5610 = vmatpush3.bf16.msra.mxu0 %v5607_v60  ;;  %v8059_v60 = vmov 11  }
 0x5d0   : > { %5993 = vrcp.f32 %v2074_v41  ;;  %v2187_v41 = vld [vmem:[%s7981_s5 + $0x10] sm:$0xff] }
 0x5d1   : > { %v5984_v10 = vpop.eup %5983  ;;  %5995 = vrcp.f32 %v2073_v9  ;;  %v2188_v9 = vld [vmem:[%s7981_s5 + $0x18] sm:$0xff] }
 0x5d2   : > { %v5986_v50 = vpop.eup %5985  ;;  %v2076_v1 = vadd.f32 1.0, %v5984_v10  ;;  %v5611_v10 = vpack.c.bf16 %v2188_v9, %v2187_v41  ;;  %v8061_v9 = vmov 8  }
 0x5d3   : > { %v2075_v19 = vadd.f32 1.0, %v5986_v50 }
 0x5d4   : > { %5997 = vrcp.f32 %v2076_v1  ;;  %5612 = vmatprep.subr.bf16.mxu0 %v5611_v10 }
 0x5d5   : > { %v5988_v7 = vpop.eup %5987  ;;  %5999 = vrcp.f32 %v2075_v19  ;;  %5614 = vmatpush3.bf16.msra.mxu0 %v5611_v10 }
 0x5d6   : > { %v5990_v43 = vpop.eup %5989  ;;  %v6878_v30 = vpop.permute.xlu1 %2709  ;;  %v2078_v21 = vadd.f32 1.0, %v5988_v7 }
 0x5d7   : > { %8056 = vst [vmem:[#allocation23_spill] sm:$0xff] %v6878_v30  ;;  %v2077_v24 = vadd.f32 1.0, %v5990_v43  ;;  %v2190_v43 = vld [vmem:[%s7981_s5 + $0x28] sm:$0xff] }
 0x5d9   : > { %v5992_v18 = vpop.eup %5991  ;;  %6001 = vrcp.f32 %v2077_v24 }
 0x5da   : > { %v5994_v63 = vpop.eup %5993  ;;  %6003 = vrcp.f32 %v2078_v21  ;;  %v2080_v40 = vadd.f32 1.0, %v5992_v18  ;;  %v2191_v21 = vld [vmem:[%s7981_s5 + $0x30] sm:$0xff] }
 0x5db   : > { %v5996_v59 = vpop.eup %5995  ;;  %2104 = vperm.xlu0 %5867, %v5994_v63   ;;  %v6880_v27 = vpop.permute.xlu1 %2857  ;;  %v2192_v63 = vld [vmem:[%s7981_s5 + $0x38] sm:$0xff] }
 0x5dc   : > { %8057 = vst [vmem:[#allocation24_spill] sm:$0xff] %v6880_v27  ;;  %2099 = vperm.xlu1 %5870, %v5996_v59   ;;  %6005 = vrcp.f32 %v2080_v40  ;;  %v5619_v59 = vpack.c.bf16 %v2192_v63, %v2191_v21 }
 0x5de   : > { %v5998_v44 = vpop.eup %5997 }
 0x5df   : > { %5868 = vset.pattern.permute.xlu0 %v8058_v26  ;;  %v2030_v47 = vpop.permute.xlu1 %2029  ;;  %v6000_v50 = vpop.eup %5999 }
 0x5e0   : > { %v2047_v14 = vadd.f32 %v6771_v52, %v2030_v47  ;;  %3101 = vperm.xlu0 %5868, %v6635_v62   ;;  %2114 = vperm.xlu1 %5870, %v5998_v44   ;;  %v2189_v52 = vld [vmem:[%s7981_s5 + $0x20] sm:$0xff]  ;;  %v8060_v47 = vmov 0.0|0.0  }
 0x5e1   : > { %v5615_v24 = vpack.c.bf16 %v2190_v43, %v2189_v52 }
 0x5e2   : > { %v2055_v1 = vsub.f32 0.0, %v2047_v14 }
 0x5e3   : > { %v6002_v19 = vpop.eup %6001  ;;  %5616 = vmatprep.subr.bf16.mxu0 %v5615_v24  ;;  %v6918_v41 = vpop.permute.xlu1 %3009 }
 0x5e4   : > { %v2069_v7 = vmul.f32 1.442695, %v2055_v1  ;;  %5871 = vset.pattern.permute.xlu0 %v8055_v55  ;;  %2109 = vperm.xlu1 %5870, %v6000_v50   ;;  %v6004_v18 = vpop.eup %6003  ;;  %v8062_v1 = vmov 10  }
 0x5e5   : > { %2119 = vperm.xlu0 %5871, %v6002_v19   ;;  %5618 = vmatpush3.bf16.msra.mxu0 %v5615_v24  ;;  %v6943_v24 = vpop.permute.xlu0 %2705 }
 0x5e6   : > { %6007 = vpow2.f32 %v2069_v7  ;;  %v6006_v13 = vpop.eup %6005  ;;  %5620 = vmatprep.subr.bf16.mxu0 %v5619_v59  ;;  %v8020_v7 = vmov 13   ;;  %8066 = vst [vmem:[#allocation28_spill] sm:$0xff] %v6943_v24 }
 0x5e7   : > { %v6921_v10 = vpop.permute.xlu1 %3013 }
 0x5e8   : > { %2124 = vperm.xlu1 %5870, %v6004_v18  }
 0x5e9   : > { %5622 = vmatpush3.bf16.msra.mxu0 %v5619_v59  ;;  %v6950_v21 = vpop.permute.xlu0 %2849  ;;  %v8067_v59 = vmov 12  }
 0x5ea   : > { %5224 = vmatprep.subr.msk.mxu0 %vm2218_vm8, %v2193_v12 }
 0x5ec   : > { %2134 = vperm.xlu1 %5870, %v6006_v13   ;;  %v6924_v50 = vpop.permute.xlu1 %3165 }
 0x5ed   : > { %5225 = vmatpush3.msk.msra.mxu0 %vm2218_vm8, %v2193_v12  ;;  %v6958_v13 = vpop.permute.xlu0 %2861 }
 0x5ee   : > { %5639 = vmatprep.subr.bf16.mxu0 %v8060_v47  ;;  %8068 = vst [vmem:[#allocation29_spill] sm:$0xff] %v6958_v13 }
 0x5f0   : > { %v6008_v40 = vpop.eup %6007  ;;  %5872 = vset.pattern.permute.xlu1 %v8059_v60 }
 0x5f1   : > { %v2079_v44 = vadd.f32 1.0, %v6008_v40  ;;  %3253 = vperm.xlu1 %5872, %v6602_v48   ;;  %v6929_v19 = vpop.permute.xlu1 %2785  ;;  %v8022_v40 = vmov 14  }
 0x5f2   : > { %8063 = vst [vmem:[#allocation25_spill] sm:$0xff] %v6929_v19  ;;  %v8076_v19 = vmov 14  }
 0x5f3   : > { %6009 = vrcp.f32 %v2079_v44  ;;  %v6967_v44 = vpop.permute.xlu0 %2777 }
 0x5f4   : > { %8070 = vst [vmem:[#allocation31_spill] sm:$0xff] %v6967_v44  ;;  %v8082_v44 = vmov 3  }
 0x5f5   : > { %5873 = vset.pattern.permute.xlu1 %v8020_v7 }
 0x5f6   : > { %v6933_v52 = vpop.permute.xlu1 %2937  ;;  %3405 = vperm.xlu1 %5873, %v6594_v45  }
 0x5f7   : > { %8064 = vst [vmem:[#allocation26_spill] sm:$0xff] %v6933_v52 }
 0x5fa   : > { %5874 = vset.pattern.permute.xlu1 %v8061_v9  ;;  %v6940_v43 = vpop.permute.xlu1 %2941 }
 0x5fb   : > { %3025 = vperm.xlu1 %5874, %v6586_v42   ;;  %8065 = vst [vmem:[#allocation27_spill] sm:$0xff] %v6940_v43 }
 0x5fd   : > { %v6010_v14 = vpop.eup %6009 }
 0x5fe   : > { %2129 = vperm.xlu0 %5871, %v6010_v14  }
 0x5ff   : > { %5877 = vset.pattern.permute.xlu1 %v8062_v1  ;;  %v6946_v18 = vpop.permute.xlu1 %3093 }
 0x600   : > { %3177 = vperm.xlu1 %5877, %v6578_v3  }
 0x602   : > { %5875 = vset.pattern.permute.xlu0 %v8061_v9  ;;  %v6975_v9 = vpop.permute.xlu0 %2789 }
 0x603   : > { %3029 = vperm.xlu0 %5875, %v6617_v54   ;;  %8072 = vst [vmem:[#allocation33_spill] sm:$0xff] %v6975_v9 }
 0x604   : > { %3181 = vperm.xlu1 %5877, %v6635_v62   ;;  %v6955_v63 = vpop.permute.xlu1 %3241 }
 0x607   : > { %5876 = vset.pattern.permute.xlu0 %v8062_v1 }
 0x608   : > { %3161 = vperm.xlu0 %5876, %v6570_v2   ;;  %5878 = vset.pattern.permute.xlu1 %v8067_v59 }
 0x609   : > { %3333 = vperm.xlu1 %5878, %v6602_v48   ;;  %v6962_v12 = vpop.permute.xlu1 %2865 }
 0x60a   : > { %8069 = vst [vmem:[#allocation30_spill] sm:$0xff] %v6962_v12  ;;  %v8075_v12 = vmov 13  }
 0x60c   : > { %3173 = vperm.xlu0 %5876, %v6602_v48  }
 0x60d   : > { %5879 = vset.pattern.permute.xlu1 %v8022_v40  ;;  %v6970_v14 = vpop.permute.xlu1 %2869  ;;  %v6982_v40 = vpop.permute.xlu0 %3089 }
 0x60e   : > { %3481 = vperm.xlu1 %5879, %v6570_v2   ;;  %8071 = vst [vmem:[#allocation32_spill] sm:$0xff] %v6970_v14 }
 0x610   : > { %3185 = vperm.xlu0 %5876, %v6586_v42  }
 0x611   : > { %v6991_v14 = vpop.permute.xlu0 %3005 }
 0x612   : > { %5880 = vset.pattern.permute.xlu1 %v8058_v26  ;;  %v8024_v26 = vmov 15  }
 0x613   : > { %3105 = vperm.xlu1 %5880, %v6586_v42  }
 0x614   : > { %5884 = vset.pattern.permute.xlu0 %v8059_v60 }
 0x615   : > { %3245 = vperm.xlu0 %5884, %v6594_v45   ;;  %v7000_v9 = vpop.permute.xlu0 %3017 }
 0x616   : > { %8077 = vst [vmem:[#allocation36_spill] sm:$0xff] %v7000_v9 }
 0x617   : > { %3109 = vperm.xlu1 %5880, %v6617_v54  }
 0x619   : > { %3257 = vperm.xlu0 %5884, %v6578_v3  }
 0x61b   : > { %5881 = vset.pattern.permute.xlu1 %v8059_v60 }
 0x61c   : > { %3261 = vperm.xlu1 %5881, %v6635_v62  }
 0x61d   : > { %3265 = vperm.xlu0 %5884, %v6586_v42  }
 0x620   : > { %5882 = vset.pattern.permute.xlu1 %v8075_v12 }
 0x621   : > { %5888 = vset.pattern.permute.xlu0 %v8020_v7  ;;  %v6977_v7 = vpop.permute.xlu1 %3021  ;;  %3409 = vperm.xlu1 %5882, %v6612_v49  }
 0x622   : > { %3401 = vperm.xlu0 %5888, %v6570_v2   ;;  %8073 = vst [vmem:[#allocation34_spill] sm:$0xff] %v6977_v7  ;;  %v7009_v7 = vpop.permute.xlu0 %2921 }
 0x625   : > { %v6985_v47 = vpop.permute.xlu1 %3169  ;;  %5883 = vset.pattern.permute.xlu1 %v8024_v26 }
 0x626   : > { %3413 = vperm.xlu0 %5888, %v6602_v48   ;;  %8074 = vst [vmem:[#allocation35_spill] sm:$0xff] %v6985_v47  ;;  %3561 = vperm.xlu1 %5883, %v6570_v2   ;;  %v7017_v9 = vpop.permute.xlu0 %2933 }
 0x62a   : > { %3421 = vperm.xlu0 %5888, %v6635_v62   ;;  %3565 = vperm.xlu1 %5883, %v6594_v45  }
 0x62e   : > { %5891 = vset.pattern.permute.xlu0 %v8067_v59  ;;  %5885 = vset.pattern.permute.xlu1 %v8062_v1  ;;  %v7025_v1 = vpop.permute.xlu0 %2945 }
 0x62f   : > { %3329 = vperm.xlu0 %5891, %v6612_v49   ;;  %3189 = vperm.xlu1 %5885, %v6617_v54   ;;  %8081 = vst [vmem:[#allocation40_spill] sm:$0xff] %v7025_v1 }
 0x633   : > { %3341 = vperm.xlu0 %5891, %v6635_v62   ;;  %5886 = vset.pattern.permute.xlu1 %v8067_v59 }
 0x634   : > { %3337 = vperm.xlu1 %5886, %v6578_v3  }
 0x637   : > { %3345 = vperm.xlu0 %5891, %v6586_v42   ;;  %v6994_v42 = vpop.permute.xlu1 %3321 }
 0x638   : > { %5887 = vset.pattern.permute.xlu1 %v8076_v19 }
 0x639   : > { %3489 = vperm.xlu1 %5887, %v6612_v49  }
 0x63b   : > { %5896 = vset.pattern.permute.xlu0 %v8024_v26  ;;  %v7002_v24 = vpop.permute.xlu1 %3325 }
 0x63c   : > { %3577 = vperm.xlu0 %5896, %v6578_v3  }
 0x63d   : > { %3493 = vperm.xlu1 %5887, %v6602_v48  }
 0x63f   : > { %v7006_v30 = vpop.permute.xlu1 %2949 }
 0x640   : > { %5897 = vset.pattern.permute.xlu0 %v8076_v19  ;;  %8078 = vst [vmem:[#allocation37_spill] sm:$0xff] %v7006_v30 }
 0x641   : > { %3485 = vperm.xlu0 %5897, %v6594_v45   ;;  %5889 = vset.pattern.permute.xlu1 %v8059_v60 }
 0x642   : > { %3269 = vperm.xlu1 %5889, %v6617_v54  }
 0x643   : > { %v7015_v26 = vpop.permute.xlu1 %3097 }
 0x644   : > { %8079 = vst [vmem:[#allocation38_spill] sm:$0xff] %v7015_v26 }
 0x645   : > { %3501 = vperm.xlu0 %5897, %v6635_v62  }
 0x646   : > { %5890 = vset.pattern.permute.xlu1 %v8075_v12 }
 0x647   : > { %v7022_v45 = vpop.permute.xlu1 %3249  ;;  %3417 = vperm.xlu1 %5890, %v6578_v3  }
 0x648   : > { %8080 = vst [vmem:[#allocation39_spill] sm:$0xff] %v7022_v45 }
 0x649   : > { %3509 = vperm.xlu0 %5897, %v6617_v54  }
 0x64d   : > { %5901 = vset.pattern.permute.xlu0 %v8055_v55 }
 0x64e   : > { %2386 = vperm.xlu0 %5901, %v6570_v2  }
 0x652   : > { %2401 = vperm.xlu0 %5901, %v6602_v48  }
 0x656   : > { %2411 = vperm.xlu0 %5901, %v6635_v62  }
 0x65a   : > { %v2105_v30 = vpop.permute.xlu0 %2104  ;;  %2421 = vperm.xlu0 %5901, %v6617_v54  }
 0x65b   : > { %v2138_v26 = vmul.f32 %v2105_v30, %v6497_v17  ;;  %v2100_v52 = vpop.permute.xlu1 %2099 }
 0x65c   : > { %v2137_v43 = vmul.f32 %v2100_v52, %v6493_v11 }
 0x65d   : > { %v2155_v27 = vmul.f32 1.442695, %v2138_v26  ;;  %vm2146_vm10 = vcmp.gt.f32.partialorder %v2138_v26, 0.0 }
 0x65e   : > { %v2153_v13 = vmul.f32 1.442695, %v2137_v43  ;;  %5903 = vset.pattern.permute.xlu0 %v8082_v44  ;;  %vm2145_vm9 = vcmp.gt.f32.partialorder %v2137_v43, 0.0 }
 0x65f   : > { %6011 = vpow2.f32 %v2155_v27  ;;  %v2115_v1 = vpop.permute.xlu1 %2114  ;;  %v7035_v45 = vpop.permute.xlu0 %3101  ;;  %2601 = vperm.xlu0 %5903, %v6570_v2  }
 0x660   : > { %8083 = vst [vmem:[#allocation41_spill] sm:$0xff] %v7035_v45  ;;  %6013 = vpow2.f32 %v2153_v13  ;;  %v2140_v17 = vmul.f32 %v2115_v1, %v6509_v29  ;;  %v8084_v13 = vmov 15  }
 0x661   : > { %5892 = vset.pattern.permute.xlu1 %v8084_v13 }
 0x662   : > { %v2159_v30 = vmul.f32 1.442695, %v2140_v17  ;;  %3569 = vperm.xlu1 %5892, %v6612_v49   ;;  %vm2148_vm12 = vcmp.gt.f32.partialorder %v2140_v17, 0.0 }
 0x663   : > { %v2110_v47 = vpop.permute.xlu1 %2109  ;;  %2613 = vperm.xlu0 %5903, %v6602_v48  }
 0x664   : > { %v2139_v11 = vmul.f32 %v2110_v47, %v6503_v23  ;;  %v2120_v60 = vpop.permute.xlu0 %2119  ;;  %6015 = vpow2.f32 %v2159_v30 }
 0x665   : > { %v2141_v27 = vmul.f32 %v2120_v60, %v6515_v36 }
 0x666   : > { %v2157_v54 = vmul.f32 1.442695, %v2139_v11  ;;  %vm2147_vm11 = vcmp.gt.f32.partialorder %v2139_v11, 0.0 }
 0x667   : > { %v2161_v52 = vmul.f32 1.442695, %v2141_v27  ;;  %v2125_v2 = vpop.permute.xlu1 %2124  ;;  %2621 = vperm.xlu0 %5903, %v6635_v62   ;;  %v6059_v62 = vld [vmem:[%s7982_s6 + $0x18] sm:$0xff]  ;;  %vm2149_vm13 = vcmp.gt.f32.partialorder %v2141_v27, 0.0 }
 0x668   : > { %6017 = vpow2.f32 %v2157_v54  ;;  %v2142_v29 = vmul.f32 %v2125_v2, %v6521_v46  ;;  %3573 = vperm.xlu1 %5892, %v6059_v62   ;;  %v6060_v54 = vld [vmem:[%s7982_s6 + $0x38] sm:$0xff] }
 0x669   : > { %v6012_v1 = vpop.eup %6011  ;;  %6019 = vpow2.f32 %v2161_v52 }
 0x66a   : > { %v6014_v23 = vpop.eup %6013  ;;  %v4868_v48 = vadd.f32 -1.0, %v6012_v1  ;;  %v2163_v3 = vmul.f32 1.442695, %v2142_v29  ;;  %vm2150_vm14 = vcmp.gt.f32.partialorder %v2142_v29, 0.0 }
 0x66b   : > { %v4867_v47 = vadd.f32 -1.0, %v6014_v23  ;;  %v2135_v2 = vpop.permute.xlu1 %2134 }
 0x66c   : > { %6021 = vpow2.f32 %v2163_v3  ;;  %v2178_v46 = vsel %vm2146_vm10, %v2138_v26, %v4868_v48  ;;  %5893 = vset.pattern.permute.xlu1 %v8067_v59  ;;  %v2144_v3 = vmul.f32 %v2135_v2, %v6533_v4  ;;  %v6062_v4 = vld [vmem:[%s7982_s6 + $0x30] sm:$0xff] }
 0x66d   : > { %v2177_v36 = vsel %vm2145_vm9, %v2137_v43, %v4867_v47  ;;  %3349 = vperm.xlu1 %5893, %v6060_v54  }
 0x66e   : > { %5226 = vmatprep.mubr.msk.f32.mxu0 %vm1246_vm2, %v2177_v36  ;;  %v6016_v30 = vpop.eup %6015  ;;  %v6061_v36 = vld [vmem:[%s7982_s6 + $0x20] sm:$0xff]  ;;  %v2167_v62 = vmul.f32 1.442695, %v2144_v3  ;;  %vm2152_vm3 = vcmp.gt.f32.partialorder %v2144_v3, 0.0 }
 0x66f   : > { %5227 = vmatmul.mubr.msk.f32.vlgmr.msra.gmra.mrb[20].mxu0 %vm1246_vm2, %v2178_v46  ;;  %v4870_v60 = vadd.f32 -1.0, %v6016_v30 }
 0x670   : > { %6023 = vpow2.f32 %v2167_v62  ;;  %v7090_v2 = vpop.permute.xlu1 %3253 }
 0x671   : > { %v2180_v48 = vsel %vm2148_vm12, %v2140_v17, %v4870_v60  ;;  %5894 = vset.pattern.permute.xlu1 %v8076_v19 }
 0x672   : > { %v6018_v49 = vpop.eup %6017  ;;  %3497 = vperm.xlu1 %5894, %v6061_v36  }
 0x673   : > { %v6020_v43 = vpop.eup %6019  ;;  %v4869_v52 = vadd.f32 -1.0, %v6018_v49 }
 0x674   : > { %v4871_v1 = vadd.f32 -1.0, %v6020_v43 }
 0x675   : > { %v2179_v26 = vsel %vm2147_vm11, %v2139_v11, %v4869_v52  ;;  %v8085_v52 = vmov 0.0  }
 0x676   : > { %v6022_v23 = vpop.eup %6021  ;;  %5229 = vmatprep.mubr.msk.f32.mxu0 %vm1246_vm2, %v2179_v26  ;;  %v2181_v59 = vsel %vm2149_vm13, %v2141_v27, %v4871_v1  ;;  %5895 = vset.pattern.permute.xlu1 %v8075_v12  ;;  %v7092_v1 = vpop.permute.xlu1 %3405 }
 0x677   : > { %5230 = vmatmul.mubr.msk.f32.gmra.mrb[22].mxu0 %vm1246_vm2, %v2180_v48  ;;  %v4872_v47 = vadd.f32 -1.0, %v6022_v23  ;;  %3425 = vperm.xlu1 %5895, %v6062_v4  }
 0x678   : > { %5232 = vmatprep.mubr.msk.f32.mxu0 %vm1246_vm2, %v2181_v59 }
 0x679   : > { %v2182_v11 = vsel %vm2150_vm14, %v2142_v29, %v4872_v47  ;;  %v6063_v29 = vld [vmem:[%s7982_s6 + $0x28] sm:$0xff] }
 0x67a   : > { %v6024_v12 = vpop.eup %6023 }
 0x67b   : > { %5233 = vmatmul.mubr.msk.f32.gmra.mrb[24].mxu0 %vm1246_vm2, %v2182_v11  ;;  %3429 = vperm.xlu1 %5895, %v6060_v54   ;;  %v4874_v49 = vadd.f32 -1.0, %v6024_v12 }
 0x67d   : > { %v2130_v17 = vpop.permute.xlu0 %2129  ;;  %v2184_v43 = vsel %vm2152_vm3, %v2144_v3, %v4874_v49 }
 0x67e   : > { %v2143_v27 = vmul.f32 %v2130_v17, %v6527_v57 }
 0x67f   : > { %5898 = vset.pattern.permute.xlu1 %v8084_v13 }
 0x680   : > { %v2165_v46 = vmul.f32 1.442695, %v2143_v27  ;;  %3581 = vperm.xlu1 %5898, %v6063_v29   ;;  %vm2151_vm15 = vcmp.gt.f32.partialorder %v2143_v27, 0.0 }
 0x682   : > { %6025 = vpow2.f32 %v2165_v46  ;;  %v7108_v47 = vpop.permute.xlu0 %3029 }
 0x683   : > { %8091 = vst [vmem:[#allocation47_spill] sm:$0xff] %v7108_v47 }
 0x684   : > { %5899 = vset.pattern.permute.xlu1 %v8076_v19  ;;  %v6064_v19 = vld [vmem:[%s7982_s6 + $0x8] sm:$0xff] }
 0x685   : > { %3505 = vperm.xlu1 %5899, %v6062_v4  }
 0x689   : > { %5900 = vset.pattern.permute.xlu1 %v8084_v13  ;;  %v6065_v13 = vld [vmem:[%s7982_s6 + $0x10] sm:$0xff] }
 0x68a   : > { %3585 = vperm.xlu1 %5900, %v6062_v4  }
 0x68c   : > { %v6026_v30 = vpop.eup %6025 }
 0x68d   : > { %v4873_v60 = vadd.f32 -1.0, %v6026_v30 }
 0x68e   : > { %3589 = vperm.xlu1 %5900, %v6060_v54   ;;  %v7094_v54 = vpop.permute.xlu1 %3025 }
 0x68f   : > { %v2183_v57 = vsel %vm2151_vm15, %v2143_v27, %v4873_v60  ;;  %8086 = vst [vmem:[#allocation42_spill] sm:$0xff] %v7094_v54 }
 0x690   : > { %5235 = vmatprep.mubr.msk.f32.mxu0 %vm1246_vm2, %v2183_v57 }
 0x691   : > { %5236 = vmatmul.mubr.msk.f32.gmra.mrb[26].mxu0 %vm1246_vm2, %v2184_v43  ;;  %vm2367_vm2 = vcmask 195584  }
 0x692   : > { %5294 = vmatprep.mubr.msk.f32.mxu0 %vm6121_vm1, %v8085_v52  ;;  %5902 = vset.pattern.permute.xlu1 %v8055_v55  ;;  %v7096_v55 = vpop.permute.xlu1 %3177 }
 0x693   : > { %2391 = vperm.xlu1 %5902, %v6064_v19   ;;  %8087 = vst [vmem:[#allocation43_spill] sm:$0xff] %v7096_v55 }
 0x696   : > { %v7098_v26 = vpop.permute.xlu1 %3181 }
 0x697   : > { %2396 = vperm.xlu1 %5902, %v6065_v13   ;;  %8088 = vst [vmem:[#allocation44_spill] sm:$0xff] %v7098_v26 }
 0x69a   : > { %v7100_v23 = vpop.permute.xlu1 %3333 }
 0x69b   : > { %2406 = vperm.xlu1 %5902, %v6061_v36   ;;  %v7112_v36 = vpop.permute.xlu0 %3161 }
 0x69e   : > { %v7102_v48 = vpop.permute.xlu1 %3481 }
 0x69f   : > { %2416 = vperm.xlu1 %5902, %v6062_v4   ;;  %v7116_v62 = vpop.permute.xlu0 %3173 }
 0x6a2   : > { %v7104_v59 = vpop.permute.xlu1 %3105 }
 0x6a3   : > { %5904 = vset.pattern.permute.xlu1 %v8082_v44  ;;  %8089 = vst [vmem:[#allocation45_spill] sm:$0xff] %v7104_v59  ;;  %v7120_v17 = vpop.permute.xlu0 %3185 }
 0x6a4   : > { %8093 = vst [vmem:[#allocation49_spill] sm:$0xff] %v7120_v17 }
 0x6a6   : > { %v7106_v3 = vpop.permute.xlu1 %3109 }
 0x6a7   : > { %8090 = vst [vmem:[#allocation46_spill] sm:$0xff] %v7106_v3  ;;  %v7124_v46 = vpop.permute.xlu0 %3245 }
 0x6aa   : > { %v7110_v44 = vpop.permute.xlu1 %3261 }
 0x6ab   : > { %8092 = vst [vmem:[#allocation48_spill] sm:$0xff] %v7110_v44  ;;  %v7128_v49 = vpop.permute.xlu0 %3257 }
 0x6ac   : > { %8095 = vst [vmem:[#allocation51_spill] sm:$0xff] %v7128_v49 }
 0x6ae   : > { %v7114_v11 = vpop.permute.xlu1 %3409 }
 0x6af   : > { %v7132_v19 = vpop.permute.xlu0 %3265 }
 0x6b0   : > { %8097 = vst [vmem:[#allocation53_spill] sm:$0xff] %v7132_v19 }
 0x6b2   : > { %v7118_v4 = vpop.permute.xlu1 %3561 }
 0x6b6   : > { %v7122_v27 = vpop.permute.xlu1 %3565 }
 0x6ba   : > { %v7126_v12 = vpop.permute.xlu1 %3189 }
 0x6bb   : > { %8094 = vst [vmem:[#allocation50_spill] sm:$0xff] %v7126_v12  ;;  %v7136_v12 = vpop.permute.xlu0 %3401 }
 0x6be   : > { %v7130_v60 = vpop.permute.xlu1 %3337 }
 0x6bf   : > { %8096 = vst [vmem:[#allocation52_spill] sm:$0xff] %v7130_v60  ;;  %v7142_v59 = vpop.permute.xlu0 %3413 }
 0x6c2   : > { %v7134_v52 = vpop.permute.xlu1 %3489 }
 0x742   : > { %v5228_v29 = vpop.f32.mrb[20].mxu0 }
 0x743   : > { %2337 = vrot.lane.b32.xlu0 %v5228_v29, %s6170_s22  ;;  %v2288_v30 = vpop.f32.mrb[21].mxu0  ;;  %v7138_v29 = vpop.permute.xlu1 %3493 }
 0x744   : > { %2335 = vrot.lane.b32.xlu1 %v2288_v30, %s6170_s22 }
 0x747   : > { %v7140_v30 = vpop.permute.xlu1 %3269 }
 0x748   : > { %8098 = vst [vmem:[#allocation54_spill] sm:$0xff] %v7140_v30 }
 0x74a   : > { %v5231_v57 = vpop.f32.mrb[22].mxu0 }
 0x74b   : > { %2341 = vrot.lane.b32.xlu1 %v5231_v57, %s6170_s22  ;;  %v2298_v43 = vpop.f32.mrb[23].mxu0  ;;  %v7144_v3 = vpop.permute.xlu1 %3417 }
 0x74c   : > { %2339 = vrot.lane.b32.xlu0 %v2298_v43, %s6170_s22  ;;  %8099 = vst [vmem:[#allocation55_spill] sm:$0xff] %v7144_v3  ;;  %v7146_v57 = vpop.permute.xlu0 %3421 }
 0x74d   : > { %8100 = vst [vmem:[#allocation56_spill] sm:$0xff] %v7146_v57 }
 0x74e   : > { %v5234_v13 = vpop.f32.mrb[24].mxu0 }
 0x74f   : > { %v2308_v17 = vpop.f32.mrb[25].mxu0  ;;  %v7148_v19 = vpop.permute.xlu1 %3569 }
 0x750   : > { %2345 = vrot.lane.b32.xlu0 %v5234_v13, %s6170_s22  ;;  %2343 = vrot.lane.b32.xlu1 %v2308_v17, %s6170_s22  ;;  %v7150_v47 = vpop.permute.xlu0 %3329 }
 0x753   : > { %v7152_v17 = vpop.permute.xlu1 %3573 }
 0x754   : > { %v7154_v13 = vpop.permute.xlu0 %3341 }
 0x755   : > { %8101 = vst [vmem:[#allocation57_spill] sm:$0xff] %v7154_v13 }
 0x757   : > { %v7156_v60 = vpop.permute.xlu1 %3349 }
 0x758   : > { %8102 = vst [vmem:[#allocation58_spill] sm:$0xff] %v7156_v60  ;;  %v7158_v30 = vpop.permute.xlu0 %3345 }
 0x759   : > { %8103 = vst [vmem:[#allocation59_spill] sm:$0xff] %v7158_v30 }
 0x75b   : > { %v7160_v49 = vpop.permute.xlu1 %3497 }
 0x75c   : > { %8104 = vst [vmem:[#allocation60_spill] sm:$0xff] %v7160_v49  ;;  %v7162_v3 = vpop.permute.xlu0 %3577 }
 0x75d   : > { %8105 = vst [vmem:[#allocation61_spill] sm:$0xff] %v7162_v3 }
 0x75f   : > { %v7164_v57 = vpop.permute.xlu1 %3425 }
 0x760   : > { %8106 = vst [vmem:[#allocation62_spill] sm:$0xff] %v7164_v57  ;;  %v7166_v44 = vpop.permute.xlu0 %3485 }
 0x764   : > { %v5237_v43 = vpop.f32.mrb[26].mxu0  ;;  %v7170_v55 = vpop.permute.xlu0 %3501 }
 0x765   : > { %2349 = vrot.lane.b32.xlu1 %v5237_v43, %s6170_s22  ;;  %v2318_v54 = vpop.f32.mrb[27].mxu0  ;;  %v7168_v43 = vpop.permute.xlu1 %3429  ;;  %8108 = vst [vmem:[#allocation64_spill] sm:$0xff] %v7170_v55 }
 0x766   : > { %2347 = vrot.lane.b32.xlu0 %v2318_v54, %s6170_s22  ;;  %8107 = vst [vmem:[#allocation63_spill] sm:$0xff] %v7168_v43  ;;  %s8026_s22 = smov 115  }
 0x768   : > { %v7174_v26 = vpop.permute.xlu0 %3509 }
 0x769   : > { %v7172_v54 = vpop.permute.xlu1 %3581  ;;  %8110 = vst [vmem:[#allocation66_spill] sm:$0xff] %v7174_v26 }
 0x76a   : > { %8109 = vst [vmem:[#allocation65_spill] sm:$0xff] %v7172_v54 }
 0x76c   : > { %v7178_v60 = vpop.permute.xlu0 %2386 }
 0x76d   : > { %v7176_v13 = vpop.permute.xlu1 %3505  ;;  %8112 = vst [vmem:[#allocation68_spill] sm:$0xff] %v7178_v60 }
 0x76e   : > { %8111 = vst [vmem:[#allocation67_spill] sm:$0xff] %v7176_v13 }
 0x770   : > { %v7182_v49 = vpop.permute.xlu0 %2401 }
 0x771   : > { %v7180_v30 = vpop.permute.xlu1 %3585  ;;  %8114 = vst [vmem:[#allocation70_spill] sm:$0xff] %v7182_v49 }
 0x772   : > { %8113 = vst [vmem:[#allocation69_spill] sm:$0xff] %v7180_v30 }
 0x774   : > { %v7186_v57 = vpop.permute.xlu0 %2411 }
 0x775   : > { %v7184_v3 = vpop.permute.xlu1 %3589  ;;  %8116 = vst [vmem:[#allocation72_spill] sm:$0xff] %v7186_v57 }
 0x776   : > { %8115 = vst [vmem:[#allocation71_spill] sm:$0xff] %v7184_v3 }
 0x778   : > { %v7190_v43 = vpop.permute.xlu0 %2421 }
 0x779   : > { %v7188_v45 = vpop.permute.xlu1 %2391  ;;  %8118 = vst [vmem:[#allocation74_spill] sm:$0xff] %v7190_v43 }
 0x77a   : > { %8117 = vst [vmem:[#allocation73_spill] sm:$0xff] %v7188_v45 }
 0x77c   : > { %v2602_v55 = vpop.permute.xlu0 %2601 }
 0x77d   : > { %v7192_v54 = vpop.permute.xlu1 %2396 }
 0x77e   : > { %8119 = vst [vmem:[#allocation75_spill] sm:$0xff] %v7192_v54 }
 0x780   : > { %v7194_v26 = vpop.permute.xlu0 %2613 }
 0x781   : > { %v7196_v13 = vpop.permute.xlu1 %2406 }
 0x782   : > { %8120 = vst [vmem:[#allocation76_spill] sm:$0xff] %v7196_v13 }
 0x784   : > { %v7198_v60 = vpop.permute.xlu0 %2621 }
 0x785   : > { %8121 = vst [vmem:[#allocation77_spill] sm:$0xff] %v7198_v60  ;;  %v7200_v30 = vpop.permute.xlu1 %2416 }
 0x7b5   : > { %v2338_v49 = vpop.permute.xlu0 %2337 }
 0x7b6   : > { %v2360_v3 = vsel %vm1831_vm7, 0.0, %v2338_v49  ;;  %v2336_v57 = vpop.permute.xlu1 %2335 }
 0x7b7   : > { %v7204_v45 = vsel %vm2367_vm2, %v2360_v3, 0.0  ;;  %v2359_v43 = vsel %vm1831_vm7, 0.0, %v2336_v57 }
 0x7b8   : > { %v7208_v54 = vsel %vm2367_vm2, %v2359_v43, 0.0  ;;  %v2473_v13 = vmul.f32 %v6708_v33, %v7204_v45  ;;  %v2553_v49 = vmul.f32 %v6843_v0, %v7204_v45  ;;  %v2633_v33 = vmul.f32 %v6716_v38, %v7204_v45 }
 0x7b9   : > { %v2472_v60 = vmul.f32 %v6824_v16, %v7208_v54  ;;  %v2552_v3 = vmul.f32 %v6710_v34, %v7208_v54  ;;  %v2632_v57 = vmul.f32 %v2602_v55, %v7208_v54  ;;  %v2713_v0 = vmul.f32 %v6722_v20, %v7204_v45 }
 0x7ba   : > { %2490 = vrot.lane.b32.xlu0 %v2473_v13, %s6163_s16  ;;  %v2712_v34 = vmul.f32 %v6720_v56, %v7208_v54  ;;  %v2793_v38 = vmul.f32 %v6738_v6, %v7204_v45  ;;  %v2792_v16 = vmul.f32 %v6728_v15, %v7208_v54  ;;  %v2873_v20 = vmul.f32 %v6776_v53, %v7204_v45 }
 0x7bb   : > { %2488 = vrot.lane.b32.xlu1 %v2472_v60, %s6163_s16  ;;  %v2872_v56 = vmul.f32 %v6767_v28, %v7208_v54  ;;  %v2953_v6 = vmul.f32 %v6804_v8, %v7204_v45  ;;  %v2952_v15 = vmul.f32 %v7009_v7, %v7208_v54  ;;  %v3033_v53 = vmul.f32 %v6991_v14, %v7204_v45 }
 0x7bc   : > { %v3032_v28 = vmul.f32 %v6833_v25, %v7208_v54  ;;  %v3113_v8 = vmul.f32 %v6869_v5, %v7204_v45  ;;  %v3112_v7 = vmul.f32 %v6864_v22, %v7208_v54  ;;  %v3193_v14 = vmul.f32 %v6924_v50, %v7204_v45 }
 0x7bd   : > { %v3192_v25 = vmul.f32 %v7112_v36, %v7208_v54  ;;  %v3273_v5 = vmul.f32 %v7124_v46, %v7204_v45  ;;  %v3272_v22 = vmul.f32 %v6955_v63, %v7208_v54  ;;  %v3353_v50 = vmul.f32 %v7002_v24, %v7204_v45  ;;  %v2342_v46 = vpop.permute.xlu1 %2341 }
 0x7be   : > { %2570 = vrot.lane.b32.xlu0 %v2553_v49, %s6126_s19  ;;  %v3352_v55 = vmul.f32 %v6994_v42, %v7208_v54  ;;  %v3433_v36 = vmul.f32 %v7092_v1, %v7204_v45  ;;  %v3432_v63 = vmul.f32 %v7136_v12, %v7208_v54  ;;  %v2340_v24 = vpop.permute.xlu0 %2339  ;;  %v3513_v42 = vmul.f32 %v7166_v44, %v7204_v45 }
 0x7bf   : > { %2568 = vrot.lane.b32.xlu1 %v2552_v3, %s6126_s19  ;;  %v3512_v60 = vmul.f32 %v7102_v48, %v7208_v54  ;;  %v2362_v13 = vsel %vm1831_vm7, 0.0, %v2342_v46  ;;  %v2361_v1 = vsel %vm1831_vm7, 0.0, %v2340_v24  ;;  %v3593_v12 = vmul.f32 %v7122_v27, %v7204_v45  ;;  %v8134_v24 = vld [vmem:[#allocation7_spill] sm:$0xff] }
 0x7c0   : > { %v7298_v43 = vsel %vm2367_vm2, %v2362_v13, 0.0  ;;  %v3592_v44 = vmul.f32 %v7118_v4, %v7208_v54  ;;  %v7303_v49 = vsel %vm2367_vm2, %v2361_v1, 0.0  ;;  %v8135_v13 = vld [vmem:[#allocation20_spill] sm:$0xff] }
 0x7c1   : > { %v2475_v48 = vmul.f32 %v6714_v37, %v7298_v43  ;;  %v2474_v27 = vmul.f32 %v6712_v35, %v7303_v49  ;;  %v2555_v4 = vmul.f32 %v6849_v32, %v7298_v43  ;;  %v2554_v3 = vmul.f32 %v6718_v39, %v7303_v49 }
 0x7c2   : > { %2650 = vrot.lane.b32.xlu0 %v2633_v33, %s6171_s17  ;;  %v2635_v37 = vmul.f32 %v7194_v26, %v7298_v43  ;;  %v2634_v35 = vmul.f32 %v6726_v61, %v7303_v49  ;;  %v2715_v32 = vmul.f32 %v6867_v58, %v7298_v43  ;;  %v2714_v39 = vmul.f32 %v6760_v51, %v7303_v49  ;;  %v8126_v33 = vld [vmem:[#allocation10_spill] sm:$0xff] }
 0x7c3   : > { %2648 = vrot.lane.b32.xlu1 %v2632_v57, %s6171_s17  ;;  %v2795_v26 = vmul.f32 %v6800_v31, %v7298_v43  ;;  %v2794_v61 = vmul.f32 %v8126_v33, %v7303_v49  ;;  %v8127_v57 = vld [vmem:[#allocation14_spill] sm:$0xff]  ;;  %v2874_v51 = vmul.f32 %v6950_v21, %v7303_v49  ;;  %v2955_v31 = vmul.f32 %v7017_v9, %v7298_v43 }
 0x7c4   : > { %v2875_v58 = vmul.f32 %v8127_v57, %v7298_v43  ;;  %v3034_v21 = vmul.f32 %v6918_v41, %v7303_v49  ;;  %v3115_v9 = vmul.f32 %v6946_v18, %v7298_v43  ;;  %v3275_v18 = vmul.f32 %v7090_v2, %v7298_v43  ;;  %v8140_v57 = vld [vmem:[#allocation19_spill] sm:$0xff] }
 0x7c5   : > { %v3435_v2 = vmul.f32 %v7142_v59, %v7298_v43 }
 0x7c6   : > { %2730 = vrot.lane.b32.xlu0 %v2713_v0, %s6125_s18  ;;  %v8128_v0 = vld [vmem:[#allocation21_spill] sm:$0xff] }
 0x7c7   : > { %2728 = vrot.lane.b32.xlu1 %v2712_v34, %s6125_s18  ;;  %v2954_v34 = vmul.f32 %v8128_v0, %v7303_v49 }
 0x7ca   : > { %2810 = vrot.lane.b32.xlu0 %v2793_v38, %s8032_s27  ;;  %v3035_v38 = vmul.f32 %v6921_v10, %v7298_v43  ;;  %v3195_v10 = vmul.f32 %v7116_v62, %v7298_v43  ;;  %v3355_v62 = vmul.f32 %v7100_v23, %v7298_v43 }
 0x7cb   : > { %2808 = vrot.lane.b32.xlu1 %v2792_v16, %s8032_s27  ;;  %v3114_v16 = vmul.f32 %v6982_v40, %v7303_v49 }
 0x7ce   : > { %2890 = vrot.lane.b32.xlu0 %v2873_v20, %s8122_s30  ;;  %v8129_v20 = vld [vmem:[#allocation35_spill] sm:$0xff] }
 0x7cf   : > { %2888 = vrot.lane.b32.xlu1 %v2872_v56, %s8122_s30  ;;  %v3194_v41 = vmul.f32 %v8129_v20, %v7303_v49  ;;  %v8130_v56 = vld [vmem:[#allocation39_spill] sm:$0xff]  ;;  %v8144_v20 = vld [vmem:[#allocation73_spill] sm:$0xff] }
 0x7d0   : > { %v3274_v40 = vmul.f32 %v8130_v56, %v7303_v49 }
 0x7d2   : > { %2970 = vrot.lane.b32.xlu0 %v2953_v6, %s8030_s15  ;;  %v3354_v6 = vmul.f32 %v7150_v47, %v7303_v49  ;;  %v3515_v47 = vmul.f32 %v7138_v29, %v7298_v43 }
 0x7d3   : > { %2968 = vrot.lane.b32.xlu1 %v2952_v15, %s8030_s15  ;;  %v2346_v15 = vpop.permute.xlu0 %2345 }
 0x7d4   : > { %v2364_v59 = vsel %vm1831_vm7, 0.0, %v2346_v15 }
 0x7d6   : > { %3050 = vrot.lane.b32.xlu0 %v3033_v53, %s8123_s21  ;;  %v2344_v53 = vpop.permute.xlu1 %2343 }
 0x7d7   : > { %3048 = vrot.lane.b32.xlu1 %v3032_v28, %s8123_s21  ;;  %v3434_v28 = vmul.f32 %v7114_v11, %v7303_v49  ;;  %v2363_v11 = vsel %vm1831_vm7, 0.0, %v2344_v53  ;;  %v8147_v53 = vld [vmem:[#allocation26_spill] sm:$0xff] }
 0x7d8   : > { %v7385_v23 = vpop.permute.xlu0 %2347 }
 0x7da   : > { %3130 = vrot.lane.b32.xlu0 %v3113_v8, %s8028_s28  ;;  %v7389_v8 = vpop.permute.xlu1 %2349 }
 0x7db   : > { %3128 = vrot.lane.b32.xlu1 %v3112_v7, %s8028_s28  ;;  %v3514_v7 = vmul.f32 %v7134_v52, %v7303_v49  ;;  %v7405_v52 = vsel %vm2367_vm2, %v2363_v11, 0.0  ;;  %v8148_v11 = vld [vmem:[#allocation34_spill] sm:$0xff] }
 0x7dc   : > { %v2556_v1 = vmul.f32 %v8135_v13, %v7405_v52  ;;  %v8151_v13 = vld [vmem:[#allocation38_spill] sm:$0xff] }
 0x7de   : > { %3210 = vrot.lane.b32.xlu0 %v3193_v14, %s8124_s29 }
 0x7df   : > { %3208 = vrot.lane.b32.xlu1 %v3192_v25, %s8124_s29  ;;  %v3595_v25 = vmul.f32 %v7152_v17, %v7298_v43  ;;  %v8133_v17 = vld [vmem:[#allocation15_spill] sm:$0xff] }
 0x7e0   : > { %v2476_v46 = vmul.f32 %v8133_v17, %v7405_v52 }
 0x7e2   : > { %3290 = vrot.lane.b32.xlu0 %v3273_v5, %s6175_s23  ;;  %v7400_v5 = vsel %vm2367_vm2, %v2364_v59, 0.0 }
 0x7e3   : > { %3288 = vrot.lane.b32.xlu1 %v3272_v22, %s6175_s23  ;;  %v3594_v22 = vmul.f32 %v7148_v19, %v7303_v49 }
 0x7e6   : > { %3370 = vrot.lane.b32.xlu0 %v3353_v50, %s8125_s20 }
 0x7e7   : > { %3368 = vrot.lane.b32.xlu1 %v3352_v55, %s8125_s20  ;;  %v8132_v55 = vld [vmem:[#allocation6_spill] sm:$0xff] }
 0x7ea   : > { %3450 = vrot.lane.b32.xlu0 %v3433_v36, %s8026_s22  ;;  %v2477_v36 = vmul.f32 %v8132_v55, %v7400_v5  ;;  %v8149_v55 = vld [vmem:[#allocation36_spill] sm:$0xff] }
 0x7eb   : > { %3448 = vrot.lane.b32.xlu1 %v3432_v63, %s8026_s22  ;;  %s6177_s22 = smov 113  }
 0x7ee   : > { %3530 = vrot.lane.b32.xlu0 %v3513_v42, %s6152_s24  ;;  %v2557_v42 = vmul.f32 %v8134_v24, %v7400_v5 }
 0x7ef   : > { %3528 = vrot.lane.b32.xlu1 %v3512_v60, %s6152_s24 }
 0x7f2   : > { %3610 = vrot.lane.b32.xlu0 %v3593_v12, %s6177_s22 }
 0x7f3   : > { %3608 = vrot.lane.b32.xlu1 %v3592_v44, %s6177_s22  ;;  %v8136_v44 = vld [vmem:[#allocation77_spill] sm:$0xff] }
 0x7f6   : > { %2494 = vrot.lane.b32.xlu0 %v2475_v48, %s6163_s16  ;;  %v2637_v48 = vmul.f32 %v8136_v44, %v7400_v5 }
 0x7f7   : > { %2492 = vrot.lane.b32.xlu1 %v2474_v27, %s6163_s16 }
 0x7fa   : > { %2574 = vrot.lane.b32.xlu0 %v2555_v4, %s6126_s19  ;;  %v8137_v4 = vld [vmem:[#allocation9_spill] sm:$0xff] }
 0x7fb   : > { %2572 = vrot.lane.b32.xlu1 %v2554_v3, %s6126_s19  ;;  %v2636_v3 = vmul.f32 %v8137_v4, %v7405_v52 }
 0x7fe   : > { %2654 = vrot.lane.b32.xlu0 %v2635_v37, %s6171_s17 }
 0x7ff   : > { %2652 = vrot.lane.b32.xlu1 %v2634_v35, %s6171_s17  ;;  %v8138_v35 = vld [vmem:[#allocation13_spill] sm:$0xff] }
 0x802   : > { %2734 = vrot.lane.b32.xlu0 %v2715_v32, %s6125_s18  ;;  %v2717_v32 = vmul.f32 %v8138_v35, %v7400_v5  ;;  %v8154_v35 = vld [vmem:[#allocation43_spill] sm:$0xff] }
 0x803   : > { %2732 = vrot.lane.b32.xlu1 %v2714_v39, %s6125_s18 }
 0x806   : > { %2814 = vrot.lane.b32.xlu0 %v2795_v26, %s8032_s27  ;;  %v8139_v26 = vld [vmem:[#allocation12_spill] sm:$0xff] }
 0x807   : > { %2812 = vrot.lane.b32.xlu1 %v2794_v61, %s8032_s27  ;;  %v2716_v33 = vmul.f32 %v8139_v26, %v7405_v52 }
 0x80a   : > { %2894 = vrot.lane.b32.xlu0 %v2875_v58, %s8122_s30  ;;  %v2797_v58 = vmul.f32 %v8140_v57, %v7400_v5 }
 0x80b   : > { %2892 = vrot.lane.b32.xlu1 %v2874_v51, %s8122_s30 }
 0x80e   : > { %2974 = vrot.lane.b32.xlu0 %v2955_v31, %s8030_s15  ;;  %v8141_v31 = vld [vmem:[#allocation31_spill] sm:$0xff] }
 0x80f   : > { %2972 = vrot.lane.b32.xlu1 %v2954_v34, %s8030_s15  ;;  %v2796_v0 = vmul.f32 %v8141_v31, %v7405_v52  ;;  %v8156_v31 = vld [vmem:[#allocation51_spill] sm:$0xff] }
 0x812   : > { %3054 = vrot.lane.b32.xlu0 %v3035_v38, %s8123_s21  ;;  %v8142_v38 = vld [vmem:[#allocation29_spill] sm:$0xff] }
 0x813   : > { %3052 = vrot.lane.b32.xlu1 %v3034_v21, %s8123_s21  ;;  %v2877_v21 = vmul.f32 %v8142_v38, %v7400_v5 }
 0x816   : > { %3134 = vrot.lane.b32.xlu0 %v3115_v9, %s8028_s28 }
 0x817   : > { %3132 = vrot.lane.b32.xlu1 %v3114_v16, %s8028_s28  ;;  %s8131_s28 = smov 115   ;;  %v8143_v16 = vld [vmem:[#allocation24_spill] sm:$0xff] }
 0x81a   : > { %3214 = vrot.lane.b32.xlu0 %v3195_v10, %s8124_s29  ;;  %v2876_v10 = vmul.f32 %v8143_v16, %v7405_v52  ;;  %v8157_v16 = vld [vmem:[#allocation57_spill] sm:$0xff] }
 0x81b   : > { %3212 = vrot.lane.b32.xlu1 %v3194_v41, %s8124_s29  ;;  %v2425_v41 = vmul.f32 %v8144_v20, %v7204_v45 }
 0x81e   : > { %3294 = vrot.lane.b32.xlu0 %v3275_v18, %s6175_s23  ;;  %v8145_v18 = vld [vmem:[#allocation68_spill] sm:$0xff] }
 0x81f   : > { %3292 = vrot.lane.b32.xlu1 %v3274_v40, %s6175_s23  ;;  %v2424_v56 = vmul.f32 %v8145_v18, %v7208_v54  ;;  %v3037_v54 = vmul.f32 %v8148_v11, %v7400_v5  ;;  %v8158_v18 = vld [vmem:[#allocation52_spill] sm:$0xff] }
 0x822   : > { %3374 = vrot.lane.b32.xlu0 %v3355_v62, %s8125_s20  ;;  %v8146_v62 = vld [vmem:[#allocation27_spill] sm:$0xff] }
 0x823   : > { %3372 = vrot.lane.b32.xlu1 %v3354_v6, %s8125_s20  ;;  %v2957_v6 = vmul.f32 %v8146_v62, %v7400_v5 }
 0x826   : > { %3454 = vrot.lane.b32.xlu0 %v3435_v2, %s8131_s28 }
 0x827   : > { %3452 = vrot.lane.b32.xlu1 %v3434_v28, %s8131_s28  ;;  %v2956_v28 = vmul.f32 %v8147_v53, %v7405_v52 }
 0x82a   : > { %3534 = vrot.lane.b32.xlu0 %v3515_v47, %s6152_s24 }
 0x82b   : > { %3532 = vrot.lane.b32.xlu1 %v3514_v7, %s6152_s24 }
 0x82c   : > { %v2491_v14 = vpop.permute.xlu0 %2490 }
 0x82d   : > { %v2489_v29 = vpop.permute.xlu1 %2488  ;;  %v2513_v15 = vadd.f32 %v2491_v14, %v2425_v41  ;;  %v3036_v14 = vmul.f32 %v8149_v55, %v7405_v52 }
 0x82e   : > { %3614 = vrot.lane.b32.xlu0 %v3595_v25, %s6177_s22  ;;  %v2512_v47 = vadd.f32 %v2489_v29, %v2424_v56  ;;  %v3356_v56 = vmul.f32 %v8158_v18, %v7405_v52  ;;  %v8173_v18 = vld [vmem:[#allocation33_spill] sm:$0xff] }
 0x82f   : > { %3612 = vrot.lane.b32.xlu1 %v3594_v22, %s6177_s22 }
 0x830   : > { %v2571_v50 = vpop.permute.xlu0 %2570 }
 0x831   : > { %v2569_v63 = vpop.permute.xlu1 %2568  ;;  %v2593_v7 = vadd.f32 %v2571_v50, %v2513_v15 }
 0x832   : > { %2498 = vrot.lane.b32.xlu0 %v2477_v36, %s6163_s16  ;;  %v2592_v45 = vadd.f32 %v2569_v63, %v2512_v47 }
 0x833   : > { %2496 = vrot.lane.b32.xlu1 %v2476_v46, %s6163_s16  ;;  %v8150_v46 = vld [vmem:[#allocation41_spill] sm:$0xff] }
 0x834   : > { %v2651_v19 = vpop.permute.xlu0 %2650  ;;  %v3117_v63 = vmul.f32 %v8150_v46, %v7400_v5 }
 0x835   : > { %v2649_v60 = vpop.permute.xlu1 %2648  ;;  %v2673_v25 = vadd.f32 %v2651_v19, %v2593_v7  ;;  %v3116_v19 = vmul.f32 %v8151_v13, %v7405_v52  ;;  %v8160_v7 = vld [vmem:[#allocation55_spill] sm:$0xff]  ;;  %v8163_v13 = vld [vmem:[#allocation65_spill] sm:$0xff] }
 0x836   : > { %2578 = vrot.lane.b32.xlu0 %v2557_v42, %s6126_s19  ;;  %v2672_v36 = vadd.f32 %v2649_v60, %v2592_v45  ;;  %v3436_v45 = vmul.f32 %v8160_v7, %v7405_v52 }
 0x837   : > { %2576 = vrot.lane.b32.xlu1 %v2556_v1, %s6126_s19 }
 0x838   : > { %v2731_v12 = vpop.permute.xlu0 %2730 }
 0x839   : > { %v2729_v27 = vpop.permute.xlu1 %2728  ;;  %v2753_v17 = vadd.f32 %v2731_v12, %v2673_v25 }
 0x83a   : > { %2658 = vrot.lane.b32.xlu0 %v2637_v48, %s6171_s17  ;;  %v2752_v29 = vadd.f32 %v2729_v27, %v2672_v36  ;;  %v8153_v48 = vld [vmem:[#allocation44_spill] sm:$0xff] }
 0x83b   : > { %2656 = vrot.lane.b32.xlu1 %v2636_v3, %s6171_s17  ;;  %v3197_v27 = vmul.f32 %v8153_v48, %v7400_v5  ;;  %v8165_v48 = vld [vmem:[#allocation8_spill] sm:$0xff] }
 0x83c   : > { %v2811_v37 = vpop.permute.xlu0 %2810 }
 0x83d   : > { %v2809_v39 = vpop.permute.xlu1 %2808  ;;  %v2833_v24 = vadd.f32 %v2811_v37, %v2753_v17  ;;  %v3196_v37 = vmul.f32 %v8154_v35, %v7405_v52  ;;  %v8162_v17 = vld [vmem:[#allocation60_spill] sm:$0xff] }
 0x83e   : > { %2738 = vrot.lane.b32.xlu0 %v2717_v32, %s6125_s18  ;;  %v2832_v1 = vadd.f32 %v2809_v39, %v2752_v29  ;;  %v3516_v29 = vmul.f32 %v8162_v17, %v7405_v52  ;;  %v8180_v17 = vld [vmem:[#allocation40_spill] sm:$0xff] }
 0x83f   : > { %2736 = vrot.lane.b32.xlu1 %v2716_v33, %s6125_s18 }
 0x840   : > { %v2891_v61 = vpop.permute.xlu0 %2890 }
 0x841   : > { %v2889_v51 = vpop.permute.xlu1 %2888  ;;  %v2913_v44 = vadd.f32 %v2891_v61, %v2833_v24  ;;  %v8155_v61 = vld [vmem:[#allocation48_spill] sm:$0xff] }
 0x842   : > { %2818 = vrot.lane.b32.xlu0 %v2797_v58, %s8032_s27  ;;  %v2912_v60 = vadd.f32 %v2889_v51, %v2832_v1  ;;  %v3277_v57 = vmul.f32 %v8155_v61, %v7400_v5 }
 0x843   : > { %2816 = vrot.lane.b32.xlu1 %v2796_v0, %s8032_s27  ;;  %v3276_v0 = vmul.f32 %v8156_v31, %v7405_v52 }
 0x844   : > { %v2971_v34 = vpop.permute.xlu0 %2970 }
 0x845   : > { %v2969_v9 = vpop.permute.xlu1 %2968  ;;  %v2993_v4 = vadd.f32 %v2971_v34, %v2913_v44 }
 0x846   : > { %2898 = vrot.lane.b32.xlu0 %v2877_v21, %s8122_s30  ;;  %v2992_v32 = vadd.f32 %v2969_v9, %v2912_v60  ;;  %v8164_v60 = vld [vmem:[#allocation61_spill] sm:$0xff] }
 0x847   : > { %2896 = vrot.lane.b32.xlu1 %v2876_v10, %s8122_s30  ;;  %v3357_v10 = vmul.f32 %v8157_v16, %v7400_v5 }
 0x848   : > { %v3051_v40 = vpop.permute.xlu0 %3050 }
 0x849   : > { %v3049_v2 = vpop.permute.xlu1 %3048  ;;  %v3073_v26 = vadd.f32 %v3051_v40, %v2993_v4 }
 0x84a   : > { %2978 = vrot.lane.b32.xlu0 %v2957_v6, %s8030_s15  ;;  %v3072_v39 = vadd.f32 %v3049_v2, %v2992_v32  ;;  %v8159_v2 = vld [vmem:[#allocation56_spill] sm:$0xff]  ;;  %v8167_v32 = vld [vmem:[#allocation22_spill] sm:$0xff] }
 0x84b   : > { %2976 = vrot.lane.b32.xlu1 %v2956_v28, %s8030_s15  ;;  %s8152_s15 = smov 119   ;;  %v3437_v53 = vmul.f32 %v8159_v2, %v7400_v5  ;;  %v8175_v2 = vld [vmem:[#allocation32_spill] sm:$0xff] }
 0x84c   : > { %v3131_v59 = vpop.permute.xlu0 %3130 }
 0x84d   : > { %v3129_v22 = vpop.permute.xlu1 %3128  ;;  %v3153_v58 = vadd.f32 %v3131_v59, %v3073_v26 }
 0x84e   : > { %3058 = vrot.lane.b32.xlu0 %v3037_v54, %s8123_s21  ;;  %v3152_v34 = vadd.f32 %v3129_v22, %v3072_v39  ;;  %v8161_v22 = vld [vmem:[#allocation64_spill] sm:$0xff] }
 0x84f   : > { %3056 = vrot.lane.b32.xlu1 %v3036_v14, %s8123_s21  ;;  %v3517_v55 = vmul.f32 %v8161_v22, %v7400_v5  ;;  %v8179_v22 = vld [vmem:[#allocation37_spill] sm:$0xff] }
 0x850   : > { %v3211_v50 = vpop.permute.xlu0 %3210 }
 0x851   : > { %v3209_v42 = vpop.permute.xlu1 %3208  ;;  %v3233_v38 = vadd.f32 %v3211_v50, %v3153_v58  ;;  %v2366_v50 = vsel %vm1831_vm7, 0.0, %v7389_v8  ;;  %v3596_v8 = vmul.f32 %v8164_v60, %v7405_v52  ;;  %v8169_v58 = vld [vmem:[#allocation18_spill] sm:$0xff] }
 0x852   : > { %3138 = vrot.lane.b32.xlu0 %v3117_v63, %s8152_s15  ;;  %v3232_v21 = vadd.f32 %v3209_v42, %v3152_v34  ;;  %v2365_v63 = vsel %vm1831_vm7, 0.0, %v7385_v23  ;;  %v7504_v1 = vsel %vm2367_vm2, %v2366_v50, 0.0  ;;  %v4004_v50 = vld [vmem:[%s7985_s9] sm:$0xff] }
 0x853   : > { %3136 = vrot.lane.b32.xlu1 %v3116_v19, %s8152_s15  ;;  %v3597_v19 = vmul.f32 %v8163_v13, %v7400_v5  ;;  %v2559_v26 = vmul.f32 %v8167_v32, %v7504_v1  ;;  %v8182_v13 = vld [vmem:[#allocation47_spill] sm:$0xff] }
 0x854   : > { %v3291_v12 = vpop.permute.xlu0 %3290 }
 0x855   : > { %v3289_v3 = vpop.permute.xlu1 %3288  ;;  %v3313_v20 = vadd.f32 %v3291_v12, %v3233_v38  ;;  %v7509_v12 = vsel %vm2367_vm2, %v2365_v63, 0.0 }
 0x856   : > { %3218 = vrot.lane.b32.xlu0 %v3197_v27, %s8124_s29  ;;  %v3312_v40 = vadd.f32 %v3289_v3, %v3232_v21  ;;  %v2479_v27 = vmul.f32 %v8165_v48, %v7504_v1  ;;  %v8166_v3 = vld [vmem:[#allocation16_spill] sm:$0xff]  ;;  %v8171_v21 = vld [vmem:[#allocation23_spill] sm:$0xff]  ;;  %v8183_v48 = vld [vmem:[#allocation42_spill] sm:$0xff] }
 0x857   : > { %3216 = vrot.lane.b32.xlu1 %v3196_v37, %s8124_s29  ;;  %v2478_v35 = vmul.f32 %v8166_v3, %v7509_v12  ;;  %v8184_v3 = vmov 0.0|0.0  }
 0x858   : > { %v3371_v33 = vpop.permute.xlu0 %3370 }
 0x859   : > { %v3369_v51 = vpop.permute.xlu1 %3368  ;;  %v3393_v62 = vadd.f32 %v3371_v33, %v3313_v20  ;;  %v8168_v33 = vld [vmem:[#allocation11_spill] sm:$0xff] }
 0x85a   : > { %3298 = vrot.lane.b32.xlu0 %v3277_v57, %s6175_s23  ;;  %v3392_v6 = vadd.f32 %v3369_v51, %v3312_v40  ;;  %v2558_v61 = vmul.f32 %v8168_v33, %v7509_v12  ;;  %v2639_v51 = vmul.f32 %v8169_v58, %v7504_v1  ;;  %v8185_v33 = vld [vmem:[#allocation46_spill] sm:$0xff] }
 0x85b   : > { %3296 = vrot.lane.b32.xlu1 %v3276_v0, %s6175_s23  ;;  %v8170_v0 = vld [vmem:[#allocation17_spill] sm:$0xff] }
 0x85c   : > { %v3451_v9 = vpop.permute.xlu0 %3450  ;;  %v2638_v34 = vmul.f32 %v8170_v0, %v7509_v12  ;;  %v8186_v0 = vld [vmem:[#allocation45_spill] sm:$0xff] }
 0x85d   : > { %v3449_v41 = vpop.permute.xlu1 %3448  ;;  %v3473_v28 = vadd.f32 %v3451_v9, %v3393_v62  ;;  %v2719_v9 = vmul.f32 %v8171_v21, %v7504_v1  ;;  %v8174_v62 = vld [vmem:[#allocation25_spill] sm:$0xff] }
 0x85e   : > { %3378 = vrot.lane.b32.xlu0 %v3357_v10, %s8125_s20  ;;  %v3472_v59 = vadd.f32 %v3449_v41, %v3392_v6  ;;  %v8172_v10 = vld [vmem:[#allocation28_spill] sm:$0xff]  ;;  %v2798_v6 = vmul.f32 %v8174_v62, %v7509_v12 }
 0x85f   : > { %3376 = vrot.lane.b32.xlu1 %v3356_v56, %s8125_s20  ;;  %v2718_v20 = vmul.f32 %v8172_v10, %v7509_v12  ;;  %v2799_v56 = vmul.f32 %v8173_v18, %v7504_v1 }
 0x860   : > { %v3531_v15 = vpop.permute.xlu0 %3530 }
 0x861   : > { %v3529_v47 = vpop.permute.xlu1 %3528  ;;  %v3553_v11 = vadd.f32 %v3531_v15, %v3473_v28 }
 0x862   : > { %3458 = vrot.lane.b32.xlu0 %v3437_v53, %s8131_s28  ;;  %v3552_v54 = vadd.f32 %v3529_v47, %v3472_v59  ;;  %v2879_v53 = vmul.f32 %v8175_v2, %v7504_v1  ;;  %v8176_v47 = vld [vmem:[#allocation30_spill] sm:$0xff] }
 0x863   : > { %3456 = vrot.lane.b32.xlu1 %v3436_v45, %s8131_s28  ;;  %v2878_v7 = vmul.f32 %v8176_v47, %v7509_v12  ;;  %v8177_v45 = vld [vmem:[#allocation70_spill] sm:$0xff] }
 0x864   : > { %v3611_v25 = vpop.permute.xlu0 %3610  ;;  %v2427_v59 = vmul.f32 %v8177_v45, %v7298_v43  ;;  %v4005_v43 = vld [vmem:[%s7985_s9 + $0x8] sm:$0xff]  ;;  %v8189_v45 = vld [vmem:[#allocation54_spill] sm:$0xff] }
 0x865   : > { %v3633_v14 = vadd.f32 %v3611_v25, %v3553_v11  ;;  %v3609_v36 = vpop.permute.xlu1 %3608  ;;  %v8178_v11 = vld [vmem:[#allocation75_spill] sm:$0xff] }
 0x866   : > { %v3632_v46 = vadd.f32 %v3609_v36, %v3552_v54  ;;  %3538 = vrot.lane.b32.xlu0 %v3517_v55, %s6152_s24  ;;  %v2426_v54 = vmul.f32 %v8178_v11, %v7303_v49  ;;  %v2959_v55 = vmul.f32 %v8179_v22, %v7504_v1  ;;  %v5640_v49 = vpack.c.bf16 %v4005_v43, %v4004_v50  ;;  %v8190_v22 = vld [vmem:[#allocation53_spill] sm:$0xff] }
 0x867   : > { %3536 = vrot.lane.b32.xlu1 %v3516_v29, %s6152_s24  ;;  %v2958_v29 = vmul.f32 %v8180_v17, %v7509_v12 }
 0x868   : > { %v5623_v24 = vpack.c.bf16 %v3633_v14, %v3632_v46  ;;  %v2495_v42 = vpop.permute.xlu0 %2494  ;;  %5641 = vmatpush3.bf16.msra.mxu0 %v5640_v49  ;;  %v8192_v49 = vld [vmem:[#allocation59_spill] sm:$0xff] }
 0x869   : > { %v2493_v44 = vpop.permute.xlu1 %2492  ;;  %v2515_v14 = vadd.f32 %v2495_v42, %v2427_v59  ;;  %5642 = vmatprep.subr.bf16.mxu0 %v8184_v3  ;;  %v3279_v59 = vmul.f32 %v8189_v45, %v7504_v1  ;;  %v6072_v45 = vld [vmem:[%s7988_s12 + $0x18] sm:$0xff] }
 0x86a   : > { %3618 = vrot.lane.b32.xlu0 %v3597_v19, %s6177_s22  ;;  %5624 = vmatprep.subr.bf16.mxu1 %v5623_v24  ;;  %v2514_v46 = vadd.f32 %v2493_v44, %v2426_v54  ;;  %v3039_v19 = vmul.f32 %v8182_v13, %v7504_v1  ;;  %v4006_v44 = vld [vmem:[%s7985_s9 + $0x10] sm:$0xff] }
 0x86b   : > { %3616 = vrot.lane.b32.xlu1 %v3596_v8, %s6177_s22  ;;  %5626 = vmatpush3.bf16.msra.mxu1 %v5623_v24 }
 0x86c   : > { %v2575_v23 = vpop.permute.xlu0 %2574 }
 0x86d   : > { %v2573_v4 = vpop.permute.xlu1 %2572  ;;  %v2595_v63 = vadd.f32 %v2575_v23, %v2515_v14  ;;  %v4007_v23 = vld [vmem:[%s7985_s9 + $0x18] sm:$0xff] }
 0x86e   : > { %2502 = vrot.lane.b32.xlu0 %v2479_v27, %s6163_s16  ;;  %v2594_v24 = vadd.f32 %v2573_v4, %v2514_v46  ;;  %v3038_v27 = vmul.f32 %v8183_v48, %v7509_v12 }
 0x86f   : > { %2500 = vrot.lane.b32.xlu1 %v2478_v35, %s6163_s16  ;;  %v5643_v35 = vpack.c.bf16 %v4007_v23, %v4006_v44  ;;  %v8194_v44 = vld [vmem:[#allocation62_spill] sm:$0xff] }
 0x870   : > { %v2655_v37 = vpop.permute.xlu0 %2654  ;;  %v3438_v23 = vmul.f32 %v8194_v44, %v7509_v12 }
 0x871   : > { %v2653_v39 = vpop.permute.xlu1 %2652  ;;  %v2675_v60 = vadd.f32 %v2655_v37, %v2595_v63  ;;  %5644 = vmatpush3.bf16.msra.mxu0 %v5643_v35  ;;  %v3358_v63 = vmul.f32 %v8192_v49, %v7509_v12 }
 0x872   : > { %2582 = vrot.lane.b32.xlu0 %v2559_v26, %s6126_s19  ;;  %v2674_v4 = vadd.f32 %v2653_v39, %v2594_v24  ;;  %5645 = vmatprep.subr.bf16.mxu0 %v8184_v3  ;;  %v4008_v39 = vld [vmem:[%s7985_s9 + $0x20] sm:$0xff] }
 0x873   : > { %2580 = vrot.lane.b32.xlu1 %v2558_v61, %s6126_s19  ;;  %v3119_v61 = vmul.f32 %v8185_v33, %v7504_v1  ;;  %v8195_v33 = vld [vmem:[#allocation66_spill] sm:$0xff] }
 0x874   : > { %v2735_v57 = vpop.permute.xlu0 %2734 }
 0x875   : > { %v2733_v31 = vpop.permute.xlu1 %2732  ;;  %v2755_v32 = vadd.f32 %v2735_v57, %v2675_v60  ;;  %v4009_v57 = vld [vmem:[%s7985_s9 + $0x28] sm:$0xff] }
 0x876   : > { %2662 = vrot.lane.b32.xlu0 %v2639_v51, %s6171_s17  ;;  %v2754_v37 = vadd.f32 %v2733_v31, %v2674_v4  ;;  %v5646_v21 = vpack.c.bf16 %v4009_v57, %v4008_v39  ;;  %v8193_v60 = vld [vmem:[#allocation63_spill] sm:$0xff] }
 0x877   : > { %2660 = vrot.lane.b32.xlu1 %v2638_v34, %s6171_s17  ;;  %v3118_v34 = vmul.f32 %v8186_v0, %v7509_v12  ;;  %v8196_v0 = vld [vmem:[#allocation67_spill] sm:$0xff]  ;;  %s4848_s17 = sshll.u32 %s8206_s26, 2 }
 0x878   : > { %v2815_v38 = vpop.permute.xlu0 %2814  ;;  %5647 = vmatpush3.bf16.msra.mxu0 %v5646_v21  ;;  %v8197_v21 = vld [vmem:[#allocation71_spill] sm:$0xff] }
 0x879   : > { %v2813_v16 = vpop.permute.xlu1 %2812  ;;  %v2835_v58 = vadd.f32 %v2815_v38, %v2755_v32  ;;  %5648 = vmatprep.subr.bf16.mxu0 %v8184_v3  ;;  %v3640_v32 = vld [vmem:[%s7983_s7] sm:$0xff] }
 0x87a   : > { %2742 = vrot.lane.b32.xlu0 %v2719_v9, %s6125_s18  ;;  %v2834_v31 = vadd.f32 %v2813_v16, %v2754_v37  ;;  %v4010_v16 = vld [vmem:[%s7985_s9 + $0x30] sm:$0xff]  ;;  %5254 = vmatprep.mubr.msk.f32.mxu1 %vm604_vm0, %v3640_v32 }
 0x87b   : > { %2740 = vrot.lane.b32.xlu1 %v2718_v20, %s6125_s18  ;;  %v8187_v20 = vld [vmem:[#allocation50_spill] sm:$0xff]  ;;  %s6178_s18 = smov 5  }
 0x87c   : > { %v2895_v41 = vpop.permute.xlu0 %2894  ;;  %v3199_v18 = vmul.f32 %v8187_v20, %v7504_v1 }
 0x87d   : > { %v2893_v40 = vpop.permute.xlu1 %2892  ;;  %v2915_v9 = vadd.f32 %v2895_v41, %v2835_v58  ;;  %v4011_v41 = vld [vmem:[%s7985_s9 + $0x38] sm:$0xff] }
 0x87e   : > { %2822 = vrot.lane.b32.xlu0 %v2799_v56, %s8032_s27  ;;  %v2914_v38 = vadd.f32 %v2893_v40, %v2834_v31 }
 0x87f   : > { %2820 = vrot.lane.b32.xlu1 %v2798_v6, %s8032_s27  ;;  %v8188_v6 = vld [vmem:[#allocation49_spill] sm:$0xff] }
 0x880   : > { %v2975_v15 = vpop.permute.xlu0 %2974  ;;  %v3198_v2 = vmul.f32 %v8188_v6, %v7509_v12  ;;  %v6068_v6 = vld [vmem:[%s7988_s12] sm:$0xff] }
 0x881   : > { %v2973_v28 = vpop.permute.xlu1 %2972  ;;  %v2995_v56 = vadd.f32 %v2975_v15, %v2915_v9  ;;  %v3599_v9 = vmul.f32 %v8197_v21, %v7504_v1 }
 0x882   : > { %2902 = vrot.lane.b32.xlu0 %v2879_v53, %s8122_s30  ;;  %v2994_v40 = vadd.f32 %v2973_v28, %v2914_v38  ;;  %v5649_v53 = vpack.c.bf16 %v4011_v41, %v4010_v16  ;;  %v7652_v41 = vld [vmem:[%s7988_s12 + $0x20] sm:$0xff] }
 0x883   : > { %2900 = vrot.lane.b32.xlu1 %v2878_v7, %s8122_s30  ;;  %s8181_s30 = smov 121  }
 0x884   : > { %v3055_v25 = vpop.permute.xlu0 %3054  ;;  %5650 = vmatpush3.bf16.msra.mxu0 %v5649_v53 }
 0x885   : > { %v3053_v36 = vpop.permute.xlu1 %3052  ;;  %v3075_v15 = vadd.f32 %v3055_v25, %v2995_v56  ;;  %v6066_v25 = vld [vmem:[%s6306_s14] sm:$0xff]  ;;  %s450_s14 = scalar_lea.vmem %s7989_s13, %s4848_s17 }
 0x886   : > { %2982 = vrot.lane.b32.xlu0 %v2959_v55, %s8181_s30  ;;  %v3074_v47 = vadd.f32 %v3053_v36, %v2994_v40  ;;  %v3278_v55 = vmul.f32 %v8190_v22, %v7509_v12  ;;  %v7658_v40 = vld [vmem:[%s7988_s12 + $0x10] sm:$0xff]  ;;  %v6073_v22 = vld [vmem:[%s7988_s12 + $0x28] sm:$0xff] }
 0x887   : > { %2980 = vrot.lane.b32.xlu1 %v2958_v29, %s8181_s30  ;;  %5295 = vmatmul.mubr.msk.f32.vlgmr.msra.gmra.mrb[28].mxu0 %vm604_vm0, %v6066_v25  ;;  %v8191_v29 = vld [vmem:[#allocation58_spill] sm:$0xff]  ;;  %v6074_v25 = vld [vmem:[%s7988_s12 + $0x38] sm:$0xff] }
 0x888   : > { %v3135_v42 = vpop.permute.xlu0 %3134  ;;  %v3359_v50 = vmul.f32 %v8191_v29, %v7504_v1  ;;  %v8199_v29 = vld [vmem:[#allocation72_spill] sm:$0xff] }
 0x889   : > { %v3133_v8 = vpop.permute.xlu1 %3132  ;;  %v3155_v11 = vadd.f32 %v3135_v42, %v3075_v15 }
 0x88a   : > { %3062 = vrot.lane.b32.xlu0 %v3039_v19, %s8123_s21  ;;  %v3154_v14 = vadd.f32 %v3133_v8, %v3074_v47  ;;  %v3439_v8 = vmul.f32 %v8193_v60, %v7504_v1  ;;  %v7664_v47 = vld [vmem:[%s7988_s12 + $0x30] sm:$0xff]  ;;  %v463_v60 = vld [vmem:[%s7988_s12 + $0x58] sm:$0xff] }
 0x88b   : > { %3060 = vrot.lane.b32.xlu1 %v3038_v27, %s8123_s21  ;;  %s8204_s21 = smov 123  }
 0x88c   : > { %v3215_v26 = vpop.permute.xlu0 %3214 }
 0x88d   : > { %v3213_v51 = vpop.permute.xlu1 %3212  ;;  %v3235_v28 = vadd.f32 %v3215_v26, %v3155_v11 }
 0x88e   : > { %3142 = vrot.lane.b32.xlu0 %v3119_v61, %s8152_s15  ;;  %v3234_v36 = vadd.f32 %v3213_v51, %v3154_v14  ;;  %v3519_v61 = vmul.f32 %v8195_v33, %v7504_v1 }
 0x88f   : > { %3140 = vrot.lane.b32.xlu1 %v3118_v34, %s8152_s15  ;;  %v3518_v34 = vmul.f32 %v8196_v0, %v7509_v12 }
 0x890   : > { %v3295_v10 = vpop.permute.xlu0 %3294 }
 0x891   : > { %v3293_v62 = vpop.permute.xlu1 %3292  ;;  %v3315_v43 = vadd.f32 %v3295_v10, %v3235_v28  ;;  %v8198_v10 = vld [vmem:[#allocation69_spill] sm:$0xff]  ;;  %v7688_v28 = vld [vmem:[%s7988_s12 + $0x60] sm:$0xff] }
 0x892   : > { %3222 = vrot.lane.b32.xlu0 %v3199_v18, %s8124_s29  ;;  %v3314_v24 = vadd.f32 %v3293_v62, %v3234_v36  ;;  %v3598_v20 = vmul.f32 %v8198_v10, %v7509_v12  ;;  %v7643_v62 = vld [vmem:[%s7988_s12 + $0x8] sm:$0xff] }
 0x893   : > { %3220 = vrot.lane.b32.xlu1 %v3198_v2, %s8124_s29 }
 0x894   : > { %v3375_v7 = vpop.permute.xlu0 %3374 }
 0x895   : > { %v3373_v54 = vpop.permute.xlu1 %3372  ;;  %v3395_v42 = vadd.f32 %v3375_v7, %v3315_v43  ;;  %v7670_v7 = vld [vmem:[%s7988_s12 + $0x40] sm:$0xff]  ;;  %v7699_v43 = vld [vmem:[%s7988_s12 + $0x70] sm:$0xff] }
 0x896   : > { %3302 = vrot.lane.b32.xlu0 %v3279_v59, %s6175_s23  ;;  %v3394_v13 = vadd.f32 %v3373_v54, %v3314_v24  ;;  %v7679_v54 = vld [vmem:[%s7988_s12 + $0x50] sm:$0xff] }
 0x897   : > { %3300 = vrot.lane.b32.xlu1 %v3278_v55, %s6175_s23 }
 0x898   : > { %v3455_v17 = vpop.permute.xlu0 %3454 }
 0x899   : > { %v3453_v46 = vpop.permute.xlu1 %3452  ;;  %v3475_v48 = vadd.f32 %v3455_v17, %v3395_v42 }
 0x89a   : > { %3382 = vrot.lane.b32.xlu0 %v3359_v50, %s8125_s20  ;;  %v3474_v4 = vadd.f32 %v3453_v46, %v3394_v13  ;;  %v2429_v50 = vmul.f32 %v8199_v29, %v7400_v5  ;;  %v8200_v46 = vld [vmem:[#allocation76_spill] sm:$0xff]  ;;  %v461_v13 = vld [vmem:[%s7988_s12 + $0x48] sm:$0xff] }
 0x89b   : > { %3380 = vrot.lane.b32.xlu1 %v3358_v63, %s8125_s20  ;;  %v2428_v49 = vmul.f32 %v8200_v46, %v7405_v52 }
 0x89c   : > { %v3535_v19 = vpop.permute.xlu0 %3534 }
 0x89d   : > { %v3533_v27 = vpop.permute.xlu1 %3532  ;;  %v3555_v35 = vadd.f32 %v3535_v19, %v3475_v48 }
 0x89e   : > { %3462 = vrot.lane.b32.xlu0 %v3439_v8, %s8131_s28  ;;  %v3554_v37 = vadd.f32 %v3533_v27, %v3474_v4 }
 0x89f   : > { %3460 = vrot.lane.b32.xlu1 %v3438_v23, %s8131_s28  ;;  %v8201_v23 = vmov 4  }
 0x8a0   : > { %v3615_v26 = vpop.permute.xlu0 %3614 }
 0x8a1   : > { %v3635_v58 = vadd.f32 %v3615_v26, %v3555_v35  ;;  %v3613_v51 = vpop.permute.xlu1 %3612  ;;  %v465_v35 = vld [vmem:[%s7988_s12 + $0x68] sm:$0xff] }
 0x8a2   : > { %v3634_v39 = vadd.f32 %v3613_v51, %v3554_v37  ;;  %3542 = vrot.lane.b32.xlu0 %v3519_v61, %s6152_s24  ;;  %v467_v51 = vld [vmem:[%s7988_s12 + $0x78] sm:$0xff] }
 0x8a3   : > { %3540 = vrot.lane.b32.xlu1 %v3518_v34, %s6152_s24 }
 0x8a4   : > { %v5627_v57 = vpack.c.bf16 %v3635_v58, %v3634_v39  ;;  %v2499_v31 = vpop.permute.xlu0 %2498 }
 0x8a5   : > { %v2497_v38 = vpop.permute.xlu1 %2496  ;;  %v2517_v24 = vadd.f32 %v2499_v31, %v2429_v50 }
 0x8a6   : > { %3622 = vrot.lane.b32.xlu0 %v3599_v9, %s6177_s22  ;;  %5628 = vmatprep.subr.bf16.mxu1 %v5627_v57  ;;  %v2516_v19 = vadd.f32 %v2497_v38, %v2428_v49 }
 0x8a7   : > { %3620 = vrot.lane.b32.xlu1 %v3598_v20, %s6177_s22  ;;  %5630 = vmatpush3.bf16.msra.mxu1 %v5627_v57 }
 0x8a8   : > { %v2579_v18 = vpop.permute.xlu0 %2578 }
 0x8a9   : > { %v2577_v56 = vpop.permute.xlu1 %2576  ;;  %v2597_v5 = vadd.f32 %v2579_v18, %v2517_v24 }
 0x8aa   : > { %3661 = vperm.xlu0 %5903, %v7643_v62   ;;  %v2596_v8 = vadd.f32 %v2577_v56, %v2516_v19 }
 0x8ab   : > { %3657 = vperm.xlu1 %5904, %v6068_v6  }
 0x8ac   : > { %v2659_v2 = vpop.permute.xlu0 %2658 }
 0x8ad   : > { %v2657_v16 = vpop.permute.xlu1 %2656  ;;  %v2677_v27 = vadd.f32 %v2659_v2, %v2597_v5 }
 0x8ae   : > { %3673 = vperm.xlu0 %5903, %v7652_v41   ;;  %v2676_v44 = vadd.f32 %v2657_v16, %v2596_v8 }
 0x8af   : > { %3665 = vperm.xlu1 %5904, %v7658_v40  }
 0x8b0   : > { %v2739_v53 = vpop.permute.xlu0 %2738 }
 0x8b1   : > { %v2737_v15 = vpop.permute.xlu1 %2736  ;;  %v2757_v4 = vadd.f32 %v2739_v53, %v2677_v27  ;;  %v8202_v27 = vld [vmem:[#allocation74_spill] sm:$0xff] }
 0x8b2   : > { %3681 = vperm.xlu0 %5903, %v7664_v47   ;;  %v2756_v32 = vadd.f32 %v2737_v15, %v2676_v44 }
 0x8b3   : > { %3669 = vperm.xlu1 %5904, %v6072_v45  }
 0x8b4   : > { %v2819_v59 = vpop.permute.xlu0 %2818 }
 0x8b5   : > { %v2817_v11 = vpop.permute.xlu1 %2816  ;;  %v2837_v26 = vadd.f32 %v2819_v59, %v2757_v4 }
 0x8b6   : > { %3690 = vperm.xlu0 %5903, %v7670_v7   ;;  %v2836_v61 = vadd.f32 %v2817_v11, %v2756_v32 }
 0x8b7   : > { %3677 = vperm.xlu1 %5904, %v6073_v22  }
 0x8b8   : > { %v2899_v55 = vpop.permute.xlu0 %2898 }
 0x8b9   : > { %v2897_v14 = vpop.permute.xlu1 %2896  ;;  %v2917_v58 = vadd.f32 %v2899_v55, %v2837_v26 }
 0x8ba   : > { %3700 = vperm.xlu0 %5903, %v7679_v54   ;;  %v2916_v0 = vadd.f32 %v2897_v14, %v2836_v61 }
 0x8bb   : > { %3685 = vperm.xlu1 %5904, %v6074_v25  }
 0x8bc   : > { %v2979_v36 = vpop.permute.xlu0 %2978 }
 0x8bd   : > { %v2977_v17 = vpop.permute.xlu1 %2976  ;;  %v2997_v39 = vadd.f32 %v2979_v36, %v2917_v58 }
 0x8be   : > { %3710 = vperm.xlu0 %5903, %v7688_v28   ;;  %v2996_v31 = vadd.f32 %v2977_v17, %v2916_v0 }
 0x8bf   : > { %3695 = vperm.xlu1 %5904, %v461_v13  }
 0x8c0   : > { %v3059_v63 = vpop.permute.xlu0 %3058 }
 0x8c1   : > { %v3057_v42 = vpop.permute.xlu1 %3056  ;;  %v3077_v21 = vadd.f32 %v3059_v63, %v2997_v39 }
 0x8c2   : > { %3720 = vperm.xlu0 %5903, %v7699_v43   ;;  %v3076_v9 = vadd.f32 %v3057_v42, %v2996_v31 }
 0x8c3   : > { %3705 = vperm.xlu1 %5904, %v463_v60  }
 0x8c4   : > { %v3139_v48 = vpop.permute.xlu0 %3138 }
 0x8c5   : > { %v3137_v52 = vpop.permute.xlu1 %3136  ;;  %v3157_v10 = vadd.f32 %v3139_v48, %v3077_v21 }
 0x8c6   : > { %5905 = vset.pattern.permute.xlu0 %v8201_v23  ;;  %v3156_v18 = vadd.f32 %v3137_v52, %v3076_v9  ;;  %v2431_v52 = vmul.f32 %v8202_v27, %v7504_v1  ;;  %v3654_v27 = vld [vmem:[%s7983_s7 + $0x70] sm:$0xff] }
 0x8c7   : > { %4099 = vperm.xlu0 %5905, %v6068_v6   ;;  %3715 = vperm.xlu1 %5904, %v465_v35  }
 0x8c8   : > { %v3219_v37 = vpop.permute.xlu0 %3218 }
 0x8c9   : > { %v3217_v33 = vpop.permute.xlu1 %3216  ;;  %v3237_v56 = vadd.f32 %v3219_v37, %v3157_v10 }
 0x8ca   : > { %v3236_v6 = vadd.f32 %v3217_v33, %v3156_v18 }
 0x8cb   : > { %4111 = vperm.xlu0 %5905, %v6072_v45   ;;  %3725 = vperm.xlu1 %5904, %v467_v51  }
 0x8cc   : > { %v3299_v34 = vpop.permute.xlu0 %3298 }
 0x8cd   : > { %v3297_v57 = vpop.permute.xlu1 %3296  ;;  %v3317_v16 = vadd.f32 %v3299_v34, %v3237_v56 }
 0x8ce   : > { %v3316_v15 = vadd.f32 %v3297_v57, %v3236_v6 }
 0x8cf   : > { %4119 = vperm.xlu0 %5905, %v6073_v22   ;;  %5906 = vset.pattern.permute.xlu1 %v8201_v23 }
 0x8d0   : > { %v3379_v38 = vpop.permute.xlu0 %3378  ;;  %4103 = vperm.xlu1 %5906, %v7643_v62  }
 0x8d1   : > { %v3377_v20 = vpop.permute.xlu1 %3376  ;;  %v3397_v45 = vadd.f32 %v3379_v38, %v3317_v16 }
 0x8d2   : > { %v3396_v59 = vadd.f32 %v3377_v20, %v3316_v15 }
 0x8d3   : > { %4127 = vperm.xlu0 %5905, %v6074_v25  }
 0x8d4   : > { %v3459_v2 = vpop.permute.xlu0 %3458  ;;  %4107 = vperm.xlu1 %5906, %v7658_v40  }
 0x8d5   : > { %v3457_v53 = vpop.permute.xlu1 %3456  ;;  %v3477_v22 = vadd.f32 %v3459_v2, %v3397_v45 }
 0x8d6   : > { %v3476_v14 = vadd.f32 %v3457_v53, %v3396_v59 }
 0x8d7   : > { %4135 = vperm.xlu0 %5905, %v461_v13  }
 0x8d8   : > { %v3539_v11 = vpop.permute.xlu0 %3538  ;;  %4115 = vperm.xlu1 %5906, %v7652_v41  }
 0x8d9   : > { %v3537_v55 = vpop.permute.xlu1 %3536  ;;  %v3557_v36 = vadd.f32 %v3539_v11, %v3477_v22 }
 0x8da   : > { %v3556_v62 = vadd.f32 %v3537_v55, %v3476_v14 }
 0x8db   : > { %4143 = vperm.xlu0 %5905, %v463_v60  }
 0x8dc   : > { %v3619_v25 = vpop.permute.xlu0 %3618  ;;  %4123 = vperm.xlu1 %5906, %v7664_v47   ;;  %v4082_v47 = vld [vmem:[%s7986_s10] sm:$0xff] }
 0x8dd   : > { %v3637_v17 = vadd.f32 %v3619_v25, %v3557_v36  ;;  %v3617_v29 = vpop.permute.xlu1 %3616  ;;  %5299 = vmatprep.mubr.msk.f32.mxu0 %vm1831_vm7, %v4082_v47  ;;  %v3646_v47 = vld [vmem:[%s7983_s7 + $0x30] sm:$0xff] }
 0x8de   : > { %v3636_v50 = vadd.f32 %v3617_v29, %v3556_v62 }
 0x8df   : > { %4151 = vperm.xlu0 %5905, %v465_v35  }
 0x8e0   : > { %v5631_v46 = vpack.c.bf16 %v3637_v17, %v3636_v50  ;;  %v2503_v40 = vpop.permute.xlu0 %2502  ;;  %4131 = vperm.xlu1 %5906, %v7670_v7  }
 0x8e1   : > { %v2501_v49 = vpop.permute.xlu1 %2500  ;;  %v2519_v23 = vadd.f32 %v2503_v40, %v2431_v52  ;;  %v3655_v52 = vld [vmem:[%s7983_s7 + $0x78] sm:$0xff] }
 0x8e2   : > { %5632 = vmatprep.subr.bf16.mxu1 %v5631_v46 }
 0x8e3   : > { %5634 = vmatpush3.bf16.msra.mxu1 %v5631_v46  ;;  %4159 = vperm.xlu0 %5905, %v467_v51  }
 0x8e4   : > { %v2583_v63 = vpop.permute.xlu0 %2582  ;;  %4139 = vperm.xlu1 %5906, %v7679_v54  }
 0x8e5   : > { %v2581_v24 = vpop.permute.xlu1 %2580  ;;  %v2599_v32 = vadd.f32 %v2583_v63, %v2519_v23  ;;  %v3641_v63 = vld [vmem:[%s7983_s7 + $0x8] sm:$0xff] }
 0x8e6   : > { %v4002_v23 = vld [vmem:[%s7984_s8 + $0x8] sm:$0xff] }
 0x8e8   : > { %v2663_v41 = vpop.permute.xlu0 %2662  ;;  %4147 = vperm.xlu1 %5906, %v7688_v28   ;;  %v2430_v28 = vmul.f32 %v7200_v30, %v7509_v12 }
 0x8e9   : > { %v2661_v42 = vpop.permute.xlu1 %2660 }
 0x8ea   : > { %v2518_v35 = vadd.f32 %v2501_v49, %v2430_v28  ;;  %v8203_v28 = vmov 0.0  }
 0x8ec   : > { %v2743_v13 = vpop.permute.xlu0 %2742  ;;  %4155 = vperm.xlu1 %5906, %v7699_v43   ;;  %v2598_v37 = vadd.f32 %v2581_v24, %v2518_v35  ;;  %v2679_v43 = vadd.f32 %v2663_v41, %v2599_v32  ;;  %v3642_v24 = vld [vmem:[%s7983_s7 + $0x10] sm:$0xff]  ;;  %v3643_v41 = vld [vmem:[%s7983_s7 + $0x18] sm:$0xff]  ;;  %v4083_v32 = vld [vmem:[%s7986_s10 + $0x8] sm:$0xff] }
 0x8ed   : > { %v2741_v19 = vpop.permute.xlu1 %2740 }
 0x8ee   : > { %v2678_v61 = vadd.f32 %v2661_v42, %v2598_v37  ;;  %v2759_v58 = vadd.f32 %v2743_v13, %v2679_v43  ;;  %v3644_v42 = vld [vmem:[%s7983_s7 + $0x20] sm:$0xff]  ;;  %v3645_v13 = vld [vmem:[%s7983_s7 + $0x28] sm:$0xff]  ;;  %v4085_v43 = vld [vmem:[%s7986_s10 + $0x18] sm:$0xff] }
 0x8f0   : > { %v2823_v7 = vpop.permute.xlu0 %2822  ;;  %v2758_v51 = vadd.f32 %v2741_v19, %v2678_v61  ;;  %v3647_v19 = vld [vmem:[%s7983_s7 + $0x38] sm:$0xff]  ;;  %v4087_v61 = vld [vmem:[%s7986_s10 + $0x28] sm:$0xff] }
 0x8f1   : > { %v2821_v5 = vpop.permute.xlu1 %2820  ;;  %v2839_v34 = vadd.f32 %v2823_v7, %v2759_v58  ;;  %v3648_v7 = vld [vmem:[%s7983_s7 + $0x40] sm:$0xff]  ;;  %v4088_v58 = vld [vmem:[%s7986_s10 + $0x30] sm:$0xff] }
 0x8f2   : > { %v2838_v57 = vadd.f32 %v2821_v5, %v2758_v51  ;;  %v3649_v5 = vld [vmem:[%s7983_s7 + $0x48] sm:$0xff]  ;;  %v4089_v51 = vld [vmem:[%s7986_s10 + $0x38] sm:$0xff] }
 0x8f4   : > { %v2903_v60 = vpop.permute.xlu0 %2902 }
 0x8f5   : > { %v2901_v8 = vpop.permute.xlu1 %2900  ;;  %v2919_v1 = vadd.f32 %v2903_v60, %v2839_v34  ;;  %v3650_v60 = vld [vmem:[%s7983_s7 + $0x50] sm:$0xff]  ;;  %v4091_v34 = vld [vmem:[%s7986_s10 + $0x48] sm:$0xff] }
 0x8f6   : > { %v2918_v31 = vadd.f32 %v2901_v8, %v2838_v57  ;;  %v3651_v8 = vld [vmem:[%s7983_s7 + $0x58] sm:$0xff]  ;;  %v4003_v57 = vld [vmem:[%s7984_s8 + $0x10] sm:$0x1] }
 0x8f8   : > { %v2983_v48 = vpop.permute.xlu0 %2982 }
 0x8f9   : > { %v2981_v54 = vpop.permute.xlu1 %2980  ;;  %v2999_v30 = vadd.f32 %v2983_v48, %v2919_v1  ;;  %v3652_v48 = vld [vmem:[%s7983_s7 + $0x60] sm:$0xff]  ;;  %v4093_v1 = vld [vmem:[%s7986_s10 + $0x58] sm:$0xff] }
 0x8fa   : > { %v2998_v9 = vadd.f32 %v2981_v54, %v2918_v31  ;;  %v3653_v54 = vld [vmem:[%s7983_s7 + $0x68] sm:$0xff]  ;;  %v4094_v31 = vld [vmem:[%s7986_s10 + $0x60] sm:$0xff] }
 0x8fc   : > { %v3063_v44 = vpop.permute.xlu0 %3062 }
 0x8fd   : > { %v3061_v4 = vpop.permute.xlu1 %3060  ;;  %v3079_v38 = vadd.f32 %v3063_v44, %v2999_v30  ;;  %v4001_v44 = vld [vmem:[%s7984_s8] sm:$0xff]  ;;  %v4096_v30 = vld [vmem:[%s7986_s10 + $0x70] sm:$0xff] }
 0x8fe   : > { %v3078_v10 = vadd.f32 %v3061_v4, %v2998_v9  ;;  %v5651_v4 = vpack.c.bf16 %v4002_v23, %v4001_v44 }
 0x900   : > { %v3143_v26 = vpop.permute.xlu0 %3142 }
 0x901   : > { %v3141_v33 = vpop.permute.xlu1 %3140  ;;  %v3159_v18 = vadd.f32 %v3143_v26, %v3079_v38  ;;  %v4084_v26 = vld [vmem:[%s7986_s10 + $0x10] sm:$0xff] }
 0x902   : > { %v3158_v6 = vadd.f32 %v3141_v33, %v3078_v10  ;;  %v4086_v33 = vld [vmem:[%s7986_s10 + $0x20] sm:$0xff] }
 0x904   : > { %v3223_v0 = vpop.permute.xlu0 %3222 }
 0x905   : > { %v3221_v39 = vpop.permute.xlu1 %3220  ;;  %v3239_v2 = vadd.f32 %v3223_v0, %v3159_v18  ;;  %v4090_v0 = vld [vmem:[%s7986_s10 + $0x40] sm:$0xff] }
 0x906   : > { %v3238_v16 = vadd.f32 %v3221_v39, %v3158_v6  ;;  %v4092_v39 = vld [vmem:[%s7986_s10 + $0x50] sm:$0xff] }
 0x908   : > { %v3303_v21 = vpop.permute.xlu0 %3302 }
 0x909   : > { %v3301_v12 = vpop.permute.xlu1 %3300  ;;  %v3319_v15 = vadd.f32 %v3303_v21, %v3239_v2  ;;  %v4095_v21 = vld [vmem:[%s7986_s10 + $0x68] sm:$0xff] }
 0x90a   : > { %v3318_v59 = vadd.f32 %v3301_v12, %v3238_v16  ;;  %v4097_v12 = vld [vmem:[%s7986_s10 + $0x78] sm:$0xff] }
 0x90c   : > { %v3383_v20 = vpop.permute.xlu0 %3382 }
 0x90d   : > { %v3381_v56 = vpop.permute.xlu1 %3380  ;;  %v3399_v11 = vadd.f32 %v3383_v20, %v3319_v15 }
 0x90e   : > { %v3398_v22 = vadd.f32 %v3381_v56, %v3318_v59 }
 0x910   : > { %v3463_v53 = vpop.permute.xlu0 %3462 }
 0x911   : > { %v3461_v45 = vpop.permute.xlu1 %3460  ;;  %v3479_v14 = vadd.f32 %v3463_v53, %v3399_v11 }
 0x912   : > { %v3478_v62 = vadd.f32 %v3461_v45, %v3398_v22 }
 0x914   : > { %v3543_v55 = vpop.permute.xlu0 %3542 }
 0x915   : > { %v3541_v36 = vpop.permute.xlu1 %3540  ;;  %v3559_v25 = vadd.f32 %v3543_v55, %v3479_v14 }
 0x916   : > { %v3558_v17 = vadd.f32 %v3541_v36, %v3478_v62 }
 0x918   : > { %v3623_v29 = vpop.permute.xlu0 %3622 }
 0x919   : > { %v3639_v50 = vadd.f32 %v3623_v29, %v3559_v25  ;;  %v3621_v46 = vpop.permute.xlu1 %3620 }
 0x91a   : > { %v3638_v40 = vadd.f32 %v3621_v46, %v3558_v17 }
 0x91c   : > { %v5635_v49 = vpack.c.bf16 %v3639_v50, %v3638_v40 }
 0x91e   : > { %5636 = vmatprep.subr.bf16.mxu1 %v5635_v49 }
 0x91f   : > { %5638 = vmatpush3.bf16.msra.mxu1 %v5635_v49 }
 0x920   : > { %5655 = vmatprep.subr.bf16.mxu1 %v8184_v3 }
 0x922   : > { %5255 = vmatmul.mubr.msk.f32.vlgmr.msra.gmra.mrb[24].mxu1 %vm604_vm0, %v3641_v63 }
 0x923   : > { %5257 = vmatprep.mubr.msk.f32.mxu1 %vm604_vm0, %v3642_v24 }
 0x926   : > { %5258 = vmatmul.mubr.msk.f32.gmra.mrb[26].mxu1 %vm604_vm0, %v3643_v41 }
 0x927   : > { %5260 = vmatprep.mubr.msk.f32.mxu1 %vm604_vm0, %v3644_v42 }
 0x929   : > { %v3662_v20 = vpop.permute.xlu0 %3661 }
 0x92a   : > { %5261 = vmatmul.mubr.msk.f32.gmra.mrb[28].mxu1 %vm604_vm0, %v3645_v13  ;;  %v3658_v9 = vpop.permute.xlu1 %3657 }
 0x92b   : > { %5263 = vmatprep.mubr.msk.f32.mxu1 %vm604_vm0, %v3646_v47 }
 0x92d   : > { %v3674_v56 = vpop.permute.xlu0 %3673 }
 0x92e   : > { %5264 = vmatmul.mubr.msk.f32.gmra.mrb[30].mxu1 %vm604_vm0, %v3647_v19  ;;  %v3666_v38 = vpop.permute.xlu1 %3665 }
 0x92f   : > { %5266 = vmatprep.mubr.msk.f32.mxu1 %vm604_vm0, %v3648_v7 }
 0x931   : > { %v3682_v22 = vpop.permute.xlu0 %3681 }
 0x932   : > { %5267 = vmatmul.mubr.msk.f32.gmra.mrb[32].mxu1 %vm604_vm0, %v3649_v5  ;;  %v3670_v10 = vpop.permute.xlu1 %3669 }
 0x933   : > { %5269 = vmatprep.mubr.msk.f32.mxu1 %vm604_vm0, %v3650_v60 }
 0x935   : > { %v3691_v49 = vpop.permute.xlu0 %3690 }
 0x936   : > { %5270 = vmatmul.mubr.msk.f32.gmra.mrb[34].mxu1 %vm604_vm0, %v3651_v8  ;;  %v3678_v18 = vpop.permute.xlu1 %3677 }
 0x937   : > { %5272 = vmatprep.mubr.msk.f32.mxu1 %vm604_vm0, %v3652_v48 }
 0x93a   : > { %5273 = vmatmul.mubr.msk.f32.gmra.mrb[36].mxu1 %vm604_vm0, %v3653_v54  ;;  %v3686_v45 = vpop.permute.xlu1 %3685 }
 0x93b   : > { %5275 = vmatprep.mubr.msk.f32.mxu1 %vm604_vm0, %v3654_v27  ;;  %v3701_v27 = vpop.permute.xlu0 %3700 }
 0x93e   : > { %5276 = vmatmul.mubr.msk.f32.gmra.mrb[38].mxu1 %vm604_vm0, %v3655_v52  ;;  %v3696_v46 = vpop.permute.xlu1 %3695  ;;  %vm4355_vm0 = vcmask 138240  }
 0x93f   : > { %5385 = vmatprep.mubr.msk.f32.mxu1 %vm6121_vm1, %v8203_v28 }
 0x942   : > { %v3706_v60 = vpop.permute.xlu1 %3705 }
 0x95a   : > { %v4078_v35 = vpop.f32.mrb[28].mxu0 }
 0x95b   : > { %5297 = vmatprep.subr.mxu0 %v4078_v35  ;;  %v5296_v37 = vpop.f32.mrb[29].mxu0 }
 0x95c   : > { %5298 = vmatpush3.msra.mxu0 %v4078_v35 }
 0x95d   : > { %5300 = vmatmul.mubr.msk.f32.vlgmr.msra.gmra.mrb[30].mxu0 %vm1831_vm7, %v4083_v32  ;;  %5652 = vmatprep.subr.bf16.mxu0 %v5651_v4 }
 0x95e   : > { %5302 = vmatprep.mubr.msk.f32.mxu0 %vm1831_vm7, %v4084_v26  ;;  %5654 = vmatpush3.bf16.msra.mxu0 %v5651_v4 }
 0x95f   : > { %5327 = vmatprep.subr.msk.mxu0 %vm2218_vm8, %v4003_v57 }
 0x961   : > { %5303 = vmatmul.mubr.msk.f32.gmra.mrb[32].mxu0 %vm1831_vm7, %v4085_v43 }
 0x962   : > { %5305 = vmatprep.mubr.msk.f32.mxu0 %vm1831_vm7, %v4086_v33  ;;  %5328 = vmatpush3.msk.msra.mxu0 %vm2218_vm8, %v4003_v57 }
 0x965   : > { %5306 = vmatmul.mubr.msk.f32.gmra.mrb[34].mxu0 %vm1831_vm7, %v4087_v61 }
 0x966   : > { %5308 = vmatprep.mubr.msk.f32.mxu0 %vm1831_vm7, %v4088_v58 }
 0x969   : > { %5309 = vmatmul.mubr.msk.f32.gmra.mrb[36].mxu0 %vm1831_vm7, %v4089_v51 }
 0x96a   : > { %5311 = vmatprep.mubr.msk.f32.mxu0 %vm1831_vm7, %v4090_v0 }
 0x96d   : > { %5312 = vmatmul.mubr.msk.f32.gmra.mrb[38].mxu0 %vm1831_vm7, %v4091_v34 }
 0x96e   : > { %5314 = vmatprep.mubr.msk.f32.mxu0 %vm1831_vm7, %v4092_v39  ;;  %v3716_v39 = vpop.permute.xlu1 %3715 }
 0x971   : > { %5315 = vmatmul.mubr.msk.f32.gmra.mrb[40].mxu0 %vm1831_vm7, %v4093_v1 }
 0x972   : > { %5317 = vmatprep.mubr.msk.f32.mxu0 %vm1831_vm7, %v4094_v31  ;;  %v3711_v31 = vpop.permute.xlu0 %3710 }
 0x975   : > { %5318 = vmatmul.mubr.msk.f32.gmra.mrb[42].mxu0 %vm1831_vm7, %v4095_v21 }
 0x976   : > { %5320 = vmatprep.mubr.msk.f32.mxu0 %vm1831_vm7, %v4096_v30 }
 0x979   : > { %5321 = vmatmul.mubr.msk.f32.gmra.mrb[44].mxu0 %vm1831_vm7, %v4097_v12 }
 0x9f5   : > { %v5256_v6 = vpop.f32.mrb[24].mxu1 }
 0x9f6   : > { %v3848_v2 = vadd.f32 %v5256_v6, %v3662_v20  ;;  %v3842_v16 = vpop.f32.mrb[25].mxu1 }
 0x9f7   : > { %v3843_v53 = vadd.f32 %v3842_v16, %v3658_v9 }
 0x9f8   : > { %v3939_v15 = vmul.f32 1.442695, %v3848_v2  ;;  %vm3922_vm5 = vcmp.gt.f32.partialorder %v3848_v2, 0.0 }
 0x9f9   : > { %v3937_v59 = vmul.f32 1.442695, %v3843_v53  ;;  %v5259_v11 = vpop.f32.mrb[26].mxu1  ;;  %vm3921_vm4 = vcmp.gt.f32.partialorder %v3843_v53, 0.0 }
 0x9fa   : > { %6027 = vpow2.f32 %v3939_v15  ;;  %v7868_v55 = vadd.f32 %v5259_v11, %v3670_v10  ;;  %v3852_v14 = vpop.f32.mrb[27].mxu1 }
 0x9fb   : > { %6029 = vpow2.f32 %v3937_v59  ;;  %v3853_v36 = vadd.f32 %v3852_v14, %v3666_v38  ;;  %v3726_v59 = vpop.permute.xlu1 %3725 }
 0x9fc   : > { %v3943_v62 = vmul.f32 1.442695, %v7868_v55  ;;  %vm3924_vm7 = vcmp.gt.f32.partialorder %v7868_v55, 0.0 }
 0x9fd   : > { %v3941_v25 = vmul.f32 1.442695, %v3853_v36  ;;  %v5262_v17 = vpop.f32.mrb[28].mxu1  ;;  %vm3923_vm6 = vcmp.gt.f32.partialorder %v3853_v36, 0.0 }
 0x9fe   : > { %6031 = vpow2.f32 %v3943_v62  ;;  %v7871_v29 = vadd.f32 %v5262_v17, %v3678_v18  ;;  %v3862_v50 = vpop.f32.mrb[29].mxu1 }
 0x9ff   : > { %6033 = vpow2.f32 %v3941_v25  ;;  %v7873_v40 = vadd.f32 %v3862_v50, %v3674_v56 }
 0xa00   : > { %v3947_v63 = vmul.f32 1.442695, %v7871_v29  ;;  %vm3926_vm9 = vcmp.gt.f32.partialorder %v7871_v29, 0.0 }
 0xa01   : > { %v3945_v24 = vmul.f32 1.442695, %v7873_v40  ;;  %v5265_v41 = vpop.f32.mrb[30].mxu1  ;;  %vm3925_vm8 = vcmp.gt.f32.partialorder %v7873_v40, 0.0 }
 0xa02   : > { %6035 = vpow2.f32 %v3947_v63  ;;  %v7877_v42 = vadd.f32 %v5265_v41, %v3686_v45  ;;  %v3872_v13 = vpop.f32.mrb[31].mxu1 }
 0xa03   : > { %6037 = vpow2.f32 %v3945_v24  ;;  %v7879_v47 = vadd.f32 %v3872_v13, %v3682_v22 }
 0xa04   : > { %v6028_v19 = vpop.eup %6027  ;;  %v3951_v7 = vmul.f32 1.442695, %v7877_v42  ;;  %vm3928_vm11 = vcmp.gt.f32.partialorder %v7877_v42, 0.0 }
 0xa05   : > { %v6030_v5 = vpop.eup %6029  ;;  %v4901_v8 = vadd.f32 -1.0, %v6028_v19  ;;  %v3949_v48 = vmul.f32 1.442695, %v7879_v47  ;;  %v5268_v54 = vpop.f32.mrb[32].mxu1  ;;  %vm3927_vm10 = vcmp.gt.f32.partialorder %v7879_v47, 0.0 }
 0xa06   : > { %6039 = vpow2.f32 %v3951_v7  ;;  %v7883_v52 = vadd.f32 %v5268_v54, %v3696_v46  ;;  %v3882_v44 = vpop.f32.mrb[33].mxu1  ;;  %v4900_v23 = vadd.f32 -1.0, %v6030_v5 }
 0xa07   : > { %6041 = vpow2.f32 %v3949_v48  ;;  %v7885_v4 = vadd.f32 %v3882_v44, %v3691_v49  ;;  %v3986_v43 = vsel %vm3922_vm5, %v3848_v2, %v4901_v8 }
 0xa08   : > { %v6032_v35 = vpop.eup %6031  ;;  %v3955_v32 = vmul.f32 1.442695, %v7883_v52  ;;  %v3985_v37 = vsel %vm3921_vm4, %v3843_v53, %v4900_v23  ;;  %vm3930_vm13 = vcmp.gt.f32.partialorder %v7883_v52, 0.0 }
 0xa09   : > { %v6034_v26 = vpop.eup %6033  ;;  %v3953_v33 = vmul.f32 1.442695, %v7885_v4  ;;  %v5271_v61 = vpop.f32.mrb[34].mxu1  ;;  %5329 = vmatprep.mubr.msk.f32.mxu0 %vm4355_vm0, %v3985_v37  ;;  %v4903_v58 = vadd.f32 -1.0, %v6032_v35  ;;  %vm3929_vm12 = vcmp.gt.f32.partialorder %v7885_v4, 0.0 }
 0xa0a   : > { %6043 = vpow2.f32 %v3955_v32  ;;  %v7890_v51 = vadd.f32 %v5271_v61, %v3706_v60  ;;  %v3892_v0 = vpop.f32.mrb[35].mxu1  ;;  %5330 = vmatmul.mubr.msk.f32.vlgmr.msra.gmra.mrb[30].mxu0 %vm4355_vm0, %v3986_v43  ;;  %v4902_v34 = vadd.f32 -1.0, %v6034_v26 }
 0xa0b   : > { %6045 = vpow2.f32 %v3953_v33  ;;  %v7893_v57 = vadd.f32 %v3892_v0, %v3701_v27  ;;  %v3988_v10 = vsel %vm3924_vm7, %v7868_v55, %v4903_v58  ;;  %v4104_v58 = vpop.permute.xlu1 %4103 }
 0xa0c   : > { %v6036_v1 = vpop.eup %6035  ;;  %v3959_v21 = vmul.f32 1.442695, %v7890_v51  ;;  %v3987_v30 = vsel %vm3923_vm6, %v3853_v36, %v4902_v34  ;;  %v3721_v36 = vpop.permute.xlu0 %3720  ;;  %vm3932_vm15 = vcmp.gt.f32.partialorder %v7890_v51, 0.0 }
 0xa0d   : > { %v6038_v12 = vpop.eup %6037  ;;  %v3957_v9 = vmul.f32 1.442695, %v7893_v57  ;;  %v5274_v38 = vpop.f32.mrb[36].mxu1  ;;  %5332 = vmatprep.mubr.msk.f32.mxu0 %vm4355_vm0, %v3987_v30  ;;  %v4905_v20 = vadd.f32 -1.0, %v6036_v1  ;;  %vm3931_vm14 = vcmp.gt.f32.partialorder %v7893_v57, 0.0 }
 0xa0e   : > { %6047 = vpow2.f32 %v3959_v21  ;;  %v7900_v18 = vadd.f32 %v5274_v38, %v3716_v39  ;;  %v3902_v56 = vpop.f32.mrb[37].mxu1  ;;  %5333 = vmatmul.mubr.msk.f32.gmra.mrb[32].mxu0 %vm4355_vm0, %v3988_v10  ;;  %v4904_v6 = vadd.f32 -1.0, %v6038_v12 }
 0xa0f   : > { %6049 = vpow2.f32 %v3957_v9  ;;  %v3903_v2 = vadd.f32 %v3902_v56, %v3711_v31  ;;  %v3990_v55 = vsel %vm3926_vm9, %v7871_v29, %v4905_v20  ;;  %v4108_v0 = vpop.permute.xlu1 %4107 }
 0xa10   : > { %v6040_v16 = vpop.eup %6039  ;;  %v3963_v53 = vmul.f32 1.442695, %v7900_v18  ;;  %v3989_v15 = vsel %vm3925_vm8, %v7873_v40, %v4904_v6  ;;  %vm3934_vm2 = vcmp.gt.f32.partialorder %v7900_v18, 0.0  ;;  %v4100_v61 = vpop.permute.xlu0 %4099 }
 0xa11   : > { %v6042_v45 = vpop.eup %6041  ;;  %v3961_v11 = vmul.f32 1.442695, %v3903_v2  ;;  %v5277_v22 = vpop.f32.mrb[38].mxu1  ;;  %5335 = vmatprep.mubr.msk.f32.mxu0 %vm4355_vm0, %v3989_v15  ;;  %v4907_v14 = vadd.f32 -1.0, %v6040_v16  ;;  %vm3933_vm3 = vcmp.gt.f32.partialorder %v3903_v2, 0.0 }
 0xa12   : > { %6051 = vpow2.f32 %v3963_v53  ;;  %v3918_v62 = vadd.f32 %v5277_v22, %v3726_v59  ;;  %v3912_v25 = vpop.f32.mrb[39].mxu1  ;;  %5336 = vmatmul.mubr.msk.f32.gmra.mrb[34].mxu0 %vm4355_vm0, %v3990_v55  ;;  %v4906_v17 = vadd.f32 -1.0, %v6042_v45 }
 0xa13   : > { %6053 = vpow2.f32 %v3961_v11  ;;  %v3913_v50 = vadd.f32 %v3912_v25, %v3721_v36  ;;  %v3992_v24 = vsel %vm3928_vm11, %v7877_v42, %v4907_v14  ;;  %v4116_v39 = vpop.permute.xlu1 %4115 }
 0xa14   : > { %v6044_v46 = vpop.eup %6043  ;;  %v3967_v40 = vmul.f32 1.442695, %v3918_v62  ;;  %v3991_v49 = vsel %vm3927_vm10, %v7879_v47, %v4906_v17  ;;  %vm3936_vm5 = vcmp.gt.f32.partialorder %v3918_v62, 0.0 }
 0xa15   : > { %v6046_v63 = vpop.eup %6045  ;;  %v3965_v29 = vmul.f32 1.442695, %v3913_v50  ;;  %5338 = vmatprep.mubr.msk.f32.mxu0 %vm4355_vm0, %v3991_v49  ;;  %v4909_v41 = vadd.f32 -1.0, %v6044_v46  ;;  %vm3935_vm4 = vcmp.gt.f32.partialorder %v3913_v50, 0.0 }
 0xa16   : > { %6055 = vpow2.f32 %v3967_v40  ;;  %5339 = vmatmul.mubr.msk.f32.gmra.mrb[36].mxu0 %vm4355_vm0, %v3992_v24  ;;  %v4908_v13 = vadd.f32 -1.0, %v6046_v63 }
 0xa17   : > { %6057 = vpow2.f32 %v3965_v29  ;;  %v3994_v5 = vsel %vm3930_vm13, %v7883_v52, %v4909_v41  ;;  %v4124_v10 = vpop.permute.xlu1 %4123 }
 0xa18   : > { %v6048_v19 = vpop.eup %6047  ;;  %v3993_v7 = vsel %vm3929_vm12, %v7885_v4, %v4908_v13 }
 0xa19   : > { %v6050_v47 = vpop.eup %6049  ;;  %5341 = vmatprep.mubr.msk.f32.mxu0 %vm4355_vm0, %v3993_v7  ;;  %v4911_v60 = vadd.f32 -1.0, %v6048_v19 }
 0xa1a   : > { %5342 = vmatmul.mubr.msk.f32.gmra.mrb[38].mxu0 %vm4355_vm0, %v3994_v5  ;;  %v4910_v42 = vadd.f32 -1.0, %v6050_v47 }
 0xa1b   : > { %v3996_v27 = vsel %vm3932_vm15, %v7890_v51, %v4911_v60  ;;  %v4112_v51 = vpop.permute.xlu0 %4111  ;;  %v4132_v11 = vpop.permute.xlu1 %4131 }
 0xa1c   : > { %v6052_v8 = vpop.eup %6051  ;;  %v3995_v48 = vsel %vm3931_vm14, %v7893_v57, %v4910_v42 }
 0xa1d   : > { %v6054_v54 = vpop.eup %6053  ;;  %5344 = vmatprep.mubr.msk.f32.mxu0 %vm4355_vm0, %v3995_v48  ;;  %v4913_v44 = vadd.f32 -1.0, %v6052_v8 }
 0xa1e   : > { %5345 = vmatmul.mubr.msk.f32.gmra.mrb[40].mxu0 %vm4355_vm0, %v3996_v27  ;;  %v4912_v52 = vadd.f32 -1.0, %v6054_v54 }
 0xa1f   : > { %v3998_v32 = vsel %vm3934_vm2, %v7900_v18, %v4913_v44  ;;  %v4120_v34 = vpop.permute.xlu0 %4119  ;;  %v4140_v49 = vpop.permute.xlu1 %4139 }
 0xa20   : > { %v6056_v23 = vpop.eup %6055  ;;  %v3997_v4 = vsel %vm3933_vm3, %v3903_v2, %v4912_v52 }
 0xa21   : > { %v6058_v35 = vpop.eup %6057  ;;  %5347 = vmatprep.mubr.msk.f32.mxu0 %vm4355_vm0, %v3997_v4  ;;  %v4915_v37 = vadd.f32 -1.0, %v6056_v23 }
 0xa22   : > { %5348 = vmatmul.mubr.msk.f32.gmra.mrb[42].mxu0 %vm4355_vm0, %v3998_v32  ;;  %v4914_v26 = vadd.f32 -1.0, %v6058_v35 }
 0xa23   : > { %v4000_v33 = vsel %vm3936_vm5, %v3918_v62, %v4915_v37  ;;  %v4128_v30 = vpop.permute.xlu0 %4127  ;;  %v4148_v42 = vpop.permute.xlu1 %4147 }
 0xa24   : > { %v3999_v43 = vsel %vm3935_vm4, %v3913_v50, %v4914_v26 }
 0xa25   : > { %5350 = vmatprep.mubr.msk.f32.mxu0 %vm4355_vm0, %v3999_v43 }
 0xa26   : > { %5351 = vmatmul.mubr.msk.f32.gmra.mrb[44].mxu0 %vm4355_vm0, %v4000_v33 }
 0xa27   : > { %v4136_v45 = vpop.permute.xlu0 %4135  ;;  %v4156_v37 = vpop.permute.xlu1 %4155 }
 0xa2b   : > { %v4144_v17 = vpop.permute.xlu0 %4143 }
 0xa2f   : > { %v4152_v5 = vpop.permute.xlu0 %4151 }
 0xa33   : > { %v4160_v23 = vpop.permute.xlu0 %4159 }
 0xadd   : > { %v5331_v57 = vpop.f32.mrb[30].mxu0 }
 0xade   : > { %v5703_v1 = vadd.f32 %v5331_v57, %v4104_v58  ;;  %v4473_v31 = vpop.f32.mrb[31].mxu0 }
 0xadf   : > { %v5704_v21 = vadd.f32 %v4473_v31, %v4100_v61 }
 0xae1   : > { %v5907_v12 = vpack.i.bf16 %v5703_v1, %v5704_v21  ;;  %v5656_v9 = vpack.c.bf16 %v5703_v1, %v5704_v21  ;;  %v5334_v38 = vpop.f32.mrb[32].mxu0 }
 0xae2   : > { %v5705_v20 = vadd.f32 %v5334_v38, %v4112_v51  ;;  %v4483_v18 = vpop.f32.mrb[33].mxu0  ;;  %v4552_v51 = vld [vmem:[%s7987_s11] sm:$0xf] }
 0xae3   : > { %v5706_v56 = vadd.f32 %v4483_v18, %v4108_v0  ;;  %5908 = vrot.lane.b32.xlu1 %v5907_v12, %s6163_s16  ;;  %5657 = vmatpush3.bf16.msra.mxu1 %v5656_v9 }
 0xae4   : > { %5658 = vmatprep.subr.bf16.mxu1 %v8184_v3 }
 0xae5   : > { %v5912_v6 = vpack.i.bf16 %v5705_v20, %v5706_v56  ;;  %v5659_v2 = vpack.c.bf16 %v5705_v20, %v5706_v56  ;;  %v5337_v16 = vpop.f32.mrb[34].mxu0 }
 0xae6   : > { %v5707_v53 = vadd.f32 %v5337_v16, %v4120_v34  ;;  %v4493_v15 = vpop.f32.mrb[35].mxu0 }
 0xae7   : > { %v5708_v59 = vadd.f32 %v4493_v15, %v4116_v39  ;;  %5913 = vrot.lane.b32.xlu0 %v5912_v6, %s6163_s16  ;;  %5660 = vmatpush3.bf16.msra.mxu1 %v5659_v2 }
 0xae8   : > { %5661 = vmatprep.subr.bf16.mxu1 %v8184_v3 }
 0xae9   : > { %v5917_v22 = vpack.i.bf16 %v5707_v53, %v5708_v59  ;;  %v5662_v55 = vpack.c.bf16 %v5707_v53, %v5708_v59  ;;  %v5340_v14 = vpop.f32.mrb[36].mxu0 }
 0xaea   : > { %v5709_v36 = vadd.f32 %v5340_v14, %v4128_v30  ;;  %v4503_v62 = vpop.f32.mrb[37].mxu0 }
 0xaeb   : > { %v5710_v25 = vadd.f32 %v4503_v62, %v4124_v10  ;;  %5918 = vrot.lane.b32.xlu1 %v5917_v22, %s6163_s16  ;;  %5663 = vmatpush3.bf16.msra.mxu1 %v5662_v55 }
 0xaec   : > { %5664 = vmatprep.subr.bf16.mxu1 %v8184_v3 }
 0xaed   : > { %v5922_v50 = vpack.i.bf16 %v5709_v36, %v5710_v25  ;;  %v5665_v46 = vpack.c.bf16 %v5709_v36, %v5710_v25  ;;  %v5343_v40 = vpop.f32.mrb[38].mxu0 }
 0xaee   : > { %v5711_v63 = vadd.f32 %v5343_v40, %v4136_v45  ;;  %v4513_v29 = vpop.f32.mrb[39].mxu0 }
 0xaef   : > { %v5712_v24 = vadd.f32 %v4513_v29, %v4132_v11  ;;  %5923 = vrot.lane.b32.xlu0 %v5922_v50, %s6163_s16  ;;  %5666 = vmatpush3.bf16.msra.mxu1 %v5665_v46  ;;  %v4950_v46 = vld [vmem:[%s7987_s11 + $0x4] sm:$0xf] }
 0xaf0   : > { %5667 = vmatprep.subr.bf16.mxu1 %v8184_v3 }
 0xaf1   : > { %v5927_v41 = vpack.i.bf16 %v5711_v63, %v5712_v24  ;;  %v5668_v13 = vpack.c.bf16 %v5711_v63, %v5712_v24  ;;  %v5346_v19 = vpop.f32.mrb[40].mxu0 }
 0xaf2   : > { %v5713_v7 = vadd.f32 %v5346_v19, %v4144_v17  ;;  %v4523_v47 = vpop.f32.mrb[41].mxu0 }
 0xaf3   : > { %v5714_v60 = vadd.f32 %v4523_v47, %v4140_v49  ;;  %5928 = vrot.lane.b32.xlu1 %v5927_v41, %s6163_s16  ;;  %5669 = vmatpush3.bf16.msra.mxu1 %v5668_v13 }
 0xaf4   : > { %5670 = vmatprep.subr.bf16.mxu1 %v8184_v3 }
 0xaf5   : > { %v5932_v8 = vpack.i.bf16 %v5713_v7, %v5714_v60  ;;  %v5671_v48 = vpack.c.bf16 %v5713_v7, %v5714_v60  ;;  %v5349_v54 = vpop.f32.mrb[42].mxu0 }
 0xaf6   : > { %v5715_v27 = vadd.f32 %v5349_v54, %v4152_v5  ;;  %v4533_v44 = vpop.f32.mrb[43].mxu0 }
 0xaf7   : > { %v5716_v52 = vadd.f32 %v4533_v44, %v4148_v42  ;;  %5933 = vrot.lane.b32.xlu0 %v5932_v8, %s6163_s16  ;;  %5672 = vmatpush3.bf16.msra.mxu1 %v5671_v48 }
 0xaf8   : > { %5673 = vmatprep.subr.bf16.mxu1 %v8184_v3 }
 0xaf9   : > { %v5937_v4 = vpack.i.bf16 %v5715_v27, %v5716_v52  ;;  %v5674_v35 = vpack.c.bf16 %v5715_v27, %v5716_v52  ;;  %v5352_v32 = vpop.f32.mrb[44].mxu0 }
 0xafa   : > { %v5717_v26 = vadd.f32 %v5352_v32, %v4160_v23  ;;  %v4543_v43 = vpop.f32.mrb[45].mxu0 }
 0xafb   : > { %v5718_v33 = vadd.f32 %v4543_v43, %v4156_v37  ;;  %5938 = vrot.lane.b32.xlu1 %v5937_v4, %s6163_s16  ;;  %5675 = vmatpush3.bf16.msra.mxu1 %v5674_v35 }
 0xafc   : > { %5676 = vmatprep.subr.bf16.mxu1 %v8184_v3 }
 0xafd   : > { %v5942_v61 = vpack.i.bf16 %v5717_v26, %v5718_v33  ;;  %v5677_v58 = vpack.c.bf16 %v5717_v26, %v5718_v33 }
 0xaff   : > { %5943 = vrot.lane.b32.xlu0 %v5942_v61, %s6163_s16  ;;  %5678 = vmatpush3.bf16.msra.mxu1 %v5677_v58 }
 0xb00   : > { %5679 = vmatprep.subr.bf16.mxu1 %v8184_v3 }
 0xb02   : > { %5386 = vmatmul.mubr.f32.vlgmr.msra.gmra.mrb[40].mxu1 %v4552_v51 }
 0xb03   : > { %5420 = vmatprep.mubr.msk.f32.mxu1 %vm6121_vm1, %v8203_v28  ;;  %vm4773_vm1 = vcmask 3072  }
 0xb55   : > { %v5909_v0 = vpop.permute.xlu1 %5908 }
 0xb56   : > { %v5911_v34 = vunpack.i.h.bf16 %v5909_v0  ;;  %v5910_v39 = vunpack.i.l.bf16 %v5909_v0 }
 0xb58   : > { %v5680_v57 = vpack.c.bf16 %v5911_v34, %v5910_v39 }
 0xb59   : > { %v5914_v1 = vpop.permute.xlu0 %5913 }
 0xb5a   : > { %v5916_v31 = vunpack.i.h.bf16 %v5914_v1  ;;  %v5915_v21 = vunpack.i.l.bf16 %v5914_v1  ;;  %5681 = vmatpush3.bf16.msra.mxu1 %v5680_v57 }
 0xb5b   : > { %5682 = vmatprep.subr.bf16.mxu1 %v8184_v3 }
 0xb5c   : > { %v5683_v30 = vpack.c.bf16 %v5916_v31, %v5915_v21 }
 0xb5d   : > { %v5919_v12 = vpop.permute.xlu1 %5918 }
 0xb5e   : > { %v5921_v9 = vunpack.i.h.bf16 %v5919_v12  ;;  %v5920_v38 = vunpack.i.l.bf16 %v5919_v12  ;;  %5684 = vmatpush3.bf16.msra.mxu1 %v5683_v30 }
 0xb5f   : > { %5685 = vmatprep.subr.bf16.mxu1 %v8184_v3 }
 0xb60   : > { %v5686_v10 = vpack.c.bf16 %v5921_v9, %v5920_v38 }
 0xb61   : > { %v5924_v20 = vpop.permute.xlu0 %5923 }
 0xb62   : > { %v5926_v28 = vunpack.i.h.bf16 %v5924_v20  ;;  %v5925_v18 = vunpack.i.l.bf16 %v5924_v20  ;;  %5687 = vmatpush3.bf16.msra.mxu1 %v5686_v10 }
 0xb63   : > { %5688 = vmatprep.subr.bf16.mxu1 %v8184_v3 }
 0xb64   : > { %v5689_v56 = vpack.c.bf16 %v5926_v28, %v5925_v18 }
 0xb65   : > { %v5929_v6 = vpop.permute.xlu1 %5928 }
 0xb66   : > { %v5931_v2 = vunpack.i.h.bf16 %v5929_v6  ;;  %v5930_v16 = vunpack.i.l.bf16 %v5929_v6  ;;  %5690 = vmatpush3.bf16.msra.mxu1 %v5689_v56 }
 0xb67   : > { %5691 = vmatprep.subr.bf16.mxu1 %v8184_v3 }
 0xb68   : > { %v5692_v53 = vpack.c.bf16 %v5931_v2, %v5930_v16 }
 0xb69   : > { %v5934_v15 = vpop.permute.xlu0 %5933 }
 0xb6a   : > { %v5936_v45 = vunpack.i.h.bf16 %v5934_v15  ;;  %v5935_v59 = vunpack.i.l.bf16 %v5934_v15  ;;  %5693 = vmatpush3.bf16.msra.mxu1 %v5692_v53 }
 0xb6b   : > { %5694 = vmatprep.subr.bf16.mxu1 %v8184_v3 }
 0xb6c   : > { %v5695_v11 = vpack.c.bf16 %v5936_v45, %v5935_v59 }
 0xb6d   : > { %v5939_v22 = vpop.permute.xlu1 %5938 }
 0xb6e   : > { %v5941_v55 = vunpack.i.h.bf16 %v5939_v22  ;;  %v5940_v14 = vunpack.i.l.bf16 %v5939_v22  ;;  %5696 = vmatpush3.bf16.msra.mxu1 %v5695_v11 }
 0xb6f   : > { %5697 = vmatprep.subr.bf16.mxu1 %v8184_v3 }
 0xb70   : > { %v5698_v36 = vpack.c.bf16 %v5941_v55, %v5940_v14 }
 0xb71   : > { %v5944_v62 = vpop.permute.xlu0 %5943 }
 0xb72   : > { %v5946_v25 = vunpack.i.h.bf16 %v5944_v62  ;;  %v5945_v17 = vunpack.i.l.bf16 %v5944_v62  ;;  %5699 = vmatpush3.bf16.msra.mxu1 %v5698_v36 }
 0xb73   : > { %5700 = vmatprep.subr.bf16.mxu1 %v8184_v3  ;;  %v6075_v3 = vld [vmem:[%s7988_s12] sm:$0xff] }
 0xb74   : > { %v5701_v50 = vpack.c.bf16 %v5946_v25, %v5945_v17 }
 0xb76   : > { %5702 = vmatpush3.bf16.msra.mxu1 %v5701_v50 }
 0xb79   : > { %5421 = vmatmul.mubr.f32.vlgmr.msra.gmra.mrb[42].mxu1 %v4950_v46 }
 0xbd5   : > { %v4619_v40 = vpop.f32.mrb[40].mxu1 }
 0xbd6   : > { %v5387_v49 = vpop.f32.mrb[41].mxu1  ;;  %4624 = vrot.lane.b32.xlu1 %v4619_v40, %s6178_s18 }
 0xc48   : > { %v4625_v24 = vpop.permute.xlu1 %4624 }
 0xc49   : > { %v4627_v41 = vadd.f32 %v6075_v3, %v4625_v24 }
 0xc4c   : > { %v4760_v63 = vpop.f32.mrb[42].mxu1 }
 0xc4d   : > { %4765 = vrot.lane.b32.xlu0 %v4760_v63, %s6178_s18  ;;  %v5422_v29 = vpop.f32.mrb[43].mxu1 }
 0xcbf   : > { %v4766_v13 = vpop.permute.xlu0 %4765 }
 0xcc0   : > { %v4768_v19 = vadd.f32 %v4766_v13, %v4627_v41 }
 0xcc2   : > { %4770 = vrot.lane.b32.xlu1 %v4768_v19, %s8204_s21 }
 0xd34   : > { %v4771_v7 = vpop.permute.xlu1 %4770 }
 0xd35   : > { %4774 = vst.msk [vmem:[%s450_s14] sm:$0xf] %vm4773_vm1, %v4771_v7 }
 0xd36 PF: > { %s24_s25 = sadd.s32 1, %s6114_s25  }
 0xd37   : > { %p21_p3 = scmp.ge.s32.totalorder %s24_s25, 4  }
 0xd39   :  { %23 = sbr.rel (!%p21_p3) target bundleno = 1 (0x1), region = 108 }
 0xd40   :  { %4794 = vsyncpa [#allocation4], 1 }
 0xd41   :  { %4796 = vsyncpa [#allocation4 + $0x1], 1 }

</bundles_post_ra>
